<compile_context>
chip_gen: v6e
topology: v6e:2x2x1
jax: 0.10.0
libtpu: 0.0.40
codegen_flags: <defaults>
</compile_context>

<pallas_src>
import functools
import math

import numpy as np

import jax
import jax.numpy as jnp
from jax import lax
from jax.experimental import pallas as pl
from jax.experimental.pallas import tpu as pltpu


# -----------------------------------------------------------------------------
# Fused kernel: full dense-net forward for one lane-batched block of images.
# -----------------------------------------------------------------------------
def _fused_kernel(*refs, PW, SWT, layer_meta):
    """refs layout:
      refs[0]                     x_ref    (1, 8, SWT)   pre-padded input slab
      refs[1]                     mask_ref (1, SWT)      interior mask (0/1 f32)
      refs[2+2l], refs[3+2l]      w_ref_l (9, 8, cin_pad_l), b_ref_l (8, 1)
      refs[2+2L]                  o_ref    (1, 8, SWT)
      refs[3+2L]                  act_ref  VMEM scratch (8*L, SWT)
    """
    n_layers = len(layer_meta)
    x_ref = refs[0]
    mask_ref = refs[1]
    w_refs = [refs[2 + 2 * l] for l in range(n_layers)]
    b_refs = [refs[3 + 2 * l] for l in range(n_layers)]
    o_ref = refs[2 + 2 * n_layers]
    act_ref = refs[3 + 2 * n_layers]

    # Prologue: ONE aligned (8, SWT) store of the pre-padded flattened input.
    act_ref[0:8, :] = x_ref[0]

    mask = mask_ref[...]                      # (1, SWT): 1 on interior pixels

    for l, (cin_pad, cout_pad) in enumerate(layer_meta):
        w_ref = w_refs[l]                     # (9, cout_pad, cin_pad)
        b_ref = b_refs[l]                     # (cout_pad, 1)
        slab = act_ref[0:cin_pad, :]          # aligned whole-slab load, reused 9x

        # Bias-initialised accumulator at full lane width (no masked epilogue).
        acc = jnp.broadcast_to(b_ref[...], (cout_pad, SWT))
        for dy in range(3):
            for dx in range(3):
                off = dy * PW + dx
                # (cout_pad, cin_pad) @ (cin_pad, SWT) on the fixed aligned slab.
                tap = jnp.dot(w_ref[3 * dy + dx], slab,
                              preferred_element_type=jnp.float32)
                # Fold conv-tap shift and the +PW+1 dense-concat shift into one
                # lane rotation of the small result (XLU); slack/ring columns of
                # the slab are zero so circular wrap contributes nothing.
                shift = ((PW + 1) - off) % SWT
                if shift:
                    tap = pltpu.roll(tap, shift=shift, axis=1)
                acc = acc + tap

        if l < n_layers - 1:
            acc = jnp.where(acc > 0, acc, 0.1 * acc)        # LeakyReLU(0.1)
            # Dense concat == aligned, unmasked 8-row store into this layer's
            # channel slice; the mask zeroes padding ring / slack / roll wrap.
            act_ref[8 * (l + 1):8 * (l + 2), :] = acc * mask
        else:
            # predict_flow: no activation; lane/sublane-dense store. Halo
            # columns hold garbage and are cropped by the wrapper.
            o_ref[0] = acc.astype(o_ref.dtype)


# -----------------------------------------------------------------------------
# Host-side weight preparation: scatter torch-ordered Cin into the 8-aligned
# scratch channel layout and pad Cout to 8.
# -----------------------------------------------------------------------------
def _prepare_params(params, ch_in):
    couts = [int(w.shape[3]) for (w, _b) in params[:-1]]
    prepared = []
    for l, (w, b) in enumerate(params):
        w = np.asarray(w, np.float32)
        b = np.asarray(b, np.float32)
        cin, cout = int(w.shape[2]), int(w.shape[3])
        cin_pad, cout_pad = 8 * (l + 1), 8
        # torch concat order of layer-l input channels: [conv_{l-1},...,conv_0, input]
        rows = []
        for j in reversed(range(l)):
            rows += list(range(8 * (j + 1), 8 * (j + 1) + couts[j]))
        rows += list(range(ch_in))
        assert len(rows) == cin
        w_pad = np.zeros((3, 3, cin_pad, cout_pad), np.float32)
        w_pad[:, :, rows, :cout] = w
        w_k = np.transpose(w_pad, (0, 1, 3, 2)).reshape(9, cout_pad, cin_pad)
        b_pad = np.zeros((cout_pad, 1), np.float32)
        b_pad[:cout, 0] = b
        prepared.append((jnp.asarray(w_k), jnp.asarray(b_pad)))
    return prepared


# -----------------------------------------------------------------------------
# Public wrapper (NCHW in, NCHW out)
# -----------------------------------------------------------------------------
def estimator_densenet_tiny(x_nchw, params, n_blk=None):
    N, ch_in, H, W = x_nchw.shape
    assert ch_in <= 8, "input channels must fit the 8-row input slice"
    n_layers = len(params)
    ch_out = int(params[-1][0].shape[3])

    PW = W + 2
    LQ = (H + 2) * PW                         # flattened padded-plane length
    SW = -(-LQ // 128) * 128                  # lane-tile rounded
    if SW - LQ < PW + 1:                      # slack needed for the roll wrap
        SW += 128

    # Lane-batch n_blk images per grid step; keep >= 2 grid steps when possible
    # so both v7x TensorCores get work (no-op on single-TC v5e/v6e).
    if n_blk is None:
        n_blk = max(1, min(16, -(-N // 2)))
    num_blocks = -(-N // n_blk)
    N_pad = num_blocks * n_blk
    SWT = n_blk * SW

    prepared = _prepare_params(params, ch_in)
    layer_meta = tuple((8 * (l + 1), 8) for l in range(n_layers))

    # Host-side input prep: channel-pad to 8, spatial zero-pad by 1, flatten the
    # padded plane onto the lane axis, pad lanes to SW, lane-batch n_blk images.
    x = jnp.pad(x_nchw.astype(jnp.float32),
                ((0, N_pad - N), (0, 8 - ch_in), (1, 1), (1, 1)))
    x = x.reshape(N_pad, 8, LQ)
    x = jnp.pad(x, ((0, 0), (0, 0), (0, SW - LQ)))
    x = x.reshape(num_blocks, n_blk, 8, SW).transpose(0, 2, 1, 3)
    x = x.reshape(num_blocks, 8, SWT)

    # Interior mask over the padded-plane column index (1 on real pixels only),
    # tiled over the n_blk lane-batched images.
    j = np.arange(SW)
    m = (((j // PW) >= 1) & ((j // PW) <= H)
         & ((j % PW) >= 1) & ((j % PW) <= W) & (j < LQ))
    mask = jnp.asarray(np.tile(m.astype(np.float32), n_blk).reshape(1, SWT))

    kern = functools.partial(_fused_kernel, PW=PW, SWT=SWT, layer_meta=layer_meta)

    in_specs = [
        pl.BlockSpec((1, 8, SWT), lambda n: (n, 0, 0)),      # input slab
        pl.BlockSpec((1, SWT), lambda n: (0, 0)),            # interior mask
    ]
    inputs = [x, mask]
    for (w_k, b_k) in prepared:
        in_specs.append(pl.BlockSpec(w_k.shape, lambda n: (0, 0, 0)))
        in_specs.append(pl.BlockSpec(b_k.shape, lambda n: (0, 0)))
        inputs += [w_k, b_k]

    out = pl.pallas_call(
        kern,
        out_shape=jax.ShapeDtypeStruct((num_blocks, 8, SWT), jnp.float32),
        grid=(num_blocks,),
        in_specs=in_specs,
        out_specs=pl.BlockSpec((1, 8, SWT), lambda n: (n, 0, 0)),
        scratch_shapes=[pltpu.VMEM((8 * n_layers, SWT), jnp.float32)],
        compiler_params=pltpu.CompilerParams(
            dimension_semantics=("parallel",)),
    )(*inputs)

    # Un-batch the lanes, crop channel / halo padding, return NCHW.
    out = out.reshape(num_blocks, 8, n_blk, SW).transpose(0, 2, 1, 3)
    out = out.reshape(N_pad, 8, SW)[:N, :ch_out, :LQ]
    out = out.reshape(N, ch_out, H + 2, W + 2)[:, :, 1:H + 1, 1:W + 1]
    return out


# -----------------------------------------------------------------------------
# Pure-JAX reference (lax.conv), follows the torch module exactly
# -----------------------------------------------------------------------------
def reference_forward(x_nchw, params):
    x = jnp.transpose(x_nchw, (0, 2, 3, 1))

    def conv(x, w, b):
        y = lax.conv_general_dilated(
            x, w, window_strides=(1, 1), padding="SAME",
            dimension_numbers=("NHWC", "HWIO", "NHWC"))
        return y + b

    for (w, b) in params[:-1]:
        y = conv(x, w, b)
        y = jnp.where(y > 0, y, 0.1 * y)
        x = jnp.concatenate([y, x], axis=-1)     # torch.cat((conv(x), x), dim=1)
    w, b = params[-1]
    out = conv(x, w, b)
    return jnp.transpose(out, (0, 3, 1, 2))


def init_conv(key, cin, cout):
    """Deterministic init mimicking PyTorch Conv2d default (uniform, fan_in).
    Weights in HWIO with the Cin axis in the *torch* channel order."""
    kw, kb = jax.random.split(key)
    fan_in = cin * 3 * 3
    bound = 1.0 / math.sqrt(fan_in)
    w = jax.random.uniform(kw, (3, 3, cin, cout), jnp.float32, -bound, bound)
    b = jax.random.uniform(kb, (cout,), jnp.float32, -bound, bound)
    return w, b


if __name__ == "__main__":
    ch_in, ch_out = 4, 2
    N, H, W = 2, 16, 16

    key = jax.random.PRNGKey(0)
    keys = jax.random.split(key, 7)
    x_nchw = jax.random.normal(keys[0], (N, ch_in, H, W), jnp.float32)

    # Layer channel plan (matches __init__): conv0..conv4 then predict_flow.
    layer_io = [
        (ch_in, 8),
        (ch_in + 8, 8),
        (ch_in + 16, 6),
        (ch_in + 22, 4),
        (ch_in + 26, 2),
        (ch_in + 28, ch_out),
    ]
    params = [init_conv(keys[i + 1], cin, cout)
              for i, (cin, cout) in enumerate(layer_io)]

    out = estimator_densenet_tiny(x_nchw, params)
    out = jax.block_until_ready(out)
    assert out.shape == (N, ch_out, H, W), out.shape

    ref = reference_forward(x_nchw, params)
    assert jnp.allclose(out, ref, rtol=1e-4, atol=1e-4), \
        float(jnp.max(jnp.abs(out - ref)))

    print("KERNEL_OK")
</pallas_src>

<mosaic_0001>
module attributes {stable_mosaic.version = 11 : i64} {
  func.func @_fused_kernel(%arg0: i32, %arg1: memref<1x8x384xf32, #tpu.memory_space<vmem>>, %arg2: memref<1x384xf32, #tpu.memory_space<vmem>>, %arg3: memref<9x8x8xf32, #tpu.memory_space<vmem>>, %arg4: memref<8x1xf32, #tpu.memory_space<vmem>>, %arg5: memref<9x8x16xf32, #tpu.memory_space<vmem>>, %arg6: memref<8x1xf32, #tpu.memory_space<vmem>>, %arg7: memref<9x8x24xf32, #tpu.memory_space<vmem>>, %arg8: memref<8x1xf32, #tpu.memory_space<vmem>>, %arg9: memref<9x8x32xf32, #tpu.memory_space<vmem>>, %arg10: memref<8x1xf32, #tpu.memory_space<vmem>>, %arg11: memref<9x8x40xf32, #tpu.memory_space<vmem>>, %arg12: memref<8x1xf32, #tpu.memory_space<vmem>>, %arg13: memref<9x8x48xf32, #tpu.memory_space<vmem>>, %arg14: memref<8x1xf32, #tpu.memory_space<vmem>>, %arg15: memref<1x8x384xf32, #tpu.memory_space<vmem>>, %arg16: memref<48x384xf32, #tpu.memory_space<vmem>>) attributes {dimension_semantics = [#tpu.dimension_semantics<parallel>], iteration_bounds = array<i64: 2>, scalar_prefetch = 0 : i64, scratch_operands = 1 : i64, tpu.core_type = #tpu.core_type<tc>, window_params = [{transform_indices = @transform_0, window_bounds = array<i64: 1, 8, 384>}, {pipeline_mode = #tpu.pipeline_mode<synchronous>, transform_indices = @transform_1, window_bounds = array<i64: 1, 384>}, {pipeline_mode = #tpu.pipeline_mode<synchronous>, transform_indices = @transform_2, window_bounds = array<i64: 9, 8, 8>}, {pipeline_mode = #tpu.pipeline_mode<synchronous>, transform_indices = @transform_3, window_bounds = array<i64: 8, 1>}, {pipeline_mode = #tpu.pipeline_mode<synchronous>, transform_indices = @transform_4, window_bounds = array<i64: 9, 8, 16>}, {pipeline_mode = #tpu.pipeline_mode<synchronous>, transform_indices = @transform_5, window_bounds = array<i64: 8, 1>}, {pipeline_mode = #tpu.pipeline_mode<synchronous>, transform_indices = @transform_6, window_bounds = array<i64: 9, 8, 24>}, {pipeline_mode = #tpu.pipeline_mode<synchronous>, transform_indices = @transform_7, window_bounds = array<i64: 8, 1>}, {pipeline_mode = #tpu.pipeline_mode<synchronous>, transform_indices = @transform_8, window_bounds = array<i64: 9, 8, 32>}, {pipeline_mode = #tpu.pipeline_mode<synchronous>, transform_indices = @transform_9, window_bounds = array<i64: 8, 1>}, {pipeline_mode = #tpu.pipeline_mode<synchronous>, transform_indices = @transform_10, window_bounds = array<i64: 9, 8, 40>}, {pipeline_mode = #tpu.pipeline_mode<synchronous>, transform_indices = @transform_11, window_bounds = array<i64: 8, 1>}, {pipeline_mode = #tpu.pipeline_mode<synchronous>, transform_indices = @transform_12, window_bounds = array<i64: 9, 8, 48>}, {pipeline_mode = #tpu.pipeline_mode<synchronous>, transform_indices = @transform_13, window_bounds = array<i64: 8, 1>}, {transform_indices = @transform_14, window_bounds = array<i64: 1, 8, 384>}]} {
    %c0 = arith.constant 0 : index
    %c0_0 = arith.constant 0 : index
    %c0_1 = arith.constant 0 : index
    %0 = vector.load %arg1[%c0, %c0_0, %c0_1] : memref<1x8x384xf32, #tpu.memory_space<vmem>>, vector<1x8x384xf32>
    %1 = vector.shape_cast %0 : vector<1x8x384xf32> to vector<8x384xf32>
    %c0_2 = arith.constant 0 : index
    %c0_3 = arith.constant 0 : index
    %2 = vector.load %arg16[%c0_2, %c0_3] : memref<48x384xf32, #tpu.memory_space<vmem>>, vector<8x384xf32>
    tpu.vector_store %arg16[%c0_2, %c0_3], %1 {strides = array<i32>} : memref<48x384xf32, #tpu.memory_space<vmem>>, vector<8x384xf32>,
    %c0_4 = arith.constant 0 : index
    %c0_5 = arith.constant 0 : index
    %3 = vector.load %arg2[%c0_4, %c0_5] : memref<1x384xf32, #tpu.memory_space<vmem>>, vector<1x384xf32>
    %c0_6 = arith.constant 0 : index
    %c0_7 = arith.constant 0 : index
    %4 = vector.load %arg16[%c0_6, %c0_7] : memref<48x384xf32, #tpu.memory_space<vmem>>, vector<8x384xf32>
    %c0_8 = arith.constant 0 : index
    %c0_9 = arith.constant 0 : index
    %5 = vector.load %arg4[%c0_8, %c0_9] : memref<8x1xf32, #tpu.memory_space<vmem>>, vector<8x1xf32>
    %6 = vector.shape_cast %5 : vector<8x1xf32> to vector<8x1xf32>
    %7 = vector.broadcast %6 : vector<8x1xf32> to vector<8x384xf32>
    %c0_10 = arith.constant 0 : index
    %c0_11 = arith.constant 0 : index
    %c0_12 = arith.constant 0 : index
    %8 = vector.load %arg3[%c0_10, %c0_11, %c0_12] : memref<9x8x8xf32, #tpu.memory_space<vmem>>, vector<1x8x8xf32>
    %9 = vector.shape_cast %8 : vector<1x8x8xf32> to vector<8x8xf32>
    %cst = arith.constant dense<0.000000e+00> : vector<8x384xf32>
    %10 = tpu.matmul %9, %4, %cst {dimension_numbers = #tpu.dot_dimension_numbers<[1], [0], [0], [1], [0, 0, 1, 1], [], []>} : vector<8x8xf32>, vector<8x384xf32>, vector<8x384xf32> -> vector<8x384xf32>
    %c19_i32 = arith.constant 19 : i32
    %11 = tpu.dynamic_rotate %10 by %c19_i32 dim 1 : vector<8x384xf32>, i32 -> vector<8x384xf32>
    %12 = arith.addf %7, %11 : vector<8x384xf32>
    %c1 = arith.constant 1 : index
    %c0_13 = arith.constant 0 : index
    %c0_14 = arith.constant 0 : index
    %13 = vector.load %arg3[%c1, %c0_13, %c0_14] : memref<9x8x8xf32, #tpu.memory_space<vmem>>, vector<1x8x8xf32>
    %14 = vector.shape_cast %13 : vector<1x8x8xf32> to vector<8x8xf32>
    %cst_15 = arith.constant dense<0.000000e+00> : vector<8x384xf32>
    %15 = tpu.matmul %14, %4, %cst_15 {dimension_numbers = #tpu.dot_dimension_numbers<[1], [0], [0], [1], [0, 0, 1, 1], [], []>} : vector<8x8xf32>, vector<8x384xf32>, vector<8x384xf32> -> vector<8x384xf32>
    %c18_i32 = arith.constant 18 : i32
    %16 = tpu.dynamic_rotate %15 by %c18_i32 dim 1 : vector<8x384xf32>, i32 -> vector<8x384xf32>
    %17 = arith.addf %12, %16 : vector<8x384xf32>
    %c2 = arith.constant 2 : index
    %c0_16 = arith.constant 0 : index
    %c0_17 = arith.constant 0 : index
    %18 = vector.load %arg3[%c2, %c0_16, %c0_17] : memref<9x8x8xf32, #tpu.memory_space<vmem>>, vector<1x8x8xf32>
    %19 = vector.shape_cast %18 : vector<1x8x8xf32> to vector<8x8xf32>
    %cst_18 = arith.constant dense<0.000000e+00> : vector<8x384xf32>
    %20 = tpu.matmul %19, %4, %cst_18 {dimension_numbers = #tpu.dot_dimension_numbers<[1], [0], [0], [1], [0, 0, 1, 1], [], []>} : vector<8x8xf32>, vector<8x384xf32>, vector<8x384xf32> -> vector<8x384xf32>
    %c17_i32 = arith.constant 17 : i32
    %21 = tpu.dynamic_rotate %20 by %c17_i32 dim 1 : vector<8x384xf32>, i32 -> vector<8x384xf32>
    %22 = arith.addf %17, %21 : vector<8x384xf32>
    %c3 = arith.constant 3 : index
    %c0_19 = arith.constant 0 : index
    %c0_20 = arith.constant 0 : index
    %23 = vector.load %arg3[%c3, %c0_19, %c0_20] : memref<9x8x8xf32, #tpu.memory_space<vmem>>, vector<1x8x8xf32>
    %24 = vector.shape_cast %23 : vector<1x8x8xf32> to vector<8x8xf32>
    %cst_21 = arith.constant dense<0.000000e+00> : vector<8x384xf32>
    %25 = tpu.matmul %24, %4, %cst_21 {dimension_numbers = #tpu.dot_dimension_numbers<[1], [0], [0], [1], [0, 0, 1, 1], [], []>} : vector<8x8xf32>, vector<8x384xf32>, vector<8x384xf32> -> vector<8x384xf32>
    %c1_i32 = arith.constant 1 : i32
    %26 = tpu.dynamic_rotate %25 by %c1_i32 dim 1 : vector<8x384xf32>, i32 -> vector<8x384xf32>
    %27 = arith.addf %22, %26 : vector<8x384xf32>
    %c4 = arith.constant 4 : index
    %c0_22 = arith.constant 0 : index
    %c0_23 = arith.constant 0 : index
    %28 = vector.load %arg3[%c4, %c0_22, %c0_23] : memref<9x8x8xf32, #tpu.memory_space<vmem>>, vector<1x8x8xf32>
    %29 = vector.shape_cast %28 : vector<1x8x8xf32> to vector<8x8xf32>
    %cst_24 = arith.constant dense<0.000000e+00> : vector<8x384xf32>
    %30 = tpu.matmul %29, %4, %cst_24 {dimension_numbers = #tpu.dot_dimension_numbers<[1], [0], [0], [1], [0, 0, 1, 1], [], []>} : vector<8x8xf32>, vector<8x384xf32>, vector<8x384xf32> -> vector<8x384xf32>
    %31 = arith.addf %27, %30 : vector<8x384xf32>
    %c5 = arith.constant 5 : index
    %c0_25 = arith.constant 0 : index
    %c0_26 = arith.constant 0 : index
    %32 = vector.load %arg3[%c5, %c0_25, %c0_26] : memref<9x8x8xf32, #tpu.memory_space<vmem>>, vector<1x8x8xf32>
    %33 = vector.shape_cast %32 : vector<1x8x8xf32> to vector<8x8xf32>
    %cst_27 = arith.constant dense<0.000000e+00> : vector<8x384xf32>
    %34 = tpu.matmul %33, %4, %cst_27 {dimension_numbers = #tpu.dot_dimension_numbers<[1], [0], [0], [1], [0, 0, 1, 1], [], []>} : vector<8x8xf32>, vector<8x384xf32>, vector<8x384xf32> -> vector<8x384xf32>
    %c383_i32 = arith.constant 383 : i32
    %35 = tpu.dynamic_rotate %34 by %c383_i32 dim 1 : vector<8x384xf32>, i32 -> vector<8x384xf32>
    %36 = arith.addf %31, %35 : vector<8x384xf32>
    %c6 = arith.constant 6 : index
    %c0_28 = arith.constant 0 : index
    %c0_29 = arith.constant 0 : index
    %37 = vector.load %arg3[%c6, %c0_28, %c0_29] : memref<9x8x8xf32, #tpu.memory_space<vmem>>, vector<1x8x8xf32>
    %38 = vector.shape_cast %37 : vector<1x8x8xf32> to vector<8x8xf32>
    %cst_30 = arith.constant dense<0.000000e+00> : vector<8x384xf32>
    %39 = tpu.matmul %38, %4, %cst_30 {dimension_numbers = #tpu.dot_dimension_numbers<[1], [0], [0], [1], [0, 0, 1, 1], [], []>} : vector<8x8xf32>, vector<8x384xf32>, vector<8x384xf32> -> vector<8x384xf32>
    %c367_i32 = arith.constant 367 : i32
    %40 = tpu.dynamic_rotate %39 by %c367_i32 dim 1 : vector<8x384xf32>, i32 -> vector<8x384xf32>
    %41 = arith.addf %36, %40 : vector<8x384xf32>
    %c7 = arith.constant 7 : index
    %c0_31 = arith.constant 0 : index
    %c0_32 = arith.constant 0 : index
    %42 = vector.load %arg3[%c7, %c0_31, %c0_32] : memref<9x8x8xf32, #tpu.memory_space<vmem>>, vector<1x8x8xf32>
    %43 = vector.shape_cast %42 : vector<1x8x8xf32> to vector<8x8xf32>
    %cst_33 = arith.constant dense<0.000000e+00> : vector<8x384xf32>
    %44 = tpu.matmul %43, %4, %cst_33 {dimension_numbers = #tpu.dot_dimension_numbers<[1], [0], [0], [1], [0, 0, 1, 1], [], []>} : vector<8x8xf32>, vector<8x384xf32>, vector<8x384xf32> -> vector<8x384xf32>
    %c366_i32 = arith.constant 366 : i32
    %45 = tpu.dynamic_rotate %44 by %c366_i32 dim 1 : vector<8x384xf32>, i32 -> vector<8x384xf32>
    %46 = arith.addf %41, %45 : vector<8x384xf32>
    %c8 = arith.constant 8 : index
    %c0_34 = arith.constant 0 : index
    %c0_35 = arith.constant 0 : index
    %47 = vector.load %arg3[%c8, %c0_34, %c0_35] : memref<9x8x8xf32, #tpu.memory_space<vmem>>, vector<1x8x8xf32>
    %48 = vector.shape_cast %47 : vector<1x8x8xf32> to vector<8x8xf32>
    %cst_36 = arith.constant dense<0.000000e+00> : vector<8x384xf32>
    %49 = tpu.matmul %48, %4, %cst_36 {dimension_numbers = #tpu.dot_dimension_numbers<[1], [0], [0], [1], [0, 0, 1, 1], [], []>} : vector<8x8xf32>, vector<8x384xf32>, vector<8x384xf32> -> vector<8x384xf32>
    %c365_i32 = arith.constant 365 : i32
    %50 = tpu.dynamic_rotate %49 by %c365_i32 dim 1 : vector<8x384xf32>, i32 -> vector<8x384xf32>
    %51 = arith.addf %46, %50 : vector<8x384xf32>
    %cst_37 = arith.constant 0.000000e+00 : f32
    %52 = vector.broadcast %cst_37 : f32 to vector<8x384xf32>
    %53 = arith.cmpf ogt, %51, %52 : vector<8x384xf32>
    %cst_38 = arith.constant 1.000000e-01 : f32
    %54 = vector.broadcast %cst_38 : f32 to vector<8x384xf32>
    %55 = arith.mulf %54, %51 : vector<8x384xf32>
    %56 = arith.select %53, %51, %55 : vector<8x384xi1>, vector<8x384xf32>
    %57 = vector.broadcast %3 : vector<1x384xf32> to vector<8x384xf32>
    %58 = arith.mulf %56, %57 : vector<8x384xf32>
    %c8_39 = arith.constant 8 : index
    %c0_40 = arith.constant 0 : index
    %59 = vector.load %arg16[%c8_39, %c0_40] : memref<48x384xf32, #tpu.memory_space<vmem>>, vector<8x384xf32>
    tpu.vector_store %arg16[%c8_39, %c0_40], %58 {strides = array<i32>} : memref<48x384xf32, #tpu.memory_space<vmem>>, vector<8x384xf32>,
    %c0_41 = arith.constant 0 : index
    %c0_42 = arith.constant 0 : index
    %60 = vector.load %arg16[%c0_41, %c0_42] : memref<48x384xf32, #tpu.memory_space<vmem>>, vector<16x384xf32>
    %c0_43 = arith.constant 0 : index
    %c0_44 = arith.constant 0 : index
    %61 = vector.load %arg6[%c0_43, %c0_44] : memref<8x1xf32, #tpu.memory_space<vmem>>, vector<8x1xf32>
    %62 = vector.shape_cast %61 : vector<8x1xf32> to vector<8x1xf32>
    %63 = vector.broadcast %62 : vector<8x1xf32> to vector<8x384xf32>
    %c0_45 = arith.constant 0 : index
    %c0_46 = arith.constant 0 : index
    %c0_47 = arith.constant 0 : index
    %64 = vector.load %arg5[%c0_45, %c0_46, %c0_47] : memref<9x8x16xf32, #tpu.memory_space<vmem>>, vector<1x8x16xf32>
    %65 = vector.shape_cast %64 : vector<1x8x16xf32> to vector<8x16xf32>
    %cst_48 = arith.constant dense<0.000000e+00> : vector<8x384xf32>
    %66 = tpu.matmul %65, %60, %cst_48 {dimension_numbers = #tpu.dot_dimension_numbers<[1], [0], [0], [1], [0, 0, 1, 1], [], []>} : vector<8x16xf32>, vector<16x384xf32>, vector<8x384xf32> -> vector<8x384xf32>
    %c19_i32_49 = arith.constant 19 : i32
    %67 = tpu.dynamic_rotate %66 by %c19_i32_49 dim 1 : vector<8x384xf32>, i32 -> vector<8x384xf32>
    %68 = arith.addf %63, %67 : vector<8x384xf32>
    %c1_50 = arith.constant 1 : index
    %c0_51 = arith.constant 0 : index
    %c0_52 = arith.constant 0 : index
    %69 = vector.load %arg5[%c1_50, %c0_51, %c0_52] : memref<9x8x16xf32, #tpu.memory_space<vmem>>, vector<1x8x16xf32>
    %70 = vector.shape_cast %69 : vector<1x8x16xf32> to vector<8x16xf32>
    %cst_53 = arith.constant dense<0.000000e+00> : vector<8x384xf32>
    %71 = tpu.matmul %70, %60, %cst_53 {dimension_numbers = #tpu.dot_dimension_numbers<[1], [0], [0], [1], [0, 0, 1, 1], [], []>} : vector<8x16xf32>, vector<16x384xf32>, vector<8x384xf32> -> vector<8x384xf32>
    %c18_i32_54 = arith.constant 18 : i32
    %72 = tpu.dynamic_rotate %71 by %c18_i32_54 dim 1 : vector<8x384xf32>, i32 -> vector<8x384xf32>
    %73 = arith.addf %68, %72 : vector<8x384xf32>
    %c2_55 = arith.constant 2 : index
    %c0_56 = arith.constant 0 : index
    %c0_57 = arith.constant 0 : index
    %74 = vector.load %arg5[%c2_55, %c0_56, %c0_57] : memref<9x8x16xf32, #tpu.memory_space<vmem>>, vector<1x8x16xf32>
    %75 = vector.shape_cast %74 : vector<1x8x16xf32> to vector<8x16xf32>
    %cst_58 = arith.constant dense<0.000000e+00> : vector<8x384xf32>
    %76 = tpu.matmul %75, %60, %cst_58 {dimension_numbers = #tpu.dot_dimension_numbers<[1], [0], [0], [1], [0, 0, 1, 1], [], []>} : vector<8x16xf32>, vector<16x384xf32>, vector<8x384xf32> -> vector<8x384xf32>
    %c17_i32_59 = arith.constant 17 : i32
    %77 = tpu.dynamic_rotate %76 by %c17_i32_59 dim 1 : vector<8x384xf32>, i32 -> vector<8x384xf32>
    %78 = arith.addf %73, %77 : vector<8x384xf32>
    %c3_60 = arith.constant 3 : index
    %c0_61 = arith.constant 0 : index
    %c0_62 = arith.constant 0 : index
    %79 = vector.load %arg5[%c3_60, %c0_61, %c0_62] : memref<9x8x16xf32, #tpu.memory_space<vmem>>, vector<1x8x16xf32>
    %80 = vector.shape_cast %79 : vector<1x8x16xf32> to vector<8x16xf32>
    %cst_63 = arith.constant dense<0.000000e+00> : vector<8x384xf32>
    %81 = tpu.matmul %80, %60, %cst_63 {dimension_numbers = #tpu.dot_dimension_numbers<[1], [0], [0], [1], [0, 0, 1, 1], [], []>} : vector<8x16xf32>, vector<16x384xf32>, vector<8x384xf32> -> vector<8x384xf32>
    %c1_i32_64 = arith.constant 1 : i32
    %82 = tpu.dynamic_rotate %81 by %c1_i32_64 dim 1 : vector<8x384xf32>, i32 -> vector<8x384xf32>
    %83 = arith.addf %78, %82 : vector<8x384xf32>
    %c4_65 = arith.constant 4 : index
    %c0_66 = arith.constant 0 : index
    %c0_67 = arith.constant 0 : index
    %84 = vector.load %arg5[%c4_65, %c0_66, %c0_67] : memref<9x8x16xf32, #tpu.memory_space<vmem>>, vector<1x8x16xf32>
    %85 = vector.shape_cast %84 : vector<1x8x16xf32> to vector<8x16xf32>
    %cst_68 = arith.constant dense<0.000000e+00> : vector<8x384xf32>
    %86 = tpu.matmul %85, %60, %cst_68 {dimension_numbers = #tpu.dot_dimension_numbers<[1], [0], [0], [1], [0, 0, 1, 1], [], []>} : vector<8x16xf32>, vector<16x384xf32>, vector<8x384xf32> -> vector<8x384xf32>
    %87 = arith.addf %83, %86 : vector<8x384xf32>
    %c5_69 = arith.constant 5 : index
    %c0_70 = arith.constant 0 : index
    %c0_71 = arith.constant 0 : index
    %88 = vector.load %arg5[%c5_69, %c0_70, %c0_71] : memref<9x8x16xf32, #tpu.memory_space<vmem>>, vector<1x8x16xf32>
    %89 = vector.shape_cast %88 : vector<1x8x16xf32> to vector<8x16xf32>
    %cst_72 = arith.constant dense<0.000000e+00> : vector<8x384xf32>
    %90 = tpu.matmul %89, %60, %cst_72 {dimension_numbers = #tpu.dot_dimension_numbers<[1], [0], [0], [1], [0, 0, 1, 1], [], []>} : vector<8x16xf32>, vector<16x384xf32>, vector<8x384xf32> -> vector<8x384xf32>
    %c383_i32_73 = arith.constant 383 : i32
    %91 = tpu.dynamic_rotate %90 by %c383_i32_73 dim 1 : vector<8x384xf32>, i32 -> vector<8x384xf32>
    %92 = arith.addf %87, %91 : vector<8x384xf32>
    %c6_74 = arith.constant 6 : index
    %c0_75 = arith.constant 0 : index
    %c0_76 = arith.constant 0 : index
    %93 = vector.load %arg5[%c6_74, %c0_75, %c0_76] : memref<9x8x16xf32, #tpu.memory_space<vmem>>, vector<1x8x16xf32>
    %94 = vector.shape_cast %93 : vector<1x8x16xf32> to vector<8x16xf32>
    %cst_77 = arith.constant dense<0.000000e+00> : vector<8x384xf32>
    %95 = tpu.matmul %94, %60, %cst_77 {dimension_numbers = #tpu.dot_dimension_numbers<[1], [0], [0], [1], [0, 0, 1, 1], [], []>} : vector<8x16xf32>, vector<16x384xf32>, vector<8x384xf32> -> vector<8x384xf32>
    %c367_i32_78 = arith.constant 367 : i32
    %96 = tpu.dynamic_rotate %95 by %c367_i32_78 dim 1 : vector<8x384xf32>, i32 -> vector<8x384xf32>
    %97 = arith.addf %92, %96 : vector<8x384xf32>
    %c7_79 = arith.constant 7 : index
    %c0_80 = arith.constant 0 : index
    %c0_81 = arith.constant 0 : index
    %98 = vector.load %arg5[%c7_79, %c0_80, %c0_81] : memref<9x8x16xf32, #tpu.memory_space<vmem>>, vector<1x8x16xf32>
    %99 = vector.shape_cast %98 : vector<1x8x16xf32> to vector<8x16xf32>
    %cst_82 = arith.constant dense<0.000000e+00> : vector<8x384xf32>
    %100 = tpu.matmul %99, %60, %cst_82 {dimension_numbers = #tpu.dot_dimension_numbers<[1], [0], [0], [1], [0, 0, 1, 1], [], []>} : vector<8x16xf32>, vector<16x384xf32>, vector<8x384xf32> -> vector<8x384xf32>
    %c366_i32_83 = arith.constant 366 : i32
    %101 = tpu.dynamic_rotate %100 by %c366_i32_83 dim 1 : vector<8x384xf32>, i32 -> vector<8x384xf32>
    %102 = arith.addf %97, %101 : vector<8x384xf32>
    %c8_84 = arith.constant 8 : index
    %c0_85 = arith.constant 0 : index
    %c0_86 = arith.constant 0 : index
    %103 = vector.load %arg5[%c8_84, %c0_85, %c0_86] : memref<9x8x16xf32, #tpu.memory_space<vmem>>, vector<1x8x16xf32>
    %104 = vector.shape_cast %103 : vector<1x8x16xf32> to vector<8x16xf32>
    %cst_87 = arith.constant dense<0.000000e+00> : vector<8x384xf32>
    %105 = tpu.matmul %104, %60, %cst_87 {dimension_numbers = #tpu.dot_dimension_numbers<[1], [0], [0], [1], [0, 0, 1, 1], [], []>} : vector<8x16xf32>, vector<16x384xf32>, vector<8x384xf32> -> vector<8x384xf32>
    %c365_i32_88 = arith.constant 365 : i32
    %106 = tpu.dynamic_rotate %105 by %c365_i32_88 dim 1 : vector<8x384xf32>, i32 -> vector<8x384xf32>
    %107 = arith.addf %102, %106 : vector<8x384xf32>
    %cst_89 = arith.constant 0.000000e+00 : f32
    %108 = vector.broadcast %cst_89 : f32 to vector<8x384xf32>
    %109 = arith.cmpf ogt, %107, %108 : vector<8x384xf32>
    %cst_90 = arith.constant 1.000000e-01 : f32
    %110 = vector.broadcast %cst_90 : f32 to vector<8x384xf32>
    %111 = arith.mulf %110, %107 : vector<8x384xf32>
    %112 = arith.select %109, %107, %111 : vector<8x384xi1>, vector<8x384xf32>
    %113 = vector.broadcast %3 : vector<1x384xf32> to vector<8x384xf32>
    %114 = arith.mulf %112, %113 : vector<8x384xf32>
    %c16 = arith.constant 16 : index
    %c0_91 = arith.constant 0 : index
    %115 = vector.load %arg16[%c16, %c0_91] : memref<48x384xf32, #tpu.memory_space<vmem>>, vector<8x384xf32>
    tpu.vector_store %arg16[%c16, %c0_91], %114 {strides = array<i32>} : memref<48x384xf32, #tpu.memory_space<vmem>>, vector<8x384xf32>,
    %c0_92 = arith.constant 0 : index
    %c0_93 = arith.constant 0 : index
    %116 = vector.load %arg16[%c0_92, %c0_93] : memref<48x384xf32, #tpu.memory_space<vmem>>, vector<24x384xf32>
    %c0_94 = arith.constant 0 : index
    %c0_95 = arith.constant 0 : index
    %117 = vector.load %arg8[%c0_94, %c0_95] : memref<8x1xf32, #tpu.memory_space<vmem>>, vector<8x1xf32>
    %118 = vector.shape_cast %117 : vector<8x1xf32> to vector<8x1xf32>
    %119 = vector.broadcast %118 : vector<8x1xf32> to vector<8x384xf32>
    %c0_96 = arith.constant 0 : index
    %c0_97 = arith.constant 0 : index
    %c0_98 = arith.constant 0 : index
    %120 = vector.load %arg7[%c0_96, %c0_97, %c0_98] : memref<9x8x24xf32, #tpu.memory_space<vmem>>, vector<1x8x24xf32>
    %121 = vector.shape_cast %120 : vector<1x8x24xf32> to vector<8x24xf32>
    %cst_99 = arith.constant dense<0.000000e+00> : vector<8x384xf32>
    %122 = tpu.matmul %121, %116, %cst_99 {dimension_numbers = #tpu.dot_dimension_numbers<[1], [0], [0], [1], [0, 0, 1, 1], [], []>} : vector<8x24xf32>, vector<24x384xf32>, vector<8x384xf32> -> vector<8x384xf32>
    %c19_i32_100 = arith.constant 19 : i32
    %123 = tpu.dynamic_rotate %122 by %c19_i32_100 dim 1 : vector<8x384xf32>, i32 -> vector<8x384xf32>
    %124 = arith.addf %119, %123 : vector<8x384xf32>
    %c1_101 = arith.constant 1 : index
    %c0_102 = arith.constant 0 : index
    %c0_103 = arith.constant 0 : index
    %125 = vector.load %arg7[%c1_101, %c0_102, %c0_103] : memref<9x8x24xf32, #tpu.memory_space<vmem>>, vector<1x8x24xf32>
    %126 = vector.shape_cast %125 : vector<1x8x24xf32> to vector<8x24xf32>
    %cst_104 = arith.constant dense<0.000000e+00> : vector<8x384xf32>
    %127 = tpu.matmul %126, %116, %cst_104 {dimension_numbers = #tpu.dot_dimension_numbers<[1], [0], [0], [1], [0, 0, 1, 1], [], []>} : vector<8x24xf32>, vector<24x384xf32>, vector<8x384xf32> -> vector<8x384xf32>
    %c18_i32_105 = arith.constant 18 : i32
    %128 = tpu.dynamic_rotate %127 by %c18_i32_105 dim 1 : vector<8x384xf32>, i32 -> vector<8x384xf32>
    %129 = arith.addf %124, %128 : vector<8x384xf32>
    %c2_106 = arith.constant 2 : index
    %c0_107 = arith.constant 0 : index
    %c0_108 = arith.constant 0 : index
    %130 = vector.load %arg7[%c2_106, %c0_107, %c0_108] : memref<9x8x24xf32, #tpu.memory_space<vmem>>, vector<1x8x24xf32>
    %131 = vector.shape_cast %130 : vector<1x8x24xf32> to vector<8x24xf32>
    %cst_109 = arith.constant dense<0.000000e+00> : vector<8x384xf32>
    %132 = tpu.matmul %131, %116, %cst_109 {dimension_numbers = #tpu.dot_dimension_numbers<[1], [0], [0], [1], [0, 0, 1, 1], [], []>} : vector<8x24xf32>, vector<24x384xf32>, vector<8x384xf32> -> vector<8x384xf32>
    %c17_i32_110 = arith.constant 17 : i32
    %133 = tpu.dynamic_rotate %132 by %c17_i32_110 dim 1 : vector<8x384xf32>, i32 -> vector<8x384xf32>
    %134 = arith.addf %129, %133 : vector<8x384xf32>
    %c3_111 = arith.constant 3 : index
    %c0_112 = arith.constant 0 : index
    %c0_113 = arith.constant 0 : index
    %135 = vector.load %arg7[%c3_111, %c0_112, %c0_113] : memref<9x8x24xf32, #tpu.memory_space<vmem>>, vector<1x8x24xf32>
    %136 = vector.shape_cast %135 : vector<1x8x24xf32> to vector<8x24xf32>
    %cst_114 = arith.constant dense<0.000000e+00> : vector<8x384xf32>
    %137 = tpu.matmul %136, %116, %cst_114 {dimension_numbers = #tpu.dot_dimension_numbers<[1], [0], [0], [1], [0, 0, 1, 1], [], []>} : vector<8x24xf32>, vector<24x384xf32>, vector<8x384xf32> -> vector<8x384xf32>
    %c1_i32_115 = arith.constant 1 : i32
    %138 = tpu.dynamic_rotate %137 by %c1_i32_115 dim 1 : vector<8x384xf32>, i32 -> vector<8x384xf32>
    %139 = arith.addf %134, %138 : vector<8x384xf32>
    %c4_116 = arith.constant 4 : index
    %c0_117 = arith.constant 0 : index
    %c0_118 = arith.constant 0 : index
    %140 = vector.load %arg7[%c4_116, %c0_117, %c0_118] : memref<9x8x24xf32, #tpu.memory_space<vmem>>, vector<1x8x24xf32>
    %141 = vector.shape_cast %140 : vector<1x8x24xf32> to vector<8x24xf32>
    %cst_119 = arith.constant dense<0.000000e+00> : vector<8x384xf32>
    %142 = tpu.matmul %141, %116, %cst_119 {dimension_numbers = #tpu.dot_dimension_numbers<[1], [0], [0], [1], [0, 0, 1, 1], [], []>} : vector<8x24xf32>, vector<24x384xf32>, vector<8x384xf32> -> vector<8x384xf32>
    %143 = arith.addf %139, %142 : vector<8x384xf32>
    %c5_120 = arith.constant 5 : index
    %c0_121 = arith.constant 0 : index
    %c0_122 = arith.constant 0 : index
    %144 = vector.load %arg7[%c5_120, %c0_121, %c0_122] : memref<9x8x24xf32, #tpu.memory_space<vmem>>, vector<1x8x24xf32>
    %145 = vector.shape_cast %144 : vector<1x8x24xf32> to vector<8x24xf32>
    %cst_123 = arith.constant dense<0.000000e+00> : vector<8x384xf32>
    %146 = tpu.matmul %145, %116, %cst_123 {dimension_numbers = #tpu.dot_dimension_numbers<[1], [0], [0], [1], [0, 0, 1, 1], [], []>} : vector<8x24xf32>, vector<24x384xf32>, vector<8x384xf32> -> vector<8x384xf32>
    %c383_i32_124 = arith.constant 383 : i32
    %147 = tpu.dynamic_rotate %146 by %c383_i32_124 dim 1 : vector<8x384xf32>, i32 -> vector<8x384xf32>
    %148 = arith.addf %143, %147 : vector<8x384xf32>
    %c6_125 = arith.constant 6 : index
    %c0_126 = arith.constant 0 : index
    %c0_127 = arith.constant 0 : index
    %149 = vector.load %arg7[%c6_125, %c0_126, %c0_127] : memref<9x8x24xf32, #tpu.memory_space<vmem>>, vector<1x8x24xf32>
    %150 = vector.shape_cast %149 : vector<1x8x24xf32> to vector<8x24xf32>
    %cst_128 = arith.constant dense<0.000000e+00> : vector<8x384xf32>
    %151 = tpu.matmul %150, %116, %cst_128 {dimension_numbers = #tpu.dot_dimension_numbers<[1], [0], [0], [1], [0, 0, 1, 1], [], []>} : vector<8x24xf32>, vector<24x384xf32>, vector<8x384xf32> -> vector<8x384xf32>
    %c367_i32_129 = arith.constant 367 : i32
    %152 = tpu.dynamic_rotate %151 by %c367_i32_129 dim 1 : vector<8x384xf32>, i32 -> vector<8x384xf32>
    %153 = arith.addf %148, %152 : vector<8x384xf32>
    %c7_130 = arith.constant 7 : index
    %c0_131 = arith.constant 0 : index
    %c0_132 = arith.constant 0 : index
    %154 = vector.load %arg7[%c7_130, %c0_131, %c0_132] : memref<9x8x24xf32, #tpu.memory_space<vmem>>, vector<1x8x24xf32>
    %155 = vector.shape_cast %154 : vector<1x8x24xf32> to vector<8x24xf32>
    %cst_133 = arith.constant dense<0.000000e+00> : vector<8x384xf32>
    %156 = tpu.matmul %155, %116, %cst_133 {dimension_numbers = #tpu.dot_dimension_numbers<[1], [0], [0], [1], [0, 0, 1, 1], [], []>} : vector<8x24xf32>, vector<24x384xf32>, vector<8x384xf32> -> vector<8x384xf32>
    %c366_i32_134 = arith.constant 366 : i32
    %157 = tpu.dynamic_rotate %156 by %c366_i32_134 dim 1 : vector<8x384xf32>, i32 -> vector<8x384xf32>
    %158 = arith.addf %153, %157 : vector<8x384xf32>
    %c8_135 = arith.constant 8 : index
    %c0_136 = arith.constant 0 : index
    %c0_137 = arith.constant 0 : index
    %159 = vector.load %arg7[%c8_135, %c0_136, %c0_137] : memref<9x8x24xf32, #tpu.memory_space<vmem>>, vector<1x8x24xf32>
    %160 = vector.shape_cast %159 : vector<1x8x24xf32> to vector<8x24xf32>
    %cst_138 = arith.constant dense<0.000000e+00> : vector<8x384xf32>
    %161 = tpu.matmul %160, %116, %cst_138 {dimension_numbers = #tpu.dot_dimension_numbers<[1], [0], [0], [1], [0, 0, 1, 1], [], []>} : vector<8x24xf32>, vector<24x384xf32>, vector<8x384xf32> -> vector<8x384xf32>
    %c365_i32_139 = arith.constant 365 : i32
    %162 = tpu.dynamic_rotate %161 by %c365_i32_139 dim 1 : vector<8x384xf32>, i32 -> vector<8x384xf32>
    %163 = arith.addf %158, %162 : vector<8x384xf32>
    %cst_140 = arith.constant 0.000000e+00 : f32
    %164 = vector.broadcast %cst_140 : f32 to vector<8x384xf32>
    %165 = arith.cmpf ogt, %163, %164 : vector<8x384xf32>
    %cst_141 = arith.constant 1.000000e-01 : f32
    %166 = vector.broadcast %cst_141 : f32 to vector<8x384xf32>
    %167 = arith.mulf %166, %163 : vector<8x384xf32>
    %168 = arith.select %165, %163, %167 : vector<8x384xi1>, vector<8x384xf32>
    %169 = vector.broadcast %3 : vector<1x384xf32> to vector<8x384xf32>
    %170 = arith.mulf %168, %169 : vector<8x384xf32>
    %c24 = arith.constant 24 : index
    %c0_142 = arith.constant 0 : index
    %171 = vector.load %arg16[%c24, %c0_142] : memref<48x384xf32, #tpu.memory_space<vmem>>, vector<8x384xf32>
    tpu.vector_store %arg16[%c24, %c0_142], %170 {strides = array<i32>} : memref<48x384xf32, #tpu.memory_space<vmem>>, vector<8x384xf32>,
    %c0_143 = arith.constant 0 : index
    %c0_144 = arith.constant 0 : index
    %172 = vector.load %arg16[%c0_143, %c0_144] : memref<48x384xf32, #tpu.memory_space<vmem>>, vector<32x384xf32>
    %c0_145 = arith.constant 0 : index
    %c0_146 = arith.constant 0 : index
    %173 = vector.load %arg10[%c0_145, %c0_146] : memref<8x1xf32, #tpu.memory_space<vmem>>, vector<8x1xf32>
    %174 = vector.shape_cast %173 : vector<8x1xf32> to vector<8x1xf32>
    %175 = vector.broadcast %174 : vector<8x1xf32> to vector<8x384xf32>
    %c0_147 = arith.constant 0 : index
    %c0_148 = arith.constant 0 : index
    %c0_149 = arith.constant 0 : index
    %176 = vector.load %arg9[%c0_147, %c0_148, %c0_149] : memref<9x8x32xf32, #tpu.memory_space<vmem>>, vector<1x8x32xf32>
    %177 = vector.shape_cast %176 : vector<1x8x32xf32> to vector<8x32xf32>
    %cst_150 = arith.constant dense<0.000000e+00> : vector<8x384xf32>
    %178 = tpu.matmul %177, %172, %cst_150 {dimension_numbers = #tpu.dot_dimension_numbers<[1], [0], [0], [1], [0, 0, 1, 1], [], []>} : vector<8x32xf32>, vector<32x384xf32>, vector<8x384xf32> -> vector<8x384xf32>
    %c19_i32_151 = arith.constant 19 : i32
    %179 = tpu.dynamic_rotate %178 by %c19_i32_151 dim 1 : vector<8x384xf32>, i32 -> vector<8x384xf32>
    %180 = arith.addf %175, %179 : vector<8x384xf32>
    %c1_152 = arith.constant 1 : index
    %c0_153 = arith.constant 0 : index
    %c0_154 = arith.constant 0 : index
    %181 = vector.load %arg9[%c1_152, %c0_153, %c0_154] : memref<9x8x32xf32, #tpu.memory_space<vmem>>, vector<1x8x32xf32>
    %182 = vector.shape_cast %181 : vector<1x8x32xf32> to vector<8x32xf32>
    %cst_155 = arith.constant dense<0.000000e+00> : vector<8x384xf32>
    %183 = tpu.matmul %182, %172, %cst_155 {dimension_numbers = #tpu.dot_dimension_numbers<[1], [0], [0], [1], [0, 0, 1, 1], [], []>} : vector<8x32xf32>, vector<32x384xf32>, vector<8x384xf32> -> vector<8x384xf32>
    %c18_i32_156 = arith.constant 18 : i32
    %184 = tpu.dynamic_rotate %183 by %c18_i32_156 dim 1 : vector<8x384xf32>, i32 -> vector<8x384xf32>
    %185 = arith.addf %180, %184 : vector<8x384xf32>
    %c2_157 = arith.constant 2 : index
    %c0_158 = arith.constant 0 : index
    %c0_159 = arith.constant 0 : index
    %186 = vector.load %arg9[%c2_157, %c0_158, %c0_159] : memref<9x8x32xf32, #tpu.memory_space<vmem>>, vector<1x8x32xf32>
    %187 = vector.shape_cast %186 : vector<1x8x32xf32> to vector<8x32xf32>
    %cst_160 = arith.constant dense<0.000000e+00> : vector<8x384xf32>
    %188 = tpu.matmul %187, %172, %cst_160 {dimension_numbers = #tpu.dot_dimension_numbers<[1], [0], [0], [1], [0, 0, 1, 1], [], []>} : vector<8x32xf32>, vector<32x384xf32>, vector<8x384xf32> -> vector<8x384xf32>
    %c17_i32_161 = arith.constant 17 : i32
    %189 = tpu.dynamic_rotate %188 by %c17_i32_161 dim 1 : vector<8x384xf32>, i32 -> vector<8x384xf32>
    %190 = arith.addf %185, %189 : vector<8x384xf32>
    %c3_162 = arith.constant 3 : index
    %c0_163 = arith.constant 0 : index
    %c0_164 = arith.constant 0 : index
    %191 = vector.load %arg9[%c3_162, %c0_163, %c0_164] : memref<9x8x32xf32, #tpu.memory_space<vmem>>, vector<1x8x32xf32>
    %192 = vector.shape_cast %191 : vector<1x8x32xf32> to vector<8x32xf32>
    %cst_165 = arith.constant dense<0.000000e+00> : vector<8x384xf32>
    %193 = tpu.matmul %192, %172, %cst_165 {dimension_numbers = #tpu.dot_dimension_numbers<[1], [0], [0], [1], [0, 0, 1, 1], [], []>} : vector<8x32xf32>, vector<32x384xf32>, vector<8x384xf32> -> vector<8x384xf32>
    %c1_i32_166 = arith.constant 1 : i32
    %194 = tpu.dynamic_rotate %193 by %c1_i32_166 dim 1 : vector<8x384xf32>, i32 -> vector<8x384xf32>
    %195 = arith.addf %190, %194 : vector<8x384xf32>
    %c4_167 = arith.constant 4 : index
    %c0_168 = arith.constant 0 : index
    %c0_169 = arith.constant 0 : index
    %196 = vector.load %arg9[%c4_167, %c0_168, %c0_169] : memref<9x8x32xf32, #tpu.memory_space<vmem>>, vector<1x8x32xf32>
    %197 = vector.shape_cast %196 : vector<1x8x32xf32> to vector<8x32xf32>
    %cst_170 = arith.constant dense<0.000000e+00> : vector<8x384xf32>
    %198 = tpu.matmul %197, %172, %cst_170 {dimension_numbers = #tpu.dot_dimension_numbers<[1], [0], [0], [1], [0, 0, 1, 1], [], []>} : vector<8x32xf32>, vector<32x384xf32>, vector<8x384xf32> -> vector<8x384xf32>
    %199 = arith.addf %195, %198 : vector<8x384xf32>
    %c5_171 = arith.constant 5 : index
    %c0_172 = arith.constant 0 : index
    %c0_173 = arith.constant 0 : index
    %200 = vector.load %arg9[%c5_171, %c0_172, %c0_173] : memref<9x8x32xf32, #tpu.memory_space<vmem>>, vector<1x8x32xf32>
    %201 = vector.shape_cast %200 : vector<1x8x32xf32> to vector<8x32xf32>
    %cst_174 = arith.constant dense<0.000000e+00> : vector<8x384xf32>
    %202 = tpu.matmul %201, %172, %cst_174 {dimension_numbers = #tpu.dot_dimension_numbers<[1], [0], [0], [1], [0, 0, 1, 1], [], []>} : vector<8x32xf32>, vector<32x384xf32>, vector<8x384xf32> -> vector<8x384xf32>
    %c383_i32_175 = arith.constant 383 : i32
    %203 = tpu.dynamic_rotate %202 by %c383_i32_175 dim 1 : vector<8x384xf32>, i32 -> vector<8x384xf32>
    %204 = arith.addf %199, %203 : vector<8x384xf32>
    %c6_176 = arith.constant 6 : index
    %c0_177 = arith.constant 0 : index
    %c0_178 = arith.constant 0 : index
    %205 = vector.load %arg9[%c6_176, %c0_177, %c0_178] : memref<9x8x32xf32, #tpu.memory_space<vmem>>, vector<1x8x32xf32>
    %206 = vector.shape_cast %205 : vector<1x8x32xf32> to vector<8x32xf32>
    %cst_179 = arith.constant dense<0.000000e+00> : vector<8x384xf32>
    %207 = tpu.matmul %206, %172, %cst_179 {dimension_numbers = #tpu.dot_dimension_numbers<[1], [0], [0], [1], [0, 0, 1, 1], [], []>} : vector<8x32xf32>, vector<32x384xf32>, vector<8x384xf32> -> vector<8x384xf32>
    %c367_i32_180 = arith.constant 367 : i32
    %208 = tpu.dynamic_rotate %207 by %c367_i32_180 dim 1 : vector<8x384xf32>, i32 -> vector<8x384xf32>
    %209 = arith.addf %204, %208 : vector<8x384xf32>
    %c7_181 = arith.constant 7 : index
    %c0_182 = arith.constant 0 : index
    %c0_183 = arith.constant 0 : index
    %210 = vector.load %arg9[%c7_181, %c0_182, %c0_183] : memref<9x8x32xf32, #tpu.memory_space<vmem>>, vector<1x8x32xf32>
    %211 = vector.shape_cast %210 : vector<1x8x32xf32> to vector<8x32xf32>
    %cst_184 = arith.constant dense<0.000000e+00> : vector<8x384xf32>
    %212 = tpu.matmul %211, %172, %cst_184 {dimension_numbers = #tpu.dot_dimension_numbers<[1], [0], [0], [1], [0, 0, 1, 1], [], []>} : vector<8x32xf32>, vector<32x384xf32>, vector<8x384xf32> -> vector<8x384xf32>
    %c366_i32_185 = arith.constant 366 : i32
    %213 = tpu.dynamic_rotate %212 by %c366_i32_185 dim 1 : vector<8x384xf32>, i32 -> vector<8x384xf32>
    %214 = arith.addf %209, %213 : vector<8x384xf32>
    %c8_186 = arith.constant 8 : index
    %c0_187 = arith.constant 0 : index
    %c0_188 = arith.constant 0 : index
    %215 = vector.load %arg9[%c8_186, %c0_187, %c0_188] : memref<9x8x32xf32, #tpu.memory_space<vmem>>, vector<1x8x32xf32>
    %216 = vector.shape_cast %215 : vector<1x8x32xf32> to vector<8x32xf32>
    %cst_189 = arith.constant dense<0.000000e+00> : vector<8x384xf32>
    %217 = tpu.matmul %216, %172, %cst_189 {dimension_numbers = #tpu.dot_dimension_numbers<[1], [0], [0], [1], [0, 0, 1, 1], [], []>} : vector<8x32xf32>, vector<32x384xf32>, vector<8x384xf32> -> vector<8x384xf32>
    %c365_i32_190 = arith.constant 365 : i32
    %218 = tpu.dynamic_rotate %217 by %c365_i32_190 dim 1 : vector<8x384xf32>, i32 -> vector<8x384xf32>
    %219 = arith.addf %214, %218 : vector<8x384xf32>
    %cst_191 = arith.constant 0.000000e+00 : f32
    %220 = vector.broadcast %cst_191 : f32 to vector<8x384xf32>
    %221 = arith.cmpf ogt, %219, %220 : vector<8x384xf32>
    %cst_192 = arith.constant 1.000000e-01 : f32
    %222 = vector.broadcast %cst_192 : f32 to vector<8x384xf32>
    %223 = arith.mulf %222, %219 : vector<8x384xf32>
    %224 = arith.select %221, %219, %223 : vector<8x384xi1>, vector<8x384xf32>
    %225 = vector.broadcast %3 : vector<1x384xf32> to vector<8x384xf32>
    %226 = arith.mulf %224, %225 : vector<8x384xf32>
    %c32 = arith.constant 32 : index
    %c0_193 = arith.constant 0 : index
    %227 = vector.load %arg16[%c32, %c0_193] : memref<48x384xf32, #tpu.memory_space<vmem>>, vector<8x384xf32>
    tpu.vector_store %arg16[%c32, %c0_193], %226 {strides = array<i32>} : memref<48x384xf32, #tpu.memory_space<vmem>>, vector<8x384xf32>,
    %c0_194 = arith.constant 0 : index
    %c0_195 = arith.constant 0 : index
    %228 = vector.load %arg16[%c0_194, %c0_195] : memref<48x384xf32, #tpu.memory_space<vmem>>, vector<40x384xf32>
    %c0_196 = arith.constant 0 : index
    %c0_197 = arith.constant 0 : index
    %229 = vector.load %arg12[%c0_196, %c0_197] : memref<8x1xf32, #tpu.memory_space<vmem>>, vector<8x1xf32>
    %230 = vector.shape_cast %229 : vector<8x1xf32> to vector<8x1xf32>
    %231 = vector.broadcast %230 : vector<8x1xf32> to vector<8x384xf32>
    %c0_198 = arith.constant 0 : index
    %c0_199 = arith.constant 0 : index
    %c0_200 = arith.constant 0 : index
    %232 = vector.load %arg11[%c0_198, %c0_199, %c0_200] : memref<9x8x40xf32, #tpu.memory_space<vmem>>, vector<1x8x40xf32>
    %233 = vector.shape_cast %232 : vector<1x8x40xf32> to vector<8x40xf32>
    %cst_201 = arith.constant dense<0.000000e+00> : vector<8x384xf32>
    %234 = tpu.matmul %233, %228, %cst_201 {dimension_numbers = #tpu.dot_dimension_numbers<[1], [0], [0], [1], [0, 0, 1, 1], [], []>} : vector<8x40xf32>, vector<40x384xf32>, vector<8x384xf32> -> vector<8x384xf32>
    %c19_i32_202 = arith.constant 19 : i32
    %235 = tpu.dynamic_rotate %234 by %c19_i32_202 dim 1 : vector<8x384xf32>, i32 -> vector<8x384xf32>
    %236 = arith.addf %231, %235 : vector<8x384xf32>
    %c1_203 = arith.constant 1 : index
    %c0_204 = arith.constant 0 : index
    %c0_205 = arith.constant 0 : index
    %237 = vector.load %arg11[%c1_203, %c0_204, %c0_205] : memref<9x8x40xf32, #tpu.memory_space<vmem>>, vector<1x8x40xf32>
    %238 = vector.shape_cast %237 : vector<1x8x40xf32> to vector<8x40xf32>
    %cst_206 = arith.constant dense<0.000000e+00> : vector<8x384xf32>
    %239 = tpu.matmul %238, %228, %cst_206 {dimension_numbers = #tpu.dot_dimension_numbers<[1], [0], [0], [1], [0, 0, 1, 1], [], []>} : vector<8x40xf32>, vector<40x384xf32>, vector<8x384xf32> -> vector<8x384xf32>
    %c18_i32_207 = arith.constant 18 : i32
    %240 = tpu.dynamic_rotate %239 by %c18_i32_207 dim 1 : vector<8x384xf32>, i32 -> vector<8x384xf32>
    %241 = arith.addf %236, %240 : vector<8x384xf32>
    %c2_208 = arith.constant 2 : index
    %c0_209 = arith.constant 0 : index
    %c0_210 = arith.constant 0 : index
    %242 = vector.load %arg11[%c2_208, %c0_209, %c0_210] : memref<9x8x40xf32, #tpu.memory_space<vmem>>, vector<1x8x40xf32>
    %243 = vector.shape_cast %242 : vector<1x8x40xf32> to vector<8x40xf32>
    %cst_211 = arith.constant dense<0.000000e+00> : vector<8x384xf32>
    %244 = tpu.matmul %243, %228, %cst_211 {dimension_numbers = #tpu.dot_dimension_numbers<[1], [0], [0], [1], [0, 0, 1, 1], [], []>} : vector<8x40xf32>, vector<40x384xf32>, vector<8x384xf32> -> vector<8x384xf32>
    %c17_i32_212 = arith.constant 17 : i32
    %245 = tpu.dynamic_rotate %244 by %c17_i32_212 dim 1 : vector<8x384xf32>, i32 -> vector<8x384xf32>
    %246 = arith.addf %241, %245 : vector<8x384xf32>
    %c3_213 = arith.constant 3 : index
    %c0_214 = arith.constant 0 : index
    %c0_215 = arith.constant 0 : index
    %247 = vector.load %arg11[%c3_213, %c0_214, %c0_215] : memref<9x8x40xf32, #tpu.memory_space<vmem>>, vector<1x8x40xf32>
    %248 = vector.shape_cast %247 : vector<1x8x40xf32> to vector<8x40xf32>
    %cst_216 = arith.constant dense<0.000000e+00> : vector<8x384xf32>
    %249 = tpu.matmul %248, %228, %cst_216 {dimension_numbers = #tpu.dot_dimension_numbers<[1], [0], [0], [1], [0, 0, 1, 1], [], []>} : vector<8x40xf32>, vector<40x384xf32>, vector<8x384xf32> -> vector<8x384xf32>
    %c1_i32_217 = arith.constant 1 : i32
    %250 = tpu.dynamic_rotate %249 by %c1_i32_217 dim 1 : vector<8x384xf32>, i32 -> vector<8x384xf32>
    %251 = arith.addf %246, %250 : vector<8x384xf32>
    %c4_218 = arith.constant 4 : index
    %c0_219 = arith.constant 0 : index
    %c0_220 = arith.constant 0 : index
    %252 = vector.load %arg11[%c4_218, %c0_219, %c0_220] : memref<9x8x40xf32, #tpu.memory_space<vmem>>, vector<1x8x40xf32>
    %253 = vector.shape_cast %252 : vector<1x8x40xf32> to vector<8x40xf32>
    %cst_221 = arith.constant dense<0.000000e+00> : vector<8x384xf32>
    %254 = tpu.matmul %253, %228, %cst_221 {dimension_numbers = #tpu.dot_dimension_numbers<[1], [0], [0], [1], [0, 0, 1, 1], [], []>} : vector<8x40xf32>, vector<40x384xf32>, vector<8x384xf32> -> vector<8x384xf32>
    %255 = arith.addf %251, %254 : vector<8x384xf32>
    %c5_222 = arith.constant 5 : index
    %c0_223 = arith.constant 0 : index
    %c0_224 = arith.constant 0 : index
    %256 = vector.load %arg11[%c5_222, %c0_223, %c0_224] : memref<9x8x40xf32, #tpu.memory_space<vmem>>, vector<1x8x40xf32>
    %257 = vector.shape_cast %256 : vector<1x8x40xf32> to vector<8x40xf32>
    %cst_225 = arith.constant dense<0.000000e+00> : vector<8x384xf32>
    %258 = tpu.matmul %257, %228, %cst_225 {dimension_numbers = #tpu.dot_dimension_numbers<[1], [0], [0], [1], [0, 0, 1, 1], [], []>} : vector<8x40xf32>, vector<40x384xf32>, vector<8x384xf32> -> vector<8x384xf32>
    %c383_i32_226 = arith.constant 383 : i32
    %259 = tpu.dynamic_rotate %258 by %c383_i32_226 dim 1 : vector<8x384xf32>, i32 -> vector<8x384xf32>
    %260 = arith.addf %255, %259 : vector<8x384xf32>
    %c6_227 = arith.constant 6 : index
    %c0_228 = arith.constant 0 : index
    %c0_229 = arith.constant 0 : index
    %261 = vector.load %arg11[%c6_227, %c0_228, %c0_229] : memref<9x8x40xf32, #tpu.memory_space<vmem>>, vector<1x8x40xf32>
    %262 = vector.shape_cast %261 : vector<1x8x40xf32> to vector<8x40xf32>
    %cst_230 = arith.constant dense<0.000000e+00> : vector<8x384xf32>
    %263 = tpu.matmul %262, %228, %cst_230 {dimension_numbers = #tpu.dot_dimension_numbers<[1], [0], [0], [1], [0, 0, 1, 1], [], []>} : vector<8x40xf32>, vector<40x384xf32>, vector<8x384xf32> -> vector<8x384xf32>
    %c367_i32_231 = arith.constant 367 : i32
    %264 = tpu.dynamic_rotate %263 by %c367_i32_231 dim 1 : vector<8x384xf32>, i32 -> vector<8x384xf32>
    %265 = arith.addf %260, %264 : vector<8x384xf32>
    %c7_232 = arith.constant 7 : index
    %c0_233 = arith.constant 0 : index
    %c0_234 = arith.constant 0 : index
    %266 = vector.load %arg11[%c7_232, %c0_233, %c0_234] : memref<9x8x40xf32, #tpu.memory_space<vmem>>, vector<1x8x40xf32>
    %267 = vector.shape_cast %266 : vector<1x8x40xf32> to vector<8x40xf32>
    %cst_235 = arith.constant dense<0.000000e+00> : vector<8x384xf32>
    %268 = tpu.matmul %267, %228, %cst_235 {dimension_numbers = #tpu.dot_dimension_numbers<[1], [0], [0], [1], [0, 0, 1, 1], [], []>} : vector<8x40xf32>, vector<40x384xf32>, vector<8x384xf32> -> vector<8x384xf32>
    %c366_i32_236 = arith.constant 366 : i32
    %269 = tpu.dynamic_rotate %268 by %c366_i32_236 dim 1 : vector<8x384xf32>, i32 -> vector<8x384xf32>
    %270 = arith.addf %265, %269 : vector<8x384xf32>
    %c8_237 = arith.constant 8 : index
    %c0_238 = arith.constant 0 : index
    %c0_239 = arith.constant 0 : index
    %271 = vector.load %arg11[%c8_237, %c0_238, %c0_239] : memref<9x8x40xf32, #tpu.memory_space<vmem>>, vector<1x8x40xf32>
    %272 = vector.shape_cast %271 : vector<1x8x40xf32> to vector<8x40xf32>
    %cst_240 = arith.constant dense<0.000000e+00> : vector<8x384xf32>
    %273 = tpu.matmul %272, %228, %cst_240 {dimension_numbers = #tpu.dot_dimension_numbers<[1], [0], [0], [1], [0, 0, 1, 1], [], []>} : vector<8x40xf32>, vector<40x384xf32>, vector<8x384xf32> -> vector<8x384xf32>
    %c365_i32_241 = arith.constant 365 : i32
    %274 = tpu.dynamic_rotate %273 by %c365_i32_241 dim 1 : vector<8x384xf32>, i32 -> vector<8x384xf32>
    %275 = arith.addf %270, %274 : vector<8x384xf32>
    %cst_242 = arith.constant 0.000000e+00 : f32
    %276 = vector.broadcast %cst_242 : f32 to vector<8x384xf32>
    %277 = arith.cmpf ogt, %275, %276 : vector<8x384xf32>
    %cst_243 = arith.constant 1.000000e-01 : f32
    %278 = vector.broadcast %cst_243 : f32 to vector<8x384xf32>
    %279 = arith.mulf %278, %275 : vector<8x384xf32>
    %280 = arith.select %277, %275, %279 : vector<8x384xi1>, vector<8x384xf32>
    %281 = vector.broadcast %3 : vector<1x384xf32> to vector<8x384xf32>
    %282 = arith.mulf %280, %281 : vector<8x384xf32>
    %c40 = arith.constant 40 : index
    %c0_244 = arith.constant 0 : index
    %283 = vector.load %arg16[%c40, %c0_244] : memref<48x384xf32, #tpu.memory_space<vmem>>, vector<8x384xf32>
    tpu.vector_store %arg16[%c40, %c0_244], %282 {strides = array<i32>} : memref<48x384xf32, #tpu.memory_space<vmem>>, vector<8x384xf32>,
    %c0_245 = arith.constant 0 : index
    %c0_246 = arith.constant 0 : index
    %284 = vector.load %arg16[%c0_245, %c0_246] : memref<48x384xf32, #tpu.memory_space<vmem>>, vector<48x384xf32>
    %c0_247 = arith.constant 0 : index
    %c0_248 = arith.constant 0 : index
    %285 = vector.load %arg14[%c0_247, %c0_248] : memref<8x1xf32, #tpu.memory_space<vmem>>, vector<8x1xf32>
    %286 = vector.shape_cast %285 : vector<8x1xf32> to vector<8x1xf32>
    %287 = vector.broadcast %286 : vector<8x1xf32> to vector<8x384xf32>
    %c0_249 = arith.constant 0 : index
    %c0_250 = arith.constant 0 : index
    %c0_251 = arith.constant 0 : index
    %288 = vector.load %arg13[%c0_249, %c0_250, %c0_251] : memref<9x8x48xf32, #tpu.memory_space<vmem>>, vector<1x8x48xf32>
    %289 = vector.shape_cast %288 : vector<1x8x48xf32> to vector<8x48xf32>
    %cst_252 = arith.constant dense<0.000000e+00> : vector<8x384xf32>
    %290 = tpu.matmul %289, %284, %cst_252 {dimension_numbers = #tpu.dot_dimension_numbers<[1], [0], [0], [1], [0, 0, 1, 1], [], []>} : vector<8x48xf32>, vector<48x384xf32>, vector<8x384xf32> -> vector<8x384xf32>
    %c19_i32_253 = arith.constant 19 : i32
    %291 = tpu.dynamic_rotate %290 by %c19_i32_253 dim 1 : vector<8x384xf32>, i32 -> vector<8x384xf32>
    %292 = arith.addf %287, %291 : vector<8x384xf32>
    %c1_254 = arith.constant 1 : index
    %c0_255 = arith.constant 0 : index
    %c0_256 = arith.constant 0 : index
    %293 = vector.load %arg13[%c1_254, %c0_255, %c0_256] : memref<9x8x48xf32, #tpu.memory_space<vmem>>, vector<1x8x48xf32>
    %294 = vector.shape_cast %293 : vector<1x8x48xf32> to vector<8x48xf32>
    %cst_257 = arith.constant dense<0.000000e+00> : vector<8x384xf32>
    %295 = tpu.matmul %294, %284, %cst_257 {dimension_numbers = #tpu.dot_dimension_numbers<[1], [0], [0], [1], [0, 0, 1, 1], [], []>} : vector<8x48xf32>, vector<48x384xf32>, vector<8x384xf32> -> vector<8x384xf32>
    %c18_i32_258 = arith.constant 18 : i32
    %296 = tpu.dynamic_rotate %295 by %c18_i32_258 dim 1 : vector<8x384xf32>, i32 -> vector<8x384xf32>
    %297 = arith.addf %292, %296 : vector<8x384xf32>
    %c2_259 = arith.constant 2 : index
    %c0_260 = arith.constant 0 : index
    %c0_261 = arith.constant 0 : index
    %298 = vector.load %arg13[%c2_259, %c0_260, %c0_261] : memref<9x8x48xf32, #tpu.memory_space<vmem>>, vector<1x8x48xf32>
    %299 = vector.shape_cast %298 : vector<1x8x48xf32> to vector<8x48xf32>
    %cst_262 = arith.constant dense<0.000000e+00> : vector<8x384xf32>
    %300 = tpu.matmul %299, %284, %cst_262 {dimension_numbers = #tpu.dot_dimension_numbers<[1], [0], [0], [1], [0, 0, 1, 1], [], []>} : vector<8x48xf32>, vector<48x384xf32>, vector<8x384xf32> -> vector<8x384xf32>
    %c17_i32_263 = arith.constant 17 : i32
    %301 = tpu.dynamic_rotate %300 by %c17_i32_263 dim 1 : vector<8x384xf32>, i32 -> vector<8x384xf32>
    %302 = arith.addf %297, %301 : vector<8x384xf32>
    %c3_264 = arith.constant 3 : index
    %c0_265 = arith.constant 0 : index
    %c0_266 = arith.constant 0 : index
    %303 = vector.load %arg13[%c3_264, %c0_265, %c0_266] : memref<9x8x48xf32, #tpu.memory_space<vmem>>, vector<1x8x48xf32>
    %304 = vector.shape_cast %303 : vector<1x8x48xf32> to vector<8x48xf32>
    %cst_267 = arith.constant dense<0.000000e+00> : vector<8x384xf32>
    %305 = tpu.matmul %304, %284, %cst_267 {dimension_numbers = #tpu.dot_dimension_numbers<[1], [0], [0], [1], [0, 0, 1, 1], [], []>} : vector<8x48xf32>, vector<48x384xf32>, vector<8x384xf32> -> vector<8x384xf32>
    %c1_i32_268 = arith.constant 1 : i32
    %306 = tpu.dynamic_rotate %305 by %c1_i32_268 dim 1 : vector<8x384xf32>, i32 -> vector<8x384xf32>
    %307 = arith.addf %302, %306 : vector<8x384xf32>
    %c4_269 = arith.constant 4 : index
    %c0_270 = arith.constant 0 : index
    %c0_271 = arith.constant 0 : index
    %308 = vector.load %arg13[%c4_269, %c0_270, %c0_271] : memref<9x8x48xf32, #tpu.memory_space<vmem>>, vector<1x8x48xf32>
    %309 = vector.shape_cast %308 : vector<1x8x48xf32> to vector<8x48xf32>
    %cst_272 = arith.constant dense<0.000000e+00> : vector<8x384xf32>
    %310 = tpu.matmul %309, %284, %cst_272 {dimension_numbers = #tpu.dot_dimension_numbers<[1], [0], [0], [1], [0, 0, 1, 1], [], []>} : vector<8x48xf32>, vector<48x384xf32>, vector<8x384xf32> -> vector<8x384xf32>
    %311 = arith.addf %307, %310 : vector<8x384xf32>
    %c5_273 = arith.constant 5 : index
    %c0_274 = arith.constant 0 : index
    %c0_275 = arith.constant 0 : index
    %312 = vector.load %arg13[%c5_273, %c0_274, %c0_275] : memref<9x8x48xf32, #tpu.memory_space<vmem>>, vector<1x8x48xf32>
    %313 = vector.shape_cast %312 : vector<1x8x48xf32> to vector<8x48xf32>
    %cst_276 = arith.constant dense<0.000000e+00> : vector<8x384xf32>
    %314 = tpu.matmul %313, %284, %cst_276 {dimension_numbers = #tpu.dot_dimension_numbers<[1], [0], [0], [1], [0, 0, 1, 1], [], []>} : vector<8x48xf32>, vector<48x384xf32>, vector<8x384xf32> -> vector<8x384xf32>
    %c383_i32_277 = arith.constant 383 : i32
    %315 = tpu.dynamic_rotate %314 by %c383_i32_277 dim 1 : vector<8x384xf32>, i32 -> vector<8x384xf32>
    %316 = arith.addf %311, %315 : vector<8x384xf32>
    %c6_278 = arith.constant 6 : index
    %c0_279 = arith.constant 0 : index
    %c0_280 = arith.constant 0 : index
    %317 = vector.load %arg13[%c6_278, %c0_279, %c0_280] : memref<9x8x48xf32, #tpu.memory_space<vmem>>, vector<1x8x48xf32>
    %318 = vector.shape_cast %317 : vector<1x8x48xf32> to vector<8x48xf32>
    %cst_281 = arith.constant dense<0.000000e+00> : vector<8x384xf32>
    %319 = tpu.matmul %318, %284, %cst_281 {dimension_numbers = #tpu.dot_dimension_numbers<[1], [0], [0], [1], [0, 0, 1, 1], [], []>} : vector<8x48xf32>, vector<48x384xf32>, vector<8x384xf32> -> vector<8x384xf32>
    %c367_i32_282 = arith.constant 367 : i32
    %320 = tpu.dynamic_rotate %319 by %c367_i32_282 dim 1 : vector<8x384xf32>, i32 -> vector<8x384xf32>
    %321 = arith.addf %316, %320 : vector<8x384xf32>
    %c7_283 = arith.constant 7 : index
    %c0_284 = arith.constant 0 : index
    %c0_285 = arith.constant 0 : index
    %322 = vector.load %arg13[%c7_283, %c0_284, %c0_285] : memref<9x8x48xf32, #tpu.memory_space<vmem>>, vector<1x8x48xf32>
    %323 = vector.shape_cast %322 : vector<1x8x48xf32> to vector<8x48xf32>
    %cst_286 = arith.constant dense<0.000000e+00> : vector<8x384xf32>
    %324 = tpu.matmul %323, %284, %cst_286 {dimension_numbers = #tpu.dot_dimension_numbers<[1], [0], [0], [1], [0, 0, 1, 1], [], []>} : vector<8x48xf32>, vector<48x384xf32>, vector<8x384xf32> -> vector<8x384xf32>
    %c366_i32_287 = arith.constant 366 : i32
    %325 = tpu.dynamic_rotate %324 by %c366_i32_287 dim 1 : vector<8x384xf32>, i32 -> vector<8x384xf32>
    %326 = arith.addf %321, %325 : vector<8x384xf32>
    %c8_288 = arith.constant 8 : index
    %c0_289 = arith.constant 0 : index
    %c0_290 = arith.constant 0 : index
    %327 = vector.load %arg13[%c8_288, %c0_289, %c0_290] : memref<9x8x48xf32, #tpu.memory_space<vmem>>, vector<1x8x48xf32>
    %328 = vector.shape_cast %327 : vector<1x8x48xf32> to vector<8x48xf32>
    %cst_291 = arith.constant dense<0.000000e+00> : vector<8x384xf32>
    %329 = tpu.matmul %328, %284, %cst_291 {dimension_numbers = #tpu.dot_dimension_numbers<[1], [0], [0], [1], [0, 0, 1, 1], [], []>} : vector<8x48xf32>, vector<48x384xf32>, vector<8x384xf32> -> vector<8x384xf32>
    %c365_i32_292 = arith.constant 365 : i32
    %330 = tpu.dynamic_rotate %329 by %c365_i32_292 dim 1 : vector<8x384xf32>, i32 -> vector<8x384xf32>
    %331 = arith.addf %326, %330 : vector<8x384xf32>
    %c0_293 = arith.constant 0 : index
    %c0_294 = arith.constant 0 : index
    %c0_295 = arith.constant 0 : index
    %332 = vector.load %arg15[%c0_293, %c0_294, %c0_295] : memref<1x8x384xf32, #tpu.memory_space<vmem>>, vector<1x8x384xf32>
    %333 = vector.shape_cast %332 : vector<1x8x384xf32> to vector<8x384xf32>
    %334 = vector.shape_cast %331 : vector<8x384xf32> to vector<1x8x384xf32>
    tpu.vector_store %arg15[%c0_293, %c0_294, %c0_295], %334 {strides = array<i32>} : memref<1x8x384xf32, #tpu.memory_space<vmem>>, vector<1x8x384xf32>,
    return
  }
  func.func @transform_0(%arg0: i32) -> (i32, i32, i32) {
    %c0_i32 = arith.constant 0 : i32
    %c0_i32_0 = arith.constant 0 : i32
    %c0_i32_1 = arith.constant 0 : i32
    return %arg0, %c0_i32, %c0_i32_0 : i32, i32, i32
  }
  func.func @transform_1(%arg0: i32) -> (i32, i32) {
    %c0_i32 = arith.constant 0 : i32
    %c0_i32_0 = arith.constant 0 : i32
    %c0_i32_1 = arith.constant 0 : i32
    return %c0_i32, %c0_i32_0 : i32, i32
  }
  func.func @transform_2(%arg0: i32) -> (i32, i32, i32) {
    %c0_i32 = arith.constant 0 : i32
    %c0_i32_0 = arith.constant 0 : i32
    %c0_i32_1 = arith.constant 0 : i32
    %c0_i32_2 = arith.constant 0 : i32
    return %c0_i32, %c0_i32_0, %c0_i32_1 : i32, i32, i32
  }
  func.func @transform_3(%arg0: i32) -> (i32, i32) {
    %c0_i32 = arith.constant 0 : i32
    %c0_i32_0 = arith.constant 0 : i32
    %c0_i32_1 = arith.constant 0 : i32
    return %c0_i32, %c0_i32_0 : i32, i32
  }
  func.func @transform_4(%arg0: i32) -> (i32, i32, i32) {
    %c0_i32 = arith.constant 0 : i32
    %c0_i32_0 = arith.constant 0 : i32
    %c0_i32_1 = arith.constant 0 : i32
    %c0_i32_2 = arith.constant 0 : i32
    return %c0_i32, %c0_i32_0, %c0_i32_1 : i32, i32, i32
  }
  func.func @transform_5(%arg0: i32) -> (i32, i32) {
    %c0_i32 = arith.constant 0 : i32
    %c0_i32_0 = arith.constant 0 : i32
    %c0_i32_1 = arith.constant 0 : i32
    return %c0_i32, %c0_i32_0 : i32, i32
  }
  func.func @transform_6(%arg0: i32) -> (i32, i32, i32) {
    %c0_i32 = arith.constant 0 : i32
    %c0_i32_0 = arith.constant 0 : i32
    %c0_i32_1 = arith.constant 0 : i32
    %c0_i32_2 = arith.constant 0 : i32
    return %c0_i32, %c0_i32_0, %c0_i32_1 : i32, i32, i32
  }
  func.func @transform_7(%arg0: i32) -> (i32, i32) {
    %c0_i32 = arith.constant 0 : i32
    %c0_i32_0 = arith.constant 0 : i32
    %c0_i32_1 = arith.constant 0 : i32
    return %c0_i32, %c0_i32_0 : i32, i32
  }
  func.func @transform_8(%arg0: i32) -> (i32, i32, i32) {
    %c0_i32 = arith.constant 0 : i32
    %c0_i32_0 = arith.constant 0 : i32
    %c0_i32_1 = arith.constant 0 : i32
    %c0_i32_2 = arith.constant 0 : i32
    return %c0_i32, %c0_i32_0, %c0_i32_1 : i32, i32, i32
  }
  func.func @transform_9(%arg0: i32) -> (i32, i32) {
    %c0_i32 = arith.constant 0 : i32
    %c0_i32_0 = arith.constant 0 : i32
    %c0_i32_1 = arith.constant 0 : i32
    return %c0_i32, %c0_i32_0 : i32, i32
  }
  func.func @transform_10(%arg0: i32) -> (i32, i32, i32) {
    %c0_i32 = arith.constant 0 : i32
    %c0_i32_0 = arith.constant 0 : i32
    %c0_i32_1 = arith.constant 0 : i32
    %c0_i32_2 = arith.constant 0 : i32
    return %c0_i32, %c0_i32_0, %c0_i32_1 : i32, i32, i32
  }
  func.func @transform_11(%arg0: i32) -> (i32, i32) {
    %c0_i32 = arith.constant 0 : i32
    %c0_i32_0 = arith.constant 0 : i32
    %c0_i32_1 = arith.constant 0 : i32
    return %c0_i32, %c0_i32_0 : i32, i32
  }
  func.func @transform_12(%arg0: i32) -> (i32, i32, i32) {
    %c0_i32 = arith.constant 0 : i32
    %c0_i32_0 = arith.constant 0 : i32
    %c0_i32_1 = arith.constant 0 : i32
    %c0_i32_2 = arith.constant 0 : i32
    return %c0_i32, %c0_i32_0, %c0_i32_1 : i32, i32, i32
  }
  func.func @transform_13(%arg0: i32) -> (i32, i32) {
    %c0_i32 = arith.constant 0 : i32
    %c0_i32_0 = arith.constant 0 : i32
    %c0_i32_1 = arith.constant 0 : i32
    return %c0_i32, %c0_i32_0 : i32, i32
  }
  func.func @transform_14(%arg0: i32) -> (i32, i32, i32) {
    %c0_i32 = arith.constant 0 : i32
    %c0_i32_0 = arith.constant 0 : i32
    %c0_i32_1 = arith.constant 0 : i32
    return %arg0, %c0_i32, %c0_i32_0 : i32, i32, i32
  }
}

</mosaic_0001>

<bundles_post_ra>
// kernel: tpu_custom_call.1
= control target key start
LH: loop header
LB: loop body
LE: loop exit
PB: predicated region body
PF: predicated region fallthrough
CT: control target
= control target key end

     0   :  { %s12537_s0 = inlined_call_operand.hbm [shape: f32[2,8,384], index: 0, kind: input, shape index: {}]   ;;  %s12538_s1 = inlined_call_operand.vmem [shape: f32[1,384], index: 1, kind: input, shape index: {}]   ;;  %s12539_s2 = inlined_call_operand.vmem [shape: f32[9,8,8], index: 2, kind: input, shape index: {}]   ;;  %s12540_s3 = inlined_call_operand.vmem [shape: f32[8,1], index: 3, kind: input, shape index: {}]   ;;  %s12541_s4 = inlined_call_operand.vmem [shape: f32[9,8,16], index: 4, kind: input, shape index: {}]   ;;  %s12542_s5 = inlined_call_operand.vmem [shape: f32[8,1], index: 5, kind: input, shape index: {}]   ;;  %s12543_s6 = inlined_call_operand.vmem [shape: f32[9,8,24], index: 6, kind: input, shape index: {}]   ;;  %s12544_s7 = inlined_call_operand.vmem [shape: f32[8,1], index: 7, kind: input, shape index: {}]   ;;  %s12545_s8 = inlined_call_operand.hbm [shape: f32[9,8,32], index: 8, kind: input, shape index: {}]   ;;  %s12546_s9 = inlined_call_operand.vmem [shape: f32[8,1], index: 9, kind: input, shape index: {}]   ;;  %s12547_s10 = inlined_call_operand.hbm [shape: f32[9,8,40], index: 10, kind: input, shape index: {}]   ;;  %s12548_s11 = inlined_call_operand.vmem [shape: f32[8,1], index: 11, kind: input, shape index: {}]   ;;  %s12549_s12 = inlined_call_operand.hbm [shape: f32[9,8,48], index: 12, kind: input, shape index: {}]   ;;  %s12550_s13 = inlined_call_operand.vmem [shape: f32[8,1], index: 13, kind: input, shape index: {}]   ;;  %s12551_s14 = inlined_call_operand.hbm [shape: f32[2,8,384], index: 14, kind: output, shape index: {}]  }
   0x1   :  { %12562 = sst [smem:[#allocation21_spill]] %s12545_s8 }
   0x2   :  { %12563 = sst [smem:[#allocation22_spill]] %s12547_s10 }
   0x3   :  { %12564 = sst [smem:[#allocation23_spill]] %s12549_s12 }
   0x4   :  { %12565 = sst [smem:[#allocation24_spill]] %s12551_s14 }
   0x5   :  { %19 = vsyncpa [#allocation4], 0 }
   0x6   :  { %21 = vsyncpa [#allocation4 + $0x1], 0 }
   0x7   :  { %22 = vsyncpa [#allocation7], 0 }
   0x8   :  { %23 = vsyncpa [#allocation10], 0 }
   0x9   :  { %24 = vsyncpa [#allocation5], 0 }
   0xa   :  { %26 = vsyncpa [#allocation5 + $0x1], 0  ;;  %s10637_s29 = smov 0   ;;  %s10639_s30 = smov 0  }
   0xb   :  { %s10641_s15 = smov 0   ;;  %s10643_s16 = smov 0  }
   0xc LB: > { %12566 = sst [smem:[#allocation16_spill]] %s10530_s29  ;;  %s10658_s17 = sadd.s32 4294967295, %s10542_s16   ;;  %s10542_s16 = sphi %s10643_s16, %s12593_s16   ;;  %s10538_s15 = sphi %s10641_s15, %s12595_s15   ;;  %s10534_s30 = sphi %s10639_s30, %s12597_s30   ;;  %s10530_s29 = sphi %s10637_s29, %s12596_s29  }
   0xd   : > { %12567 = sst [smem:[#allocation17_spill]] %s10538_s15  ;;  %s9330_s18 = sadd.s32 4294967294, %s10542_s16  }
   0xe   : > { %p52_p0 = scmp.ne.s32.totalorder %s10534_s30, %s10530_s29  ;;  %p12554_p1 = scmp.eq.s32.totalorder %s10658_s17, 0 }
   0xf   : > { %p355_p3 = scmp.eq.s32.totalorder %s9330_s18, 1  ;;  %p9331_p5 = scmp.ge.s32.totalorder %s10542_s16, 1 }
  0x10   : > { %p10667_p4 = por %p12554_p1, %p52_p0  ;;  %p362_p7 = scmp.lt.s32.totalorder %s10542_s16, 3 }
  0x11   : > { %p10672_p6 = por %p355_p3, %p52_p0  ;;  %s10544_s22 = smov [#allocation6]  }
  0x12   : > { %s12568_s19 = scalar_select %p10667_p4, 1, 0 }
  0x13   : > { %s12569_s20 = scalar_select %p10672_p6, 1, 0 }
  0x14   : > { %p10677_p8 = pnand %p9331_p5, %p362_p7  ;;  %s395_s23 = sshll.u32 %s10544_s22, 4  ;;  %s396_s23 = int_to_ptr.vmem [resolvable:$true] %s395_s23 }
  0x15   : > { %12570 = sst [smem:[#allocation18_spill]] %s12569_s20  ;;  %s10545_s25 = smov [#allocation8]  }
  0x16   : > { %s12571_s21 = scalar_select %p10677_p8, 1, 0 }
  0x17   : > { %p10279_p9 = pneg %p10677_p8  ;;  %s411_s26 = sshll.u32 %s10545_s25, 4  ;;  %s412_s26 = int_to_ptr.vmem [resolvable:$true] %s411_s26 }
  0x18   : > { %s10546_s27 = smov [#allocation9]   ;;  %s10375_s18 = scalar_lea.vmem %s396_s23, 1152 }
  0x19   : > { %p10686_p11 = pnand %p10279_p9, %p12554_p1  ;;  %s427_s28 = sshll.u32 %s10546_s27, 4  ;;  %s428_s28 = int_to_ptr.vmem [resolvable:$true] %s427_s28 }
  0x1a   : > { %p10376_p13 = scmp.ne.s32.totalorder %s396_s23, %s10375_s18  ;;  %p10383_p5 = scmp.lt.s32.totalorder %s396_s23, %s396_s23 }
  0x1b   : > { %p10366_p12 = pneg %p10686_p11  ;;  %p10384_p7 = scmp.lt.s32.totalorder %s10375_s18, %s10375_s18 }
  0x1d   : > { %p10378_p0 = pnand %p10376_p13, %p10366_p12  ;;  %p10385_p9 = por %p10384_p7, %p10383_p5 }
  0x1f   : > { %p10379_p3 = pneg %p10378_p0 }
  0x21   : > { %p10386_p10 = pnand %p10385_p9, %p10379_p3 }
  0x23   : > { %10389 = shalt.err (!%p10386_p10)
}
  0x24   : > { %s10547_s22 = smov 128   ;;  %s10548_s25 = smov 8  }
  0x25   : > { %s12573_s8 = sld [smem:[#allocation21_spill]]  ;;  %s10401_s29 = scalar_lea.vmem %s412_s26, 1152 }
  0x26   : > { %p10402_p1 = scmp.ne.s32.totalorder %s412_s26, %s10401_s29  ;;  %p10409_p2 = scmp.lt.s32.totalorder %s412_s26, %s412_s26 }
  0x27   : > { %p10410_p6 = scmp.lt.s32.totalorder %s10401_s29, %s10401_s29 }
  0x28   : > { %p10404_p13 = pnand %p10402_p1, %p10366_p12 }
  0x29   : > { %p10411_p5 = por %p10410_p6, %p10409_p2 }
  0x2a   : > { %p10405_p0 = pneg %p10404_p13 }
  0x2b   : > { %10282 = dma.hbm_to_vmem [thread:$0]  (!%p10686_p11), %s12573_s8, 1152, %s396_s23, [#allocation7], %s10547_s22, %s10547_s22, %s10548_s25  }
  0x2c   : > { %p10412_p3 = pnand %p10411_p5, %p10405_p0 }
  0x2e   : > { %10415 = shalt.err (!%p10412_p3)
}
  0x2f   : > { %s12574_s10 = sld [smem:[#allocation22_spill]]  ;;  %s10427_s20 = scalar_lea.vmem %s428_s28, 1152 }
  0x30   : > { %p10428_p10 = scmp.ne.s32.totalorder %s428_s28, %s10427_s20  ;;  %p10435_p9 = scmp.lt.s32.totalorder %s428_s28, %s428_s28 }
  0x31   : > { %p10436_p13 = scmp.lt.s32.totalorder %s10427_s20, %s10427_s20 }
  0x32   : > { %p10430_p7 = pnand %p10428_p10, %p10366_p12 }
  0x33   : > { %p10437_p4 = por %p10436_p13, %p10435_p9 }
  0x34   : > { %p10431_p1 = pneg %p10430_p7 }
  0x35   : > { %10285 = dma.hbm_to_vmem [thread:$0]  (!%p10686_p11), %s12574_s10, 1152, %s412_s26, [#allocation7], %s10547_s22, %s10547_s22, %s10548_s25  }
  0x36   : > { %p10438_p2 = pnand %p10437_p4, %p10431_p1 }
  0x38   : > { %10441 = shalt.err (!%p10438_p2)
}
  0x39   : > { %s12575_s12 = sld [smem:[#allocation23_spill]]  ;;  %s10717_s14 = sadd.s32 1, %s10542_s16  }
  0x3a   : > { %12576 = sst [smem:[#allocation19_spill]] %s10717_s14  ;;  %s36_s26 = ssub.s32 %s10542_s16, %s10717_s14 }
  0x3b   : > { %s39_s24 = sadd.s32 1, %s10538_s15  ;;  %p37_p4 = scmp.eq.s32.totalorder %s36_s26, 0 }
  0x3c   : > { %p46_p6 = scmp.ne.s32.totalorder %s10538_s15, %s10534_s30  ;;  %p47_p12 = scmp.eq.s32.totalorder %s10542_s16, 0 }
  0x3d   : > { %p10300_p0 = scmp.lt.s32.totalorder %s10542_s16, 2  ;;  %p12578_p3 = scmp.eq.s32.totalorder %s10658_s17, 1 }
  0x3e   : > { %s10727_s27 = scalar_select %p37_p4, %s10538_s15, %s39_s24  }
  0x3f   : > { %10288 = dma.hbm_to_vmem [thread:$0]  (!%p10686_p11), %s12575_s12, 1152, %s428_s28, [#allocation10], %s10547_s22, %s10547_s22, %s10548_s25  }
  0x40   : > { %12577 = sst [smem:[#allocation20_spill]] %s10727_s27  ;;  %p48_p5 = por %p47_p12, %p46_p6 }
  0x41   : > { %p10731_p10 = por %p12578_p3, %p46_p6  ;;  %s444_s20 = sand.u32 1, %s10538_s15  }
  0x42   : > { %s10260_s29 = smul.u32 384, %s10542_s16  ;;  %p10737_p11 = pnand %p10300_p0, %p48_p5 }
  0x43   : > { %s12579_s18 = scalar_select %p10731_p10, 1, 0 }
  0x44   : > { %s10259_s28 = smul.u32 24, %s444_s20  ;;  %s10744_s26 = scalar_lea.hbm %s12537_s0, %s10260_s29 }
  0x45   : > { %s445_s10 = scalar_lea.sflag [#allocation4], %s444_s20  ;;  %s10442_s12 = scalar_lea.hbm %s10744_s26, 384 }
  0x46   : > { %s448_s24 = scalar_lea.vmem [#allocation3], %s10259_s28  ;;  %p10443_p7 = scmp.ne.s32.totalorder %s10744_s26, %s10442_s12 }
  0x47   : > { %s456_s8 = sshll.u32 %s448_s24, 4  ;;  %p10444_p1 = pneg %p10737_p11  ;;  %s457_s8 = int_to_ptr.vmem [resolvable:$true] %s456_s8 }
  0x48   : > { %s10447_s25 = scalar_lea.hbm %s12537_s0, 768  ;;  %p10448_p2 = scmp.lt.s32.totalorder %s10744_s26, %s12537_s0 }
  0x49   : > { %p10445_p9 = pnand %p10444_p1, %p10443_p7  ;;  %p10449_p4 = scmp.lt.s32.totalorder %s10447_s25, %s10442_s12 }
  0x4b   : > { %p10446_p13 = pneg %p10445_p9  ;;  %p10450_p6 = por %p10449_p4, %p10448_p2 }
  0x4d   : > { %p10451_p12 = pnand %p10450_p6, %p10446_p13 }
  0x4f   : > { %10454 = shalt.err (!%p10451_p12)
}
  0x50   : > { %s10455_s28 = scalar_lea.vmem %s457_s8, 384  ;;  %s10549_s20 = smov [#allocation3]  }
  0x51   : > { %p10456_p0 = scmp.ne.s32.totalorder %s457_s8, %s10455_s28  ;;  %s10460_s24 = sshll.u32 %s10549_s20, 4  ;;  %s10461_s24 = int_to_ptr.vmem [resolvable:$false] %s10460_s24 }
  0x52   : > { %s10462_s14 = scalar_lea.vmem %s10461_s24, 768  ;;  %p10463_p7 = scmp.lt.s32.totalorder %s457_s8, %s10461_s24 }
  0x53   : > { %p10458_p5 = pnand %p10456_p0, %p10444_p1  ;;  %p10464_p9 = scmp.lt.s32.totalorder %s10462_s14, %s10455_s28 }
  0x55   : > { %p10459_p3 = pneg %p10458_p5  ;;  %p10465_p10 = por %p10464_p9, %p10463_p7 }
  0x57   : > { %p10466_p8 = pnand %p10465_p10, %p10459_p3 }
  0x59   : > { %10469 = shalt.err (!%p10466_p8)
}
  0x5a   : > { %10292 = dma.hbm_to_vmem [thread:$0]  (!%p10737_p11), %s10744_s26, 384, %s457_s8, %s445_s10  }
  0x5b   : > { %p12581_p13 = scmp.ne.s32.totalorder %s12571_s21, 0 }
  0x5c   : > { %s10763_s12 = sand.u32 (!%p12581_p13), 1, %s10534_s30   ;;  %p12582_p8 = scmp.ne.s32.totalorder (!%p12581_p13), %s12568_s19, 0 }
  0x5d   : > { %465 = sbr.rel (%p12581_p13) target bundleno = 2521 (0x9d9), region = 76  ;;  %s468_s27 = scalar_lea.sflag (!%p12581_p13), [#allocation4], %s10763_s12 }
  0x5e   : > { %s10261_s15 = smul.u32 (!%p12581_p13), 24, %s10763_s12 }
  0x60   : > { %s10769_s14 = scalar_lea.vmem (!%p12581_p13), [#allocation3], %s10261_s15 }
  0x62   : > { %10513 = dma.done.wait (%p12582_p8), %s468_s27, 384  }
  0x63   : > { %10515 = vsyncadd (%p12582_p8), %s468_s27, 4294966912  ;;  %p12583_p10 = scmp.eq.s32.totalorder %s10658_s17, 0 }
  0x65   : > { %10517 = dma.done.wait (%p12583_p10), [#allocation7], 2304   ;;  %p12584_p11 = pmov %p12583_p10 }
  0x66   : > { %p12585_p1 = pmov %p12583_p10 }
  0x67   : > { %10519 = vsyncadd (%p12584_p11), [#allocation7], 4294964992 }
  0x68   : > { %10521 = dma.done.wait (%p12585_p1), [#allocation10], 1152   ;;  %p12586_p2 = pmov %p12585_p1 }
  0x69   : > { %v10550_v0 = vmov 0.0   ;;  %vm10551_vm0 = vmmov 0   ;;  %v10552_v1 = vmov 0   ;;  %vm545_vm1 = vcmask 64512   ;;  %v10788_v2 = vld [vmem:[%s10769_s14 + $0x8] sm:$0xff]  ;;  %v10791_v3 = vld [vmem:[%s10769_s14 + $0x10] sm:$0xff] }
  0x6a   : > { %10523 = vsyncadd (%p12586_p2), [#allocation10], 4294966144  ;;  %9719 = vmatprep.subr.mxu1 %v10550_v0  ;;  %9721 = vmatprep.mubr.msk.f32.mxu1 %vm10551_vm0, %v10550_v0  ;;  %v10794_v4 = vld [vmem:[%s10769_s14] sm:$0xff]  ;;  %v9343_v6 = vld [vmem:[%s12539_s2 + $0x8] sm:$0xff]  ;;  %s10553_s23 = smov 19   ;;  %s10554_s29 = smov 18   ;;  %v696_v61 = vlaneseq }
  0x6b   : > { %613 = vmatprep.mubr.f32.mxu0 %v10550_v0  ;;  %10353 = vset.pattern.permute.xlu0 %v10552_v1  ;;  %v544_v5 = vld [vmem:[%s12539_s2] sm:$0xff]  ;;  %v9346_v7 = vld [vmem:[%s12539_s2 + $0x10] sm:$0xff]  ;;  %v9349_v8 = vld [vmem:[%s12539_s2 + $0x18] sm:$0xff]  ;;  %s10555_s28 = smov 17   ;;  %s10556_s20 = smov 1   ;;  %vm2011_vm13 = vcmask 130048  }
  0x6c   : > { %10354 = vset.pattern.permute.xlu1 %v10552_v1  ;;  %579 = vmatprep.subr.mxu0 %v10788_v2  ;;  %v9352_v9 = vld [vmem:[%s12539_s2 + $0x20] sm:$0xff]  ;;  %v9355_v10 = vld [vmem:[%s12539_s2 + $0x28] sm:$0xff]  ;;  %v9358_v11 = vld [vmem:[%s12539_s2 + $0x30] sm:$0xff]  ;;  %s10557_s24 = smov 127   ;;  %s10558_s27 = smov 111   ;;  %v10940_v1 = vand.u32 127, %v696_v61 }
  0x6d   : > { %9720 = vmatpush3.msra.mxu1 %v10791_v3  ;;  %580 = vmatpush1.msra.mxu0 %v10794_v4  ;;  %v9361_v12 = vld [vmem:[%s12539_s2 + $0x38] sm:$0xff]  ;;  %v538_v13 = vld [vmem:[%s12540_s3] sm:$0xff]  ;;  %s10559_s8 = smov 110   ;;  %s10560_s10 = smov 109  }
  0x6e   : > { %9722 = vmatmul.mubr.msk.f32.vlgmr.msra.gmra.mxu1 %vm545_vm1, %v544_v5  ;;  %9341 = vmatmul.mubr.msk.f32.vlgmr.msra.gmra.mxu0 %vm545_vm1, %v544_v5  ;;  %v9364_v14 = vld [vmem:[%s12539_s2 + $0x40] sm:$0xff]  ;;  %vm698_vm2 = vcmp.lt.s32.totalorder %v10940_v1, 19  ;;  %vm857_vm3 = vcmp.lt.s32.totalorder %v10940_v1, 18  ;;  %vm1016_vm4 = vcmp.lt.s32.totalorder %v10940_v1, 17  ;;  %vm1175_vm5 = vcmp.lt.s32.totalorder %v10940_v1, 1  ;;  %p12588_p6 = scmp.ne.s32.totalorder %s12579_s18, 0 }
  0x6f   : > { %9724 = vmatprep.subr.mxu1 %v10550_v0  ;;  %740 = vmatprep.subr.mxu0 %v10788_v2  ;;  %v2004_v51 = vld [vmem:[%s12542_s5] sm:$0xff]  ;;  %vm1483_vm6 = vcmp.lt.s32.totalorder %v10940_v1, 127  ;;  %vm1642_vm7 = vcmp.lt.s32.totalorder %v10940_v1, 111  ;;  %vm1801_vm8 = vcmp.lt.s32.totalorder %v10940_v1, 110  ;;  %vm1960_vm9 = vcmp.lt.s32.totalorder %v10940_v1, 109 }
  0x70   : > { %9725 = vmatpush3.msra.mxu1 %v10791_v3  ;;  %9726 = vmatprep.mubr.msk.f32.mxu1 %vm10551_vm0, %v10550_v0 }
  0x71   : > { %741 = vmatpush1.msra.mxu0 %v10794_v4  ;;  %774 = vmatprep.mubr.f32.mxu0 %v10550_v0 }
  0x72   : > { %9727 = vmatmul.mubr.msk.f32.vlgmr.msra.gmra.mxu1 %vm545_vm1, %v9343_v6  ;;  %9344 = vmatmul.mubr.msk.f32.vlgmr.msra.gmra.mxu0 %vm545_vm1, %v9343_v6 }
  0x73   : > { %899 = vmatprep.subr.mxu0 %v10788_v2  ;;  %933 = vmatprep.mubr.f32.mxu0 %v10550_v0 }
  0x74   : > { %900 = vmatpush1.msra.mxu0 %v10794_v4  ;;  %9729 = vmatprep.subr.mxu1 %v10550_v0 }
  0x75   : > { %9731 = vmatprep.mubr.msk.f32.mxu1 %vm10551_vm0, %v10550_v0  ;;  %9730 = vmatpush3.msra.mxu1 %v10791_v3 }
  0x76   : > { %1058 = vmatprep.subr.mxu0 %v10788_v2  ;;  %9347 = vmatmul.mubr.msk.f32.vlgmr.msra.gmra.mxu0 %vm545_vm1, %v9346_v7 }
  0x77   : > { %9732 = vmatmul.mubr.msk.f32.vlgmr.msra.gmra.mxu1 %vm545_vm1, %v9346_v7  ;;  %9734 = vmatprep.subr.mxu1 %v10550_v0 }
  0x78   : > { %1059 = vmatpush1.msra.mxu0 %v10794_v4  ;;  %1092 = vmatprep.mubr.f32.mxu0 %v10550_v0 }
  0x79   : > { %9735 = vmatpush3.msra.mxu1 %v10791_v3  ;;  %9736 = vmatprep.mubr.msk.f32.mxu1 %vm10551_vm0, %v10550_v0 }
  0x7a   : > { %1217 = vmatprep.subr.mxu0 %v10788_v2  ;;  %9350 = vmatmul.mubr.msk.f32.vlgmr.msra.gmra.mxu0 %vm545_vm1, %v9349_v8 }
  0x7b   : > { %9737 = vmatmul.mubr.msk.f32.vlgmr.msra.gmra.mxu1 %vm545_vm1, %v9349_v8  ;;  %9739 = vmatprep.subr.mxu1 %v10550_v0 }
  0x7c   : > { %1218 = vmatpush1.msra.mxu0 %v10794_v4  ;;  %1251 = vmatprep.mubr.f32.mxu0 %v10550_v0 }
  0x7d   : > { %9740 = vmatpush3.msra.mxu1 %v10791_v3  ;;  %9741 = vmatprep.mubr.msk.f32.mxu1 %vm10551_vm0, %v10550_v0 }
  0x7e   : > { %1366 = vmatprep.subr.mxu0 %v10788_v2  ;;  %9353 = vmatmul.mubr.msk.f32.vlgmr.msra.gmra.mxu0 %vm545_vm1, %v9352_v9 }
  0x7f   : > { %9742 = vmatmul.mubr.msk.f32.vlgmr.msra.gmra.mxu1 %vm545_vm1, %v9352_v9  ;;  %9744 = vmatprep.subr.mxu1 %v10550_v0 }
  0x80   : > { %1367 = vmatpush1.msra.mxu0 %v10794_v4  ;;  %1400 = vmatprep.mubr.f32.mxu0 %v10550_v0 }
  0x81   : > { %9745 = vmatpush3.msra.mxu1 %v10791_v3  ;;  %9746 = vmatprep.mubr.msk.f32.mxu1 %vm10551_vm0, %v10550_v0 }
  0x82   : > { %1525 = vmatprep.subr.mxu0 %v10788_v2  ;;  %9356 = vmatmul.mubr.msk.f32.vlgmr.msra.gmra.mxu0 %vm545_vm1, %v9355_v10 }
  0x83   : > { %9747 = vmatmul.mubr.msk.f32.vlgmr.msra.gmra.mxu1 %vm545_vm1, %v9355_v10  ;;  %1526 = vmatpush1.msra.mxu0 %v10794_v4 }
  0x84   : > { %1559 = vmatprep.mubr.f32.mxu0 %v10550_v0  ;;  %9749 = vmatprep.subr.mxu1 %v10550_v0 }
  0x85   : > { %9751 = vmatprep.mubr.msk.f32.mxu1 %vm10551_vm0, %v10550_v0  ;;  %9750 = vmatpush3.msra.mxu1 %v10791_v3 }
  0x86   : > { %1684 = vmatprep.subr.mxu0 %v10788_v2  ;;  %9359 = vmatmul.mubr.msk.f32.vlgmr.msra.gmra.mxu0 %vm545_vm1, %v9358_v11 }
  0x87   : > { %9752 = vmatmul.mubr.msk.f32.vlgmr.msra.gmra.mxu1 %vm545_vm1, %v9358_v11  ;;  %1685 = vmatpush1.msra.mxu0 %v10794_v4 }
  0x88   : > { %1718 = vmatprep.mubr.f32.mxu0 %v10550_v0  ;;  %9754 = vmatprep.subr.mxu1 %v10550_v0 }
  0x89   : > { %9756 = vmatprep.mubr.msk.f32.mxu1 %vm10551_vm0, %v10550_v0  ;;  %9755 = vmatpush3.msra.mxu1 %v10791_v3 }
  0x8a   : > { %1843 = vmatprep.subr.mxu0 %v10788_v2  ;;  %9362 = vmatmul.mubr.msk.f32.vlgmr.msra.gmra.mxu0 %vm545_vm1, %v9361_v12 }
  0x8b   : > { %9757 = vmatmul.mubr.msk.f32.vlgmr.msra.gmra.mxu1 %vm545_vm1, %v9361_v12  ;;  %1844 = vmatpush1.msra.mxu0 %v10794_v4 }
  0x8c   : > { %1877 = vmatprep.mubr.f32.mxu0 %v10550_v0  ;;  %9759 = vmatprep.subr.mxu1 %v10550_v0 }
  0x8d   : > { %9761 = vmatprep.mubr.msk.f32.mxu1 %vm10551_vm0, %v10550_v0  ;;  %9760 = vmatpush3.msra.mxu1 %v10791_v3 }
  0x8e   : > { %541 = vperm.xlu0 %10353, %v538_v13   ;;  %9365 = vmatmul.mubr.msk.f32.vlgmr.msra.gmra.mxu0 %vm545_vm1, %v9364_v14 }
  0x8f   : > { %9762 = vmatmul.mubr.msk.f32.vlgmr.msra.gmra.mxu1 %vm545_vm1, %v9364_v14  ;;  %9764 = vmatprep.subr.mxu1 %v10550_v0 }
  0x90   : > { %9768 = vmatprep.mubr.msk.f32.mxu1 %vm10551_vm0, %v10550_v0  ;;  %2079 = vmatprep.mubr.f32.mxu0 %v10550_v0 }
 0x109   : > { %v542_v52 = vpop.permute.xlu0 %541 }
 0x12e   : > { %v686_v15 = vpop.f32.mrf.mxu1  ;;  %v615_v16 = vpop.f32.mrf.mxu0 }
 0x12f   : > { %694 = vrot.lane.b32.xlu1 %v686_v15, %s10553_s23  ;;  %690 = vrot.lane.b32.xlu0 %v615_v16, %s10553_s23 }
 0x130   : > { %v9723_v17 = vpop.f32.mrf.mxu1  ;;  %v617_v18 = vpop.f32.mrf.mxu0 }
 0x132   : > { %v847_v19 = vpop.f32.mrf.mxu1  ;;  %v776_v20 = vpop.f32.mrf.mxu0 }
 0x133   : > { %692 = vrot.lane.b32.xlu1 %v617_v18, %s10553_s23  ;;  %855 = vrot.lane.b32.xlu0 %v847_v19, %s10554_s29 }
 0x134   : > { %v9728_v21 = vpop.f32.mrf.mxu1  ;;  %v778_v22 = vpop.f32.mrf.mxu0 }
 0x136   : > { %v935_v23 = vpop.f32.mrf.mxu0 }
 0x137   : > { %853 = vrot.lane.b32.xlu1 %v778_v22, %s10554_s29  ;;  %v1006_v24 = vpop.f32.mrf.mxu1  ;;  %851 = vrot.lane.b32.xlu0 %v776_v20, %s10554_s29 }
 0x138   : > { %v937_v25 = vpop.f32.mrf.mxu0 }
 0x139   : > { %v9733_v26 = vpop.f32.mrf.mxu1 }
 0x13a   : > { %v1094_v27 = vpop.f32.mrf.mxu0 }
 0x13b   : > { %1014 = vrot.lane.b32.xlu1 %v1006_v24, %s10555_s28  ;;  %v1165_v28 = vpop.f32.mrf.mxu1  ;;  %1012 = vrot.lane.b32.xlu0 %v937_v25, %s10555_s28 }
 0x13c   : > { %v1096_v30 = vpop.f32.mrf.mxu0 }
 0x13d   : > { %v9738_v29 = vpop.f32.mrf.mxu1 }
 0x13e   : > { %v10916_v31 = vpop.f32.mrf.mxu0 }
 0x13f   : > { %1010 = vrot.lane.b32.xlu1 %v935_v23, %s10555_s28  ;;  %v10918_v32 = vpop.f32.mrf.mxu1  ;;  %1173 = vrot.lane.b32.xlu0 %v1165_v28, %s10556_s20 }
 0x140   : > { %v10921_v34 = vpop.f32.mrf.mxu0 }
 0x141   : > { %v9743_v33 = vpop.f32.mrf.mxu1 }
 0x142   : > { %v1402_v35 = vpop.f32.mrf.mxu0 }
 0x143   : > { %1171 = vrot.lane.b32.xlu1 %v1096_v30, %s10556_s20  ;;  %v1473_v36 = vpop.f32.mrf.mxu1  ;;  %1169 = vrot.lane.b32.xlu0 %v1094_v27, %s10556_s20 }
 0x144   : > { %v1404_v38 = vpop.f32.mrf.mxu0 }
 0x145   : > { %v9748_v37 = vpop.f32.mrf.mxu1 }
 0x146   : > { %v1561_v39 = vpop.f32.mrf.mxu0 }
 0x147   : > { %1477 = vrot.lane.b32.xlu1 %v1402_v35, %s10557_s24  ;;  %v1632_v40 = vpop.f32.mrf.mxu1  ;;  %1481 = vrot.lane.b32.xlu0 %v1473_v36, %s10557_s24 }
 0x148   : > { %v1563_v41 = vpop.f32.mrf.mxu0 }
 0x149   : > { %v9753_v42 = vpop.f32.mrf.mxu1 }
 0x14a   : > { %v1720_v43 = vpop.f32.mrf.mxu0 }
 0x14b   : > { %1479 = vrot.lane.b32.xlu1 %v1404_v38, %s10557_s24  ;;  %v1791_v44 = vpop.f32.mrf.mxu1  ;;  %1636 = vrot.lane.b32.xlu0 %v1561_v39, %s10558_s27 }
 0x14c   : > { %v1722_v46 = vpop.f32.mrf.mxu0 }
 0x14d   : > { %v9758_v45 = vpop.f32.mrf.mxu1 }
 0x14e   : > { %v1879_v49 = vpop.f32.mrf.mxu0 }
 0x14f   : > { %1640 = vrot.lane.b32.xlu1 %v1632_v40, %s10558_s27  ;;  %v1950_v47 = vpop.f32.mrf.mxu1  ;;  %1638 = vrot.lane.b32.xlu0 %v1563_v41, %s10558_s27 }
 0x150   : > { %v1881_v50 = vpop.f32.mrf.mxu0 }
 0x151   : > { %v9763_v48 = vpop.f32.mrf.mxu1 }
 0x153   : > { %1795 = vrot.lane.b32.xlu1 %v1720_v43, %s10559_s8  ;;  %1799 = vrot.lane.b32.xlu0 %v1791_v44, %s10559_s8 }
 0x157   : > { %1797 = vrot.lane.b32.xlu1 %v1722_v46, %s10559_s8  ;;  %1956 = vrot.lane.b32.xlu0 %v1881_v50, %s10560_s10 }
 0x15b   : > { %1958 = vrot.lane.b32.xlu1 %v1950_v47, %s10560_s10  ;;  %1954 = vrot.lane.b32.xlu0 %v1879_v49, %s10560_s10 }
 0x15f   : > { %2007 = vperm.xlu1 %10354, %v2004_v51  }
 0x1a1   : > { %v695_v53 = vpop.permute.xlu1 %694  ;;  %v691_v54 = vpop.permute.xlu0 %690 }
 0x1a2   : > { %v701_v11 = vsel %vm698_vm2, %v695_v53, %v691_v54 }
 0x1a3   : > { %v702_v19 = vadd.f32 %v701_v11, %v542_v52 }
 0x1a5   : > { %v693_v55 = vpop.permute.xlu1 %692  ;;  %v856_v56 = vpop.permute.xlu0 %855 }
 0x1a6   : > { %v699_v7 = vsel %vm698_vm2, %v693_v55, %v695_v53  ;;  %v700_v9 = vsel %vm698_vm2, %v691_v54, %v693_v55 }
 0x1a7   : > { %v704_v13 = vadd.f32 %v699_v7, %v542_v52  ;;  %v703_v15 = vadd.f32 %v700_v9, %v542_v52 }
 0x1a9   : > { %v854_v57 = vpop.permute.xlu1 %853  ;;  %v852_v58 = vpop.permute.xlu0 %851 }
 0x1aa   : > { %v858_v12 = vsel %vm857_vm3, %v854_v57, %v856_v56  ;;  %v859_v14 = vsel %vm857_vm3, %v852_v58, %v854_v57  ;;  %v860_v16 = vsel %vm857_vm3, %v856_v56, %v852_v58 }
 0x1ab   : > { %v863_v20 = vadd.f32 %v858_v12, %v704_v13  ;;  %v862_v23 = vadd.f32 %v859_v14, %v703_v15  ;;  %v861_v26 = vadd.f32 %v860_v16, %v702_v19 }
 0x1ad   : > { %v1015_v59 = vpop.permute.xlu1 %1014  ;;  %v1013_v60 = vpop.permute.xlu0 %1012 }
 0x1ae   : > { %v1017_v17 = vsel %vm1016_vm4, %v1013_v60, %v1015_v59 }
 0x1af   : > { %v1022_v27 = vadd.f32 %v1017_v17, %v863_v20 }
 0x1b1   : > { %v1011_v62 = vpop.permute.xlu1 %1010  ;;  %v1174_v63 = vpop.permute.xlu0 %1173 }
 0x1b2   : > { %v1018_v21 = vsel %vm1016_vm4, %v1011_v62, %v1013_v60  ;;  %v1019_v24 = vsel %vm1016_vm4, %v1015_v59, %v1011_v62  ;;  %v534_v62 = vld [vmem:[%s12538_s1] sm:$0x7] }
 0x1b3   : > { %v1021_v29 = vadd.f32 %v1018_v21, %v862_v23  ;;  %v1020_v35 = vadd.f32 %v1019_v24, %v861_v26 }
 0x1b5   : > { %v1172_v5 = vpop.permute.xlu1 %1171  ;;  %v1170_v6 = vpop.permute.xlu0 %1169 }
 0x1b6   : > { %v1176_v25 = vsel %vm1175_vm5, %v1172_v5, %v1174_v63  ;;  %v1177_v28 = vsel %vm1175_vm5, %v1170_v6, %v1172_v5  ;;  %v1178_v30 = vsel %vm1175_vm5, %v1174_v63, %v1170_v6 }
 0x1b7   : > { %v1181_v36 = vadd.f32 %v1176_v25, %v1022_v27  ;;  %v1180_v38 = vadd.f32 %v1177_v28, %v1021_v29  ;;  %v1179_v39 = vadd.f32 %v1178_v30, %v1020_v35  ;;  %v2010_v28 = vld [vmem:[%s12541_s4] sm:$0xff]  ;;  %v9369_v29 = vld [vmem:[%s12541_s4 + $0x8] sm:$0xff]  ;;  %v9372_v30 = vld [vmem:[%s12541_s4 + $0x10] sm:$0xff] }
 0x1b8   : > { %v9378_v35 = vld [vmem:[%s12541_s4 + $0x20] sm:$0xff] }
 0x1b9   : > { %v1478_v8 = vpop.permute.xlu1 %1477  ;;  %v1482_v10 = vpop.permute.xlu0 %1481  ;;  %v1330_v41 = vadd.f32 %v10918_v32, %v1181_v36  ;;  %v1329_v45 = vadd.f32 %v10921_v34, %v1180_v38  ;;  %v1328_v47 = vadd.f32 %v10916_v31, %v1179_v39  ;;  %v1978_v32 = vshrl.u32 %v696_v61, 7  ;;  %v9381_v36 = vld [vmem:[%s12541_s4 + $0x28] sm:$0xff]  ;;  %v9387_v38 = vld [vmem:[%s12541_s4 + $0x38] sm:$0xff]  ;;  %v9390_v39 = vld [vmem:[%s12541_s4 + $0x40] sm:$0xff] }
 0x1ba   : > { %v1486_v44 = vsel %vm1483_vm6, %v1482_v10, %v1478_v8 }
 0x1bb   : > { %v1489_v34 = vadd.f32 %v1486_v44, %v1330_v41  ;;  %v1983_v60 = vsub.s32 1, %v1978_v32  ;;  %v1979_v5 = vsub.s32 0, %v1978_v32  ;;  %v1987_v6 = vsub.s32 2, %v1978_v32 }
 0x1bd   : > { %v1480_v18 = vpop.permute.xlu1 %1479  ;;  %v1637_v22 = vpop.permute.xlu0 %1636  ;;  %v11004_v14 = vrot.slane %v534_v62, %v1983_v60  ;;  %v11008_v19 = vrot.slane %v534_v62, %v1987_v6 }
 0x1be   : > { %v1484_v42 = vsel %vm1483_vm6, %v1480_v18, %v1482_v10  ;;  %v1485_v46 = vsel %vm1483_vm6, %v1478_v8, %v1480_v18  ;;  %v11006_v18 = vrot.slane %v534_v62, %v1979_v5 }
 0x1bf   : > { %v1488_v49 = vadd.f32 %v1484_v42, %v1329_v45  ;;  %v1487_v53 = vadd.f32 %v1485_v46, %v1328_v47 }
 0x1c1   : > { %v1641_v33 = vpop.permute.xlu1 %1640  ;;  %v1639_v37 = vpop.permute.xlu0 %1638 }
 0x1c2   : > { %v1643_v48 = vsel %vm1642_vm7, %v1639_v37, %v1641_v33  ;;  %v1645_v50 = vsel %vm1642_vm7, %v1641_v33, %v1637_v22  ;;  %v1644_v51 = vsel %vm1642_vm7, %v1637_v22, %v1639_v37  ;;  %v9375_v33 = vld [vmem:[%s12541_s4 + $0x18] sm:$0xff]  ;;  %v9384_v37 = vld [vmem:[%s12541_s4 + $0x30] sm:$0xff] }
 0x1c3   : > { %v1647_v55 = vadd.f32 %v1643_v48, %v1488_v49  ;;  %v1648_v58 = vadd.f32 %v1645_v50, %v1489_v34  ;;  %v1646_v59 = vadd.f32 %v1644_v51, %v1487_v53 }
 0x1c5   : > { %v1796_v40 = vpop.permute.xlu1 %1795  ;;  %v1800_v43 = vpop.permute.xlu0 %1799 }
 0x1c6   : > { %v1804_v56 = vsel %vm1801_vm8, %v1800_v43, %v1796_v40 }
 0x1c7   : > { %v1807_v7 = vadd.f32 %v1804_v56, %v1648_v58 }
 0x1c9   : > { %v1798_v52 = vpop.permute.xlu1 %1797  ;;  %v1957_v31 = vpop.permute.xlu0 %1956 }
 0x1ca   : > { %v1802_v54 = vsel %vm1801_vm8, %v1798_v52, %v1800_v43  ;;  %v1803_v57 = vsel %vm1801_vm8, %v1796_v40, %v1798_v52 }
 0x1cb   : > { %v1806_v61 = vadd.f32 %v1802_v54, %v1647_v55  ;;  %v1805_v8 = vadd.f32 %v1803_v57, %v1646_v59 }
 0x1cd   : > { %v1959_v63 = vpop.permute.xlu1 %1958  ;;  %v1955_v10 = vpop.permute.xlu0 %1954 }
 0x1ce   : > { %v1961_v9 = vsel %vm1960_vm9, %v1957_v31, %v1959_v63  ;;  %v1962_v12 = vsel %vm1960_vm9, %v1955_v10, %v1957_v31  ;;  %v1963_v13 = vsel %vm1960_vm9, %v1959_v63, %v1955_v10 }
 0x1cf   : > { %v1965_v11 = vadd.f32 %v1961_v9, %v1806_v61  ;;  %v1964_v15 = vadd.f32 %v1962_v12, %v1805_v8  ;;  %v1966_v16 = vadd.f32 %v1963_v13, %v1807_v7 }
 0x1d1   : > { %vm1968_vm10 = vcmp.gt.f32.partialorder %v1965_v11, 0.0  ;;  %v1971_v17 = vmul.f32 0.1, %v1965_v11  ;;  %vm1967_vm11 = vcmp.gt.f32.partialorder %v1964_v15, 0.0  ;;  %vm1969_vm12 = vcmp.gt.f32.partialorder %v1966_v16, 0.0 }
 0x1d2   : > { %v1970_v20 = vmul.f32 0.1, %v1964_v15  ;;  %v1972_v21 = vmul.f32 0.1, %v1966_v16 }
 0x1d3   : > { %v1974_v22 = vsel %vm1968_vm10, %v1965_v11, %v1971_v17  ;;  %v3447_v11 = vld [vmem:[%s12544_s7] sm:$0xff]  ;;  %vm3454_vm10 = vcmask 195584  }
 0x1d4   : > { %v11011_v23 = vmul.f32 %v11004_v14, %v1974_v22  ;;  %v1973_v24 = vsel %vm1967_vm11, %v1964_v15, %v1970_v20  ;;  %v1975_v25 = vsel %vm1969_vm12, %v1966_v16, %v1972_v21 }
 0x1d5   : > { %v11014_v26 = vmul.f32 %v11006_v18, %v1973_v24  ;;  %v11017_v27 = vmul.f32 %v11008_v19, %v1975_v25 }
 0x1d6   : > { %2043 = vmatprep.subr.mxu0 %v11011_v23 }
 0x1d7   : > { %2044 = vmatpush1.msra.mxu0 %v11014_v26  ;;  %9765 = vmatpush3.msra.mxu1 %v11017_v27 }
 0x1d8   : > { %2045 = vmatprep.subr.mxu0 %v10788_v2  ;;  %9766 = vmatprep.subr.mxu1 %v10550_v0 }
 0x1d9   : > { %2046 = vmatpush1.msra.mxu0 %v10794_v4  ;;  %9767 = vmatpush3.msra.mxu1 %v10791_v3 }
 0x1da   : > { %9769 = vmatmul.mubr.msk.f32.vlgmr.msra.gmra.mxu1 %vm2011_vm13, %v2010_v28  ;;  %2201 = vmatprep.subr.mxu0 %v11011_v23  ;;  %v2008_v12 = vpop.permute.xlu1 %2007 }
 0x1db   : > { %9771 = vmatprep.subr.mxu1 %v10550_v0  ;;  %9367 = vmatmul.mubr.msk.f32.vlgmr.msra.gmra.mxu0 %vm2011_vm13, %v2010_v28 }
 0x1dc   : > { %2202 = vmatpush1.msra.mxu0 %v11014_v26  ;;  %9772 = vmatpush3.msra.mxu1 %v11017_v27 }
 0x1dd   : > { %2203 = vmatprep.subr.mxu0 %v10788_v2  ;;  %9773 = vmatprep.subr.mxu1 %v10550_v0 }
 0x1de   : > { %2204 = vmatpush1.msra.mxu0 %v10794_v4  ;;  %9774 = vmatpush3.msra.mxu1 %v10791_v3 }
 0x1df   : > { %9775 = vmatprep.mubr.msk.f32.mxu1 %vm10551_vm0, %v10550_v0  ;;  %2237 = vmatprep.mubr.f32.mxu0 %v10550_v0 }
 0x1e0   : > { %9776 = vmatmul.mubr.msk.f32.vlgmr.msra.gmra.mxu1 %vm2011_vm13, %v9369_v29  ;;  %2359 = vmatprep.subr.mxu0 %v11011_v23 }
 0x1e1   : > { %9778 = vmatprep.subr.mxu1 %v10550_v0  ;;  %9370 = vmatmul.mubr.msk.f32.vlgmr.msra.gmra.mxu0 %vm2011_vm13, %v9369_v29 }
 0x1e2   : > { %2360 = vmatpush1.msra.mxu0 %v11014_v26  ;;  %9779 = vmatpush3.msra.mxu1 %v11017_v27 }
 0x1e3   : > { %2361 = vmatprep.subr.mxu0 %v10788_v2  ;;  %9780 = vmatprep.subr.mxu1 %v10550_v0 }
 0x1e4   : > { %2362 = vmatpush1.msra.mxu0 %v10794_v4  ;;  %9781 = vmatpush3.msra.mxu1 %v10791_v3 }
 0x1e5   : > { %9782 = vmatprep.mubr.msk.f32.mxu1 %vm10551_vm0, %v10550_v0  ;;  %2395 = vmatprep.mubr.f32.mxu0 %v10550_v0 }
 0x1e6   : > { %9783 = vmatmul.mubr.msk.f32.vlgmr.msra.gmra.mxu1 %vm2011_vm13, %v9372_v30  ;;  %2517 = vmatprep.subr.mxu0 %v11011_v23 }
 0x1e7   : > { %9785 = vmatprep.subr.mxu1 %v10550_v0  ;;  %9373 = vmatmul.mubr.msk.f32.vlgmr.msra.gmra.mxu0 %vm2011_vm13, %v9372_v30 }
 0x1e8   : > { %2518 = vmatpush1.msra.mxu0 %v11014_v26  ;;  %9786 = vmatpush3.msra.mxu1 %v11017_v27 }
 0x1e9   : > { %2519 = vmatprep.subr.mxu0 %v10788_v2  ;;  %9787 = vmatprep.subr.mxu1 %v10550_v0 }
 0x1ea   : > { %2520 = vmatpush1.msra.mxu0 %v10794_v4  ;;  %9788 = vmatpush3.msra.mxu1 %v10791_v3 }
 0x1eb   : > { %2553 = vmatprep.mubr.f32.mxu0 %v10550_v0  ;;  %9789 = vmatprep.mubr.msk.f32.mxu1 %vm10551_vm0, %v10550_v0 }
 0x1ec   : > { %2675 = vmatprep.subr.mxu0 %v11011_v23  ;;  %9792 = vmatprep.subr.mxu1 %v10550_v0 }
 0x1ed   : > { %9376 = vmatmul.mubr.msk.f32.vlgmr.msra.gmra.mxu0 %vm2011_vm13, %v9375_v33  ;;  %9790 = vmatmul.mubr.msk.f32.vlgmr.msra.gmra.mxu1 %vm2011_vm13, %v9375_v33 }
 0x1ee   : > { %2676 = vmatpush1.msra.mxu0 %v11014_v26  ;;  %9793 = vmatpush3.msra.mxu1 %v11017_v27 }
 0x1ef   : > { %2677 = vmatprep.subr.mxu0 %v10788_v2  ;;  %9794 = vmatprep.subr.mxu1 %v10550_v0 }
 0x1f0   : > { %2678 = vmatpush1.msra.mxu0 %v10794_v4  ;;  %9795 = vmatpush3.msra.mxu1 %v10791_v3 }
 0x1f1   : > { %2711 = vmatprep.mubr.f32.mxu0 %v10550_v0  ;;  %9796 = vmatprep.mubr.msk.f32.mxu1 %vm10551_vm0, %v10550_v0 }
 0x1f2   : > { %2824 = vmatprep.subr.mxu0 %v11011_v23  ;;  %9799 = vmatprep.subr.mxu1 %v10550_v0 }
 0x1f3   : > { %9379 = vmatmul.mubr.msk.f32.vlgmr.msra.gmra.mxu0 %vm2011_vm13, %v9378_v35  ;;  %9797 = vmatmul.mubr.msk.f32.vlgmr.msra.gmra.mxu1 %vm2011_vm13, %v9378_v35 }
 0x1f4   : > { %2825 = vmatpush1.msra.mxu0 %v11014_v26  ;;  %9800 = vmatpush3.msra.mxu1 %v11017_v27 }
 0x1f5   : > { %2826 = vmatprep.subr.mxu0 %v10788_v2  ;;  %9801 = vmatprep.subr.mxu1 %v10550_v0 }
 0x1f6   : > { %2827 = vmatpush1.msra.mxu0 %v10794_v4  ;;  %9802 = vmatpush3.msra.mxu1 %v10791_v3 }
 0x1f7   : > { %2860 = vmatprep.mubr.f32.mxu0 %v10550_v0  ;;  %9803 = vmatprep.mubr.msk.f32.mxu1 %vm10551_vm0, %v10550_v0 }
 0x1f8   : > { %2982 = vmatprep.subr.mxu0 %v11011_v23  ;;  %9806 = vmatprep.subr.mxu1 %v10550_v0 }
 0x1f9   : > { %9382 = vmatmul.mubr.msk.f32.vlgmr.msra.gmra.mxu0 %vm2011_vm13, %v9381_v36  ;;  %9804 = vmatmul.mubr.msk.f32.vlgmr.msra.gmra.mxu1 %vm2011_vm13, %v9381_v36 }
 0x1fa   : > { %2983 = vmatpush1.msra.mxu0 %v11014_v26  ;;  %9807 = vmatpush3.msra.mxu1 %v11017_v27 }
 0x1fb   : > { %2984 = vmatprep.subr.mxu0 %v10788_v2  ;;  %9808 = vmatprep.subr.mxu1 %v10550_v0 }
 0x1fc   : > { %2985 = vmatpush1.msra.mxu0 %v10794_v4  ;;  %9809 = vmatpush3.msra.mxu1 %v10791_v3 }
 0x1fd   : > { %3018 = vmatprep.mubr.f32.mxu0 %v10550_v0  ;;  %9810 = vmatprep.mubr.msk.f32.mxu1 %vm10551_vm0, %v10550_v0 }
 0x1fe   : > { %3140 = vmatprep.subr.mxu0 %v11011_v23  ;;  %9813 = vmatprep.subr.mxu1 %v10550_v0 }
 0x1ff   : > { %9385 = vmatmul.mubr.msk.f32.vlgmr.msra.gmra.mxu0 %vm2011_vm13, %v9384_v37  ;;  %9811 = vmatmul.mubr.msk.f32.vlgmr.msra.gmra.mxu1 %vm2011_vm13, %v9384_v37 }
 0x200   : > { %3141 = vmatpush1.msra.mxu0 %v11014_v26  ;;  %9814 = vmatpush3.msra.mxu1 %v11017_v27 }
 0x201   : > { %3142 = vmatprep.subr.mxu0 %v10788_v2  ;;  %9815 = vmatprep.subr.mxu1 %v10550_v0 }
 0x202   : > { %3143 = vmatpush1.msra.mxu0 %v10794_v4  ;;  %9816 = vmatpush3.msra.mxu1 %v10791_v3 }
 0x203   : > { %3176 = vmatprep.mubr.f32.mxu0 %v10550_v0  ;;  %9817 = vmatprep.mubr.msk.f32.mxu1 %vm10551_vm0, %v10550_v0 }
 0x204   : > { %3298 = vmatprep.subr.mxu0 %v11011_v23  ;;  %9820 = vmatprep.subr.mxu1 %v10550_v0 }
 0x205   : > { %9388 = vmatmul.mubr.msk.f32.vlgmr.msra.gmra.mxu0 %vm2011_vm13, %v9387_v38  ;;  %9818 = vmatmul.mubr.msk.f32.vlgmr.msra.gmra.mxu1 %vm2011_vm13, %v9387_v38 }
 0x206   : > { %3299 = vmatpush1.msra.mxu0 %v11014_v26  ;;  %9821 = vmatpush3.msra.mxu1 %v11017_v27 }
 0x207   : > { %3300 = vmatprep.subr.mxu0 %v10788_v2  ;;  %3334 = vmatprep.mubr.f32.mxu0 %v10550_v0 }
 0x208   : > { %3301 = vmatpush1.msra.mxu0 %v10794_v4  ;;  %9822 = vmatprep.subr.mxu1 %v10550_v0 }
 0x209   : > { %9391 = vmatmul.mubr.msk.f32.vlgmr.msra.gmra.mxu0 %vm2011_vm13, %v9390_v39  ;;  %9823 = vmatpush3.msra.mxu1 %v10791_v3 }
 0x20a   : > { %9824 = vmatprep.mubr.msk.f32.mxu1 %vm10551_vm0, %v10550_v0  ;;  %9827 = vmatprep.subr.mxu1 %v10550_v0 }
 0x20b   : > { %9825 = vmatmul.mubr.msk.f32.vlgmr.msra.gmra.mxu1 %vm2011_vm13, %v9390_v39  ;;  %3522 = vmatprep.mubr.f32.mxu0 %v10550_v0 }
 0x20c   : > { %9833 = vmatprep.mubr.msk.f32.mxu1 %vm10551_vm0, %v10550_v0 }
 0x29a   : > { %v2152_v2 = vpop.f32.mrf.mxu1 }
 0x29b   : > { %2160 = vrot.lane.b32.xlu0 %v2152_v2, %s10553_s23  ;;  %v2081_v4 = vpop.f32.mrf.mxu0 }
 0x29c   : > { %v9770_v40 = vpop.f32.mrf.mxu1 }
 0x29d   : > { %v2083_v41 = vpop.f32.mrf.mxu0 }
 0x29f   : > { %2156 = vrot.lane.b32.xlu0 %v2081_v4, %s10553_s23 }
 0x2a0   : > { %v2310_v3 = vpop.f32.mrf.mxu1 }
 0x2a1   : > { %2318 = vrot.lane.b32.xlu1 %v2310_v3, %s10554_s29  ;;  %v2239_v42 = vpop.f32.mrf.mxu0 }
 0x2a2   : > { %v9777_v43 = vpop.f32.mrf.mxu1 }
 0x2a3   : > { %v2241_v44 = vpop.f32.mrf.mxu0 }
 0x2a5   : > { %2158 = vrot.lane.b32.xlu1 %v2083_v41, %s10553_s23 }
 0x2a6   : > { %v2468_v45 = vpop.f32.mrf.mxu1 }
 0x2a7   : > { %2476 = vrot.lane.b32.xlu0 %v2468_v45, %s10555_s28  ;;  %v2397_v46 = vpop.f32.mrf.mxu0 }
 0x2a8   : > { %v9784_v47 = vpop.f32.mrf.mxu1 }
 0x2a9   : > { %2314 = vrot.lane.b32.xlu1 %v2239_v42, %s10554_s29  ;;  %v2399_v48 = vpop.f32.mrf.mxu0 }
 0x2ab   : > { %2316 = vrot.lane.b32.xlu0 %v2241_v44, %s10554_s29 }
 0x2ad   : > { %v2626_v32 = vpop.f32.mrf.mxu1  ;;  %v2555_v49 = vpop.f32.mrf.mxu0 }
 0x2ae   : > { %2634 = vrot.lane.b32.xlu1 %v2626_v32, %s10556_s20 }
 0x2af   : > { %v9791_v50 = vpop.f32.mrf.mxu1  ;;  %2472 = vrot.lane.b32.xlu0 %v2397_v46, %s10555_s28  ;;  %v2557_v51 = vpop.f32.mrf.mxu0 }
 0x2b2   : > { %2474 = vrot.lane.b32.xlu1 %v2399_v48, %s10555_s28 }
 0x2b3   : > { %v11173_v52 = vpop.f32.mrf.mxu0  ;;  %v11175_v34 = vpop.f32.mrf.mxu1  ;;  %2632 = vrot.lane.b32.xlu0 %v2557_v51, %s10556_s20 }
 0x2b5   : > { %v11178_v53 = vpop.f32.mrf.mxu0  ;;  %v9798_v54 = vpop.f32.mrf.mxu1 }
 0x2b6   : > { %2630 = vrot.lane.b32.xlu1 %v2555_v49, %s10556_s20 }
 0x2b9   : > { %v2862_v31 = vpop.f32.mrf.mxu0  ;;  %v2933_v55 = vpop.f32.mrf.mxu1 }
 0x2ba   : > { %2937 = vrot.lane.b32.xlu0 %v2862_v31, %s10557_s24  ;;  %2941 = vrot.lane.b32.xlu1 %v2933_v55, %s10557_s24 }
 0x2bb   : > { %v9805_v56 = vpop.f32.mrf.mxu1  ;;  %v2864_v57 = vpop.f32.mrf.mxu0 }
 0x2bf   : > { %v3091_v58 = vpop.f32.mrf.mxu1  ;;  %v3020_v59 = vpop.f32.mrf.mxu0 }
 0x2c0   : > { %3099 = vrot.lane.b32.xlu0 %v3091_v58, %s10558_s27  ;;  %3095 = vrot.lane.b32.xlu1 %v3020_v59, %s10558_s27 }
 0x2c1   : > { %v9812_v60 = vpop.f32.mrf.mxu1  ;;  %v3022_v61 = vpop.f32.mrf.mxu0 }
 0x2c4   : > { %2939 = vrot.lane.b32.xlu0 %v2864_v57, %s10557_s24 }
 0x2c5   : > { %v3249_v62 = vpop.f32.mrf.mxu1  ;;  %v3178_v63 = vpop.f32.mrf.mxu0 }
 0x2c6   : > { %3257 = vrot.lane.b32.xlu1 %v3249_v62, %s10559_s8 }
 0x2c7   : > { %v9819_v5 = vpop.f32.mrf.mxu1  ;;  %v3180_v6 = vpop.f32.mrf.mxu0 }
 0x2c8   : > { %3253 = vrot.lane.b32.xlu0 %v3178_v63, %s10559_s8 }
 0x2c9   : > { %v3336_v7 = vpop.f32.mrf.mxu0 }
 0x2ca   : > { %3097 = vrot.lane.b32.xlu1 %v3022_v61, %s10558_s27 }
 0x2cb   : > { %v3407_v8 = vpop.f32.mrf.mxu1  ;;  %v3338_v9 = vpop.f32.mrf.mxu0 }
 0x2cc   : > { %3255 = vrot.lane.b32.xlu0 %v3180_v6, %s10559_s8 }
 0x2cd   : > { %v9826_v10 = vpop.f32.mrf.mxu1 }
 0x2ce   : > { %3413 = vrot.lane.b32.xlu1 %v3338_v9, %s10560_s10 }
 0x2d0   : > { %3415 = vrot.lane.b32.xlu0 %v3407_v8, %s10560_s10 }
 0x2d2   : > { %3411 = vrot.lane.b32.xlu1 %v3336_v7, %s10560_s10 }
 0x2d4   : > { %3450 = vperm.xlu0 %10353, %v3447_v11  }
 0x30d   : > { %v2161_v13 = vpop.permute.xlu0 %2160 }
 0x311   : > { %v2157_v16 = vpop.permute.xlu0 %2156 }
 0x312   : > { %v2164_v37 = vsel %vm698_vm2, %v2161_v13, %v2157_v16 }
 0x313   : > { %v2319_v15 = vpop.permute.xlu1 %2318  ;;  %v2165_v3 = vadd.f32 %v2164_v37, %v2008_v12 }
 0x317   : > { %v2159_v17 = vpop.permute.xlu1 %2158 }
 0x318   : > { %v2163_v36 = vsel %vm698_vm2, %v2157_v16, %v2159_v17  ;;  %v2162_v38 = vsel %vm698_vm2, %v2159_v17, %v2161_v13 }
 0x319   : > { %v2477_v20 = vpop.permute.xlu0 %2476  ;;  %v2166_v2 = vadd.f32 %v2163_v36, %v2008_v12  ;;  %v2167_v42 = vadd.f32 %v2162_v38, %v2008_v12 }
 0x31b   : > { %v2315_v21 = vpop.permute.xlu1 %2314 }
 0x31c   : > { %v2322_v4 = vsel %vm857_vm3, %v2319_v15, %v2315_v21 }
 0x31d   : > { %v2317_v22 = vpop.permute.xlu0 %2316  ;;  %v2323_v32 = vadd.f32 %v2322_v4, %v2165_v3 }
 0x31e   : > { %v2321_v39 = vsel %vm857_vm3, %v2315_v21, %v2317_v22  ;;  %v2320_v40 = vsel %vm857_vm3, %v2317_v22, %v2319_v15 }
 0x31f   : > { %v2324_v43 = vadd.f32 %v2321_v39, %v2166_v2  ;;  %v2325_v49 = vadd.f32 %v2320_v40, %v2167_v42 }
 0x320   : > { %v2635_v24 = vpop.permute.xlu1 %2634 }
 0x321   : > { %v2473_v25 = vpop.permute.xlu0 %2472 }
 0x322   : > { %v2480_v46 = vsel %vm1016_vm4, %v2477_v20, %v2473_v25 }
 0x323   : > { %v2481_v54 = vadd.f32 %v2480_v46, %v2323_v32  ;;  %v11272_v32 = vld [vmem:[%s10769_s14] sm:$0xff] }
 0x324   : > { %v2475_v28 = vpop.permute.xlu1 %2474 }
 0x325   : > { %v2633_v29 = vpop.permute.xlu0 %2632  ;;  %v2479_v41 = vsel %vm1016_vm4, %v2473_v25, %v2475_v28  ;;  %v2478_v47 = vsel %vm1016_vm4, %v2475_v28, %v2477_v20 }
 0x326   : > { %v2482_v50 = vadd.f32 %v2479_v41, %v2324_v43  ;;  %v2483_v31 = vadd.f32 %v2478_v47, %v2325_v49  ;;  %v2636_v59 = vsel %vm1175_vm5, %v2633_v29, %v2635_v24  ;;  %v3453_v47 = vld [vmem:[%s12543_s6] sm:$0xff]  ;;  %v11276_v49 = vld [vmem:[%s10769_s14 + $0x10] sm:$0xff] }
 0x328   : > { %v2631_v30 = vpop.permute.xlu1 %2630  ;;  %v2641_v61 = vadd.f32 %v2636_v59, %v2483_v31  ;;  %v9404_v31 = vld [vmem:[%s12543_s6 + $0x20] sm:$0xff] }
 0x329   : > { %v2637_v48 = vsel %vm1175_vm5, %v2631_v30, %v2633_v29  ;;  %v2638_v51 = vsel %vm1175_vm5, %v2635_v24, %v2631_v30 }
 0x32a   : > { %v2640_v55 = vadd.f32 %v2637_v48, %v2482_v50  ;;  %v2639_v57 = vadd.f32 %v2638_v51, %v2481_v54  ;;  %v2790_v12 = vadd.f32 %v11175_v34, %v2641_v61  ;;  %v11267_v48 = vld [vmem:[%s10769_s14 + $0x8] sm:$0xff]  ;;  %v9398_v51 = vld [vmem:[%s12543_s6 + $0x10] sm:$0xff]  ;;  %v9401_v54 = vld [vmem:[%s12543_s6 + $0x18] sm:$0xff] }
 0x32b   : > { %v9395_v50 = vld [vmem:[%s12543_s6 + $0x8] sm:$0xff] }
 0x32c   : > { %v2938_v33 = vpop.permute.xlu0 %2937  ;;  %v2942_v35 = vpop.permute.xlu1 %2941  ;;  %v2789_v62 = vadd.f32 %v11178_v53, %v2640_v55  ;;  %v2788_v6 = vadd.f32 %v11173_v52, %v2639_v57  ;;  %v9407_v55 = vld [vmem:[%s12543_s6 + $0x28] sm:$0xff]  ;;  %v9413_v57 = vld [vmem:[%s12543_s6 + $0x38] sm:$0xff] }
 0x32d   : > { %v2945_v9 = vsel %vm1483_vm6, %v2942_v35, %v2938_v33 }
 0x32e   : > { %v2948_v17 = vadd.f32 %v2945_v9, %v2790_v12 }
 0x332   : > { %v3100_v44 = vpop.permute.xlu0 %3099  ;;  %v3096_v45 = vpop.permute.xlu1 %3095 }
 0x333   : > { %v3103_v16 = vsel %vm1642_vm7, %v3100_v44, %v3096_v45 }
 0x334   : > { %v3106_v25 = vadd.f32 %v3103_v16, %v2948_v17 }
 0x336   : > { %v2940_v56 = vpop.permute.xlu0 %2939 }
 0x337   : > { %v2943_v60 = vsel %vm1483_vm6, %v2940_v56, %v2942_v35  ;;  %v2944_v5 = vsel %vm1483_vm6, %v2938_v33, %v2940_v56  ;;  %v9410_v56 = vld [vmem:[%s12543_s6 + $0x30] sm:$0xff] }
 0x338   : > { %v3258_v58 = vpop.permute.xlu1 %3257  ;;  %v2947_v7 = vadd.f32 %v2943_v60, %v2789_v62  ;;  %v2946_v53 = vadd.f32 %v2944_v5, %v2788_v6 }
 0x33a   : > { %v3254_v63 = vpop.permute.xlu0 %3253 }
 0x33b   : > { %v3261_v24 = vsel %vm1801_vm8, %v3258_v58, %v3254_v63 }
 0x33c   : > { %v3098_v8 = vpop.permute.xlu1 %3097  ;;  %v3264_v30 = vadd.f32 %v3261_v24, %v3106_v25 }
 0x33d   : > { %v3101_v10 = vsel %vm1642_vm7, %v3098_v8, %v3100_v44  ;;  %v3102_v11 = vsel %vm1642_vm7, %v3096_v45, %v3098_v8 }
 0x33e   : > { %v3105_v13 = vadd.f32 %v3101_v10, %v2947_v7  ;;  %v3256_v15 = vpop.permute.xlu0 %3255  ;;  %v3104_v20 = vadd.f32 %v3102_v11, %v2946_v53 }
 0x33f   : > { %v3259_v52 = vsel %vm1801_vm8, %v3256_v15, %v3258_v58  ;;  %v3260_v34 = vsel %vm1801_vm8, %v3254_v63, %v3256_v15  ;;  %v9416_v58 = vld [vmem:[%s12543_s6 + $0x40] sm:$0xff] }
 0x340   : > { %v3263_v21 = vadd.f32 %v3259_v52, %v3105_v13  ;;  %v3414_v22 = vpop.permute.xlu1 %3413  ;;  %v3262_v33 = vadd.f32 %v3260_v34, %v3104_v20 }
 0x342   : > { %v3416_v28 = vpop.permute.xlu0 %3415 }
 0x343   : > { %v3417_v29 = vsel %vm1960_vm9, %v3414_v22, %v3416_v28 }
 0x344   : > { %v3421_v35 = vadd.f32 %v3417_v29, %v3263_v21  ;;  %v3412_v36 = vpop.permute.xlu1 %3411 }
 0x345   : > { %v3418_v37 = vsel %vm1960_vm9, %v3412_v36, %v3414_v22  ;;  %v3419_v38 = vsel %vm1960_vm9, %v3416_v28, %v3412_v36 }
 0x346   : > { %vm3424_vm14 = vcmp.gt.f32.partialorder %v3421_v35, 0.0  ;;  %v3427_v39 = vmul.f32 0.1, %v3421_v35  ;;  %v3420_v2 = vadd.f32 %v3418_v37, %v3262_v33  ;;  %v3422_v4 = vadd.f32 %v3419_v38, %v3264_v30 }
 0x348   : > { %v3430_v40 = vsel %vm3424_vm14, %v3421_v35, %v3427_v39  ;;  %vm3423_vm15 = vcmp.gt.f32.partialorder %v3420_v2, 0.0  ;;  %vm3425_vm1 = vcmp.gt.f32.partialorder %v3422_v4, 0.0  ;;  %v3426_v41 = vmul.f32 0.1, %v3420_v2 }
 0x349   : > { %v11248_v3 = vmul.f32 %v3430_v40, %v11004_v14  ;;  %v3428_v42 = vmul.f32 0.1, %v3422_v4  ;;  %v4893_v40 = vld [vmem:[%s12546_s9] sm:$0xff]  ;;  %vm4900_vm14 = vcmask 261120  }
 0x34a   : > { %v3429_v43 = vsel %vm3423_vm15, %v3420_v2, %v3426_v41 }
 0x34b   : > { %v3431_v44 = vsel %vm3425_vm1, %v3422_v4, %v3428_v42  ;;  %v11251_v45 = vmul.f32 %v3429_v43, %v11006_v18  ;;  %3484 = vmatprep.subr.mxu0 %v11248_v3 }
 0x34c   : > { %v11255_v46 = vmul.f32 %v3431_v44, %v11008_v19 }
 0x34d   : > { %3485 = vmatpush1.msra.mxu0 %v11251_v45 }
 0x34e   : > { %9828 = vmatpush3.msra.mxu1 %v11255_v46  ;;  %3486 = vmatprep.subr.mxu0 %v11011_v23 }
 0x34f   : > { %9829 = vmatprep.subr.mxu1 %v10550_v0  ;;  %3487 = vmatpush1.msra.mxu0 %v11014_v26  ;;  %v3451_v42 = vpop.permute.xlu0 %3450 }
 0x350   : > { %9830 = vmatpush3.msra.mxu1 %v11017_v27  ;;  %3488 = vmatprep.subr.mxu0 %v11267_v48 }
 0x351   : > { %9831 = vmatprep.subr.mxu1 %v10550_v0  ;;  %3489 = vmatpush1.msra.mxu0 %v11272_v32 }
 0x352   : > { %9832 = vmatpush3.msra.mxu1 %v11276_v49  ;;  %9393 = vmatmul.mubr.msk.f32.vlgmr.msra.gmra.mxu0 %vm3454_vm10, %v3453_v47 }
 0x353   : > { %9834 = vmatmul.mubr.msk.f32.vlgmr.msra.gmra.mxu1 %vm3454_vm10, %v3453_v47  ;;  %3642 = vmatprep.subr.mxu0 %v11248_v3 }
 0x354   : > { %9836 = vmatprep.subr.mxu1 %v10550_v0  ;;  %3643 = vmatpush1.msra.mxu0 %v11251_v45 }
 0x355   : > { %9837 = vmatpush3.msra.mxu1 %v11255_v46  ;;  %3644 = vmatprep.subr.mxu0 %v11011_v23 }
 0x356   : > { %9838 = vmatprep.subr.mxu1 %v10550_v0  ;;  %3645 = vmatpush1.msra.mxu0 %v11014_v26 }
 0x357   : > { %9839 = vmatpush3.msra.mxu1 %v11017_v27  ;;  %3646 = vmatprep.subr.mxu0 %v11267_v48 }
 0x358   : > { %9840 = vmatprep.subr.mxu1 %v10550_v0  ;;  %3647 = vmatpush1.msra.mxu0 %v11272_v32 }
 0x359   : > { %3680 = vmatprep.mubr.f32.mxu0 %v10550_v0  ;;  %9841 = vmatpush3.msra.mxu1 %v11276_v49 }
 0x35a   : > { %9842 = vmatprep.mubr.msk.f32.mxu1 %vm10551_vm0, %v10550_v0  ;;  %9396 = vmatmul.mubr.msk.f32.vlgmr.msra.gmra.mxu0 %vm3454_vm10, %v9395_v50 }
 0x35b   : > { %9843 = vmatmul.mubr.msk.f32.vlgmr.msra.gmra.mxu1 %vm3454_vm10, %v9395_v50  ;;  %3800 = vmatprep.subr.mxu0 %v11248_v3 }
 0x35c   : > { %9845 = vmatprep.subr.mxu1 %v10550_v0  ;;  %3801 = vmatpush1.msra.mxu0 %v11251_v45 }
 0x35d   : > { %9846 = vmatpush3.msra.mxu1 %v11255_v46  ;;  %3802 = vmatprep.subr.mxu0 %v11011_v23 }
 0x35e   : > { %9847 = vmatprep.subr.mxu1 %v10550_v0  ;;  %3803 = vmatpush1.msra.mxu0 %v11014_v26 }
 0x35f   : > { %9848 = vmatpush3.msra.mxu1 %v11017_v27  ;;  %3804 = vmatprep.subr.mxu0 %v11267_v48 }
 0x360   : > { %9849 = vmatprep.subr.mxu1 %v10550_v0  ;;  %3805 = vmatpush1.msra.mxu0 %v11272_v32 }
 0x361   : > { %3838 = vmatprep.mubr.f32.mxu0 %v10550_v0  ;;  %9850 = vmatpush3.msra.mxu1 %v11276_v49 }
 0x362   : > { %9851 = vmatprep.mubr.msk.f32.mxu1 %vm10551_vm0, %v10550_v0  ;;  %9399 = vmatmul.mubr.msk.f32.vlgmr.msra.gmra.mxu0 %vm3454_vm10, %v9398_v51 }
 0x363   : > { %9852 = vmatmul.mubr.msk.f32.vlgmr.msra.gmra.mxu1 %vm3454_vm10, %v9398_v51  ;;  %3958 = vmatprep.subr.mxu0 %v11248_v3 }
 0x364   : > { %9854 = vmatprep.subr.mxu1 %v10550_v0  ;;  %3959 = vmatpush1.msra.mxu0 %v11251_v45 }
 0x365   : > { %9855 = vmatpush3.msra.mxu1 %v11255_v46  ;;  %3960 = vmatprep.subr.mxu0 %v11011_v23 }
 0x366   : > { %9856 = vmatprep.subr.mxu1 %v10550_v0  ;;  %3961 = vmatpush1.msra.mxu0 %v11014_v26 }
 0x367   : > { %9857 = vmatpush3.msra.mxu1 %v11017_v27  ;;  %3962 = vmatprep.subr.mxu0 %v11267_v48 }
 0x368   : > { %9858 = vmatprep.subr.mxu1 %v10550_v0  ;;  %3963 = vmatpush1.msra.mxu0 %v11272_v32 }
 0x369   : > { %3996 = vmatprep.mubr.f32.mxu0 %v10550_v0  ;;  %9859 = vmatpush3.msra.mxu1 %v11276_v49 }
 0x36a   : > { %9860 = vmatprep.mubr.msk.f32.mxu1 %vm10551_vm0, %v10550_v0  ;;  %9402 = vmatmul.mubr.msk.f32.vlgmr.msra.gmra.mxu0 %vm3454_vm10, %v9401_v54 }
 0x36b   : > { %9861 = vmatmul.mubr.msk.f32.vlgmr.msra.gmra.mxu1 %vm3454_vm10, %v9401_v54  ;;  %4116 = vmatprep.subr.mxu0 %v11248_v3 }
 0x36c   : > { %9863 = vmatprep.subr.mxu1 %v10550_v0  ;;  %4117 = vmatpush1.msra.mxu0 %v11251_v45 }
 0x36d   : > { %9864 = vmatpush3.msra.mxu1 %v11255_v46  ;;  %4118 = vmatprep.subr.mxu0 %v11011_v23 }
 0x36e   : > { %9865 = vmatprep.subr.mxu1 %v10550_v0  ;;  %4119 = vmatpush1.msra.mxu0 %v11014_v26 }
 0x36f   : > { %9866 = vmatpush3.msra.mxu1 %v11017_v27  ;;  %4120 = vmatprep.subr.mxu0 %v11267_v48 }
 0x370   : > { %9867 = vmatprep.subr.mxu1 %v10550_v0  ;;  %4121 = vmatpush1.msra.mxu0 %v11272_v32 }
 0x371   : > { %4154 = vmatprep.mubr.f32.mxu0 %v10550_v0  ;;  %9868 = vmatpush3.msra.mxu1 %v11276_v49 }
 0x372   : > { %9405 = vmatmul.mubr.msk.f32.vlgmr.msra.gmra.mxu0 %vm3454_vm10, %v9404_v31  ;;  %9869 = vmatprep.mubr.msk.f32.mxu1 %vm10551_vm0, %v10550_v0 }
 0x373   : > { %4265 = vmatprep.subr.mxu0 %v11248_v3  ;;  %9872 = vmatprep.subr.mxu1 %v10550_v0 }
 0x374   : > { %9870 = vmatmul.mubr.msk.f32.vlgmr.msra.gmra.mxu1 %vm3454_vm10, %v9404_v31  ;;  %4266 = vmatpush1.msra.mxu0 %v11251_v45 }
 0x375   : > { %9873 = vmatpush3.msra.mxu1 %v11255_v46  ;;  %4267 = vmatprep.subr.mxu0 %v11011_v23 }
 0x376   : > { %9874 = vmatprep.subr.mxu1 %v10550_v0  ;;  %4268 = vmatpush1.msra.mxu0 %v11014_v26 }
 0x377   : > { %9875 = vmatpush3.msra.mxu1 %v11017_v27  ;;  %4269 = vmatprep.subr.mxu0 %v11267_v48 }
 0x378   : > { %9876 = vmatprep.subr.mxu1 %v10550_v0  ;;  %4270 = vmatpush1.msra.mxu0 %v11272_v32 }
 0x379   : > { %4303 = vmatprep.mubr.f32.mxu0 %v10550_v0  ;;  %9877 = vmatpush3.msra.mxu1 %v11276_v49 }
 0x37a   : > { %9878 = vmatprep.mubr.msk.f32.mxu1 %vm10551_vm0, %v10550_v0  ;;  %9408 = vmatmul.mubr.msk.f32.vlgmr.msra.gmra.mxu0 %vm3454_vm10, %v9407_v55 }
 0x37b   : > { %9879 = vmatmul.mubr.msk.f32.vlgmr.msra.gmra.mxu1 %vm3454_vm10, %v9407_v55  ;;  %4423 = vmatprep.subr.mxu0 %v11248_v3 }
 0x37c   : > { %9881 = vmatprep.subr.mxu1 %v10550_v0  ;;  %4424 = vmatpush1.msra.mxu0 %v11251_v45 }
 0x37d   : > { %9882 = vmatpush3.msra.mxu1 %v11255_v46  ;;  %4425 = vmatprep.subr.mxu0 %v11011_v23 }
 0x37e   : > { %9883 = vmatprep.subr.mxu1 %v10550_v0  ;;  %4426 = vmatpush1.msra.mxu0 %v11014_v26 }
 0x37f   : > { %9884 = vmatpush3.msra.mxu1 %v11017_v27  ;;  %4427 = vmatprep.subr.mxu0 %v11267_v48 }
 0x380   : > { %9885 = vmatprep.subr.mxu1 %v10550_v0  ;;  %4428 = vmatpush1.msra.mxu0 %v11272_v32 }
 0x381   : > { %4461 = vmatprep.mubr.f32.mxu0 %v10550_v0  ;;  %9886 = vmatpush3.msra.mxu1 %v11276_v49 }
 0x382   : > { %9411 = vmatmul.mubr.msk.f32.vlgmr.msra.gmra.mxu0 %vm3454_vm10, %v9410_v56  ;;  %9887 = vmatprep.mubr.msk.f32.mxu1 %vm10551_vm0, %v10550_v0 }
 0x383   : > { %4581 = vmatprep.subr.mxu0 %v11248_v3  ;;  %9890 = vmatprep.subr.mxu1 %v10550_v0 }
 0x384   : > { %9888 = vmatmul.mubr.msk.f32.vlgmr.msra.gmra.mxu1 %vm3454_vm10, %v9410_v56  ;;  %4582 = vmatpush1.msra.mxu0 %v11251_v45 }
 0x385   : > { %9891 = vmatpush3.msra.mxu1 %v11255_v46  ;;  %4583 = vmatprep.subr.mxu0 %v11011_v23 }
 0x386   : > { %9892 = vmatprep.subr.mxu1 %v10550_v0  ;;  %4584 = vmatpush1.msra.mxu0 %v11014_v26 }
 0x387   : > { %9893 = vmatpush3.msra.mxu1 %v11017_v27  ;;  %4585 = vmatprep.subr.mxu0 %v11267_v48 }
 0x388   : > { %9894 = vmatprep.subr.mxu1 %v10550_v0  ;;  %4586 = vmatpush1.msra.mxu0 %v11272_v32 }
 0x389   : > { %4619 = vmatprep.mubr.f32.mxu0 %v10550_v0  ;;  %9895 = vmatpush3.msra.mxu1 %v11276_v49 }
 0x38a   : > { %9414 = vmatmul.mubr.msk.f32.vlgmr.msra.gmra.mxu0 %vm3454_vm10, %v9413_v57  ;;  %9896 = vmatprep.mubr.msk.f32.mxu1 %vm10551_vm0, %v10550_v0 }
 0x38b   : > { %4739 = vmatprep.subr.mxu0 %v11248_v3  ;;  %9899 = vmatprep.subr.mxu1 %v10550_v0 }
 0x38c   : > { %9897 = vmatmul.mubr.msk.f32.vlgmr.msra.gmra.mxu1 %vm3454_vm10, %v9413_v57  ;;  %4740 = vmatpush1.msra.mxu0 %v11251_v45 }
 0x38d   : > { %9900 = vmatpush3.msra.mxu1 %v11255_v46  ;;  %4741 = vmatprep.subr.mxu0 %v11011_v23 }
 0x38e   : > { %9901 = vmatprep.subr.mxu1 %v10550_v0  ;;  %4742 = vmatpush1.msra.mxu0 %v11014_v26 }
 0x38f   : > { %9902 = vmatpush3.msra.mxu1 %v11017_v27  ;;  %4743 = vmatprep.subr.mxu0 %v11267_v48 }
 0x390   : > { %4744 = vmatpush1.msra.mxu0 %v11272_v32  ;;  %4777 = vmatprep.mubr.f32.mxu0 %v10550_v0 }
 0x391   : > { %9417 = vmatmul.mubr.msk.f32.vlgmr.msra.gmra.mxu0 %vm3454_vm10, %v9416_v58  ;;  %9903 = vmatprep.subr.mxu1 %v10550_v0 }
 0x392   : > { %9904 = vmatpush3.msra.mxu1 %v11276_v49  ;;  %9905 = vmatprep.mubr.msk.f32.mxu1 %vm10551_vm0, %v10550_v0 }
 0x393   : > { %9906 = vmatmul.mubr.msk.f32.vlgmr.msra.gmra.mxu1 %vm3454_vm10, %v9416_v58  ;;  %9908 = vmatprep.subr.mxu1 %v10550_v0 }
 0x394   : > { %4968 = vmatprep.mubr.f32.mxu0 %v10550_v0  ;;  %9916 = vmatprep.mubr.msk.f32.mxu1 %vm10551_vm0, %v10550_v0 }
 0x412   : > { %v3524_v59 = vpop.f32.mrf.mxu0 }
 0x413   : > { %v3595_v60 = vpop.f32.mrf.mxu1 }
 0x414   : > { %3603 = vrot.lane.b32.xlu1 %v3595_v60, %s10553_s23  ;;  %v3526_v61 = vpop.f32.mrf.mxu0 }
 0x415   : > { %3601 = vrot.lane.b32.xlu0 %v3526_v61, %s10553_s23  ;;  %v9835_v62 = vpop.f32.mrf.mxu1 }
 0x418   : > { %3599 = vrot.lane.b32.xlu1 %v3524_v59, %s10553_s23 }
 0x41a   : > { %v3682_v63 = vpop.f32.mrf.mxu0 }
 0x41b   : > { %v3753_v5 = vpop.f32.mrf.mxu1 }
 0x41c   : > { %3761 = vrot.lane.b32.xlu0 %v3753_v5, %s10554_s29  ;;  %v3684_v6 = vpop.f32.mrf.mxu0 }
 0x41d   : > { %3759 = vrot.lane.b32.xlu1 %v3684_v6, %s10554_s29  ;;  %v9844_v7 = vpop.f32.mrf.mxu1 }
 0x420   : > { %3757 = vrot.lane.b32.xlu0 %v3682_v63, %s10554_s29 }
 0x422   : > { %v3840_v8 = vpop.f32.mrf.mxu0 }
 0x423   : > { %v3911_v9 = vpop.f32.mrf.mxu1 }
 0x424   : > { %3919 = vrot.lane.b32.xlu1 %v3911_v9, %s10555_s28  ;;  %v3842_v10 = vpop.f32.mrf.mxu0 }
 0x425   : > { %3917 = vrot.lane.b32.xlu0 %v3842_v10, %s10555_s28  ;;  %v9853_v11 = vpop.f32.mrf.mxu1 }
 0x428   : > { %3915 = vrot.lane.b32.xlu1 %v3840_v8, %s10555_s28 }
 0x42a   : > { %v3998_v12 = vpop.f32.mrf.mxu0 }
 0x42b   : > { %v4069_v53 = vpop.f32.mrf.mxu1 }
 0x42c   : > { %4077 = vrot.lane.b32.xlu0 %v4069_v53, %s10556_s20  ;;  %v4000_v13 = vpop.f32.mrf.mxu0 }
 0x42d   : > { %4075 = vrot.lane.b32.xlu1 %v4000_v13, %s10556_s20  ;;  %v9862_v15 = vpop.f32.mrf.mxu1 }
 0x430   : > { %4073 = vrot.lane.b32.xlu0 %v3998_v12, %s10556_s20 }
 0x432   : > { %v11457_v16 = vpop.f32.mrf.mxu0 }
 0x434   : > { %v11459_v52 = vpop.f32.mrf.mxu1  ;;  %v11461_v20 = vpop.f32.mrf.mxu0 }
 0x436   : > { %v9871_v17 = vpop.f32.mrf.mxu1 }
 0x43a   : > { %v4305_v21 = vpop.f32.mrf.mxu0 }
 0x43b   : > { %v4376_v22 = vpop.f32.mrf.mxu1  ;;  %4380 = vrot.lane.b32.xlu1 %v4305_v21, %s10557_s24 }
 0x43c   : > { %4384 = vrot.lane.b32.xlu0 %v4376_v22, %s10557_s24  ;;  %v4307_v25 = vpop.f32.mrf.mxu0 }
 0x43d   : > { %v9880_v24 = vpop.f32.mrf.mxu1 }
 0x43f   : > { %4382 = vrot.lane.b32.xlu1 %v4307_v25, %s10557_s24 }
 0x442   : > { %v4463_v28 = vpop.f32.mrf.mxu0 }
 0x443   : > { %4538 = vrot.lane.b32.xlu0 %v4463_v28, %s10558_s27 }
 0x444   : > { %v4534_v34 = vpop.f32.mrf.mxu1  ;;  %v4465_v29 = vpop.f32.mrf.mxu0 }
 0x445   : > { %4542 = vrot.lane.b32.xlu1 %v4534_v34, %s10558_s27 }
 0x446   : > { %v9889_v30 = vpop.f32.mrf.mxu1 }
 0x447   : > { %4540 = vrot.lane.b32.xlu0 %v4465_v29, %s10558_s27 }
 0x44a   : > { %v4621_v33 = vpop.f32.mrf.mxu0 }
 0x44b   : > { %4696 = vrot.lane.b32.xlu1 %v4621_v33, %s10559_s8 }
 0x44c   : > { %v4692_v35 = vpop.f32.mrf.mxu1  ;;  %v4623_v36 = vpop.f32.mrf.mxu0 }
 0x44d   : > { %4700 = vrot.lane.b32.xlu0 %v4692_v35, %s10559_s8 }
 0x44e   : > { %v9898_v37 = vpop.f32.mrf.mxu1 }
 0x44f   : > { %4698 = vrot.lane.b32.xlu1 %v4623_v36, %s10559_s8 }
 0x451   : > { %v4779_v38 = vpop.f32.mrf.mxu0 }
 0x453   : > { %v4781_v39 = vpop.f32.mrf.mxu0  ;;  %v4850_v2 = vpop.f32.mrf.mxu1 }
 0x454   : > { %4858 = vrot.lane.b32.xlu1 %v4850_v2, %s10560_s10  ;;  %4856 = vrot.lane.b32.xlu0 %v4781_v39, %s10560_s10 }
 0x455   : > { %v9907_v4 = vpop.f32.mrf.mxu1 }
 0x458   : > { %4896 = vperm.xlu1 %10354, %v4893_v40   ;;  %4854 = vrot.lane.b32.xlu0 %v4779_v38, %s10560_s10 }
 0x486   : > { %v3604_v41 = vpop.permute.xlu1 %3603 }
 0x487   : > { %v3602_v43 = vpop.permute.xlu0 %3601 }
 0x488   : > { %v3605_v7 = vsel %vm698_vm2, %v3602_v43, %v3604_v41 }
 0x489   : > { %v3610_v15 = vadd.f32 %v3605_v7, %v3451_v42 }
 0x48a   : > { %v3600_v44 = vpop.permute.xlu1 %3599 }
 0x48b   : > { %v3606_v62 = vsel %vm698_vm2, %v3600_v44, %v3602_v43  ;;  %v3607_v8 = vsel %vm698_vm2, %v3604_v41, %v3600_v44 }
 0x48c   : > { %v3609_v5 = vadd.f32 %v3606_v62, %v3451_v42  ;;  %v3608_v17 = vadd.f32 %v3607_v8, %v3451_v42 }
 0x48e   : > { %v3762_v47 = vpop.permute.xlu0 %3761 }
 0x48f   : > { %v3760_v50 = vpop.permute.xlu1 %3759 }
 0x490   : > { %v3763_v12 = vsel %vm857_vm3, %v3760_v50, %v3762_v47 }
 0x491   : > { %v3768_v25 = vadd.f32 %v3763_v12, %v3610_v15 }
 0x492   : > { %v3758_v51 = vpop.permute.xlu0 %3757 }
 0x493   : > { %v3764_v63 = vsel %vm857_vm3, %v3758_v51, %v3760_v50  ;;  %v3765_v53 = vsel %vm857_vm3, %v3762_v47, %v3758_v51 }
 0x494   : > { %v3767_v11 = vadd.f32 %v3764_v63, %v3609_v5  ;;  %v3766_v28 = vadd.f32 %v3765_v53, %v3608_v17 }
 0x496   : > { %v3920_v54 = vpop.permute.xlu1 %3919 }
 0x497   : > { %v3918_v31 = vpop.permute.xlu0 %3917 }
 0x498   : > { %v3921_v22 = vsel %vm1016_vm4, %v3918_v31, %v3920_v54 }
 0x499   : > { %v3926_v36 = vadd.f32 %v3921_v22, %v3768_v25 }
 0x49a   : > { %v3916_v55 = vpop.permute.xlu1 %3915 }
 0x49b   : > { %v3922_v9 = vsel %vm1016_vm4, %v3916_v55, %v3918_v31  ;;  %v3923_v24 = vsel %vm1016_vm4, %v3920_v54, %v3916_v55 }
 0x49c   : > { %v3925_v21 = vadd.f32 %v3922_v9, %v3767_v11  ;;  %v3924_v37 = vadd.f32 %v3923_v24, %v3766_v28 }
 0x49e   : > { %v4078_v56 = vpop.permute.xlu0 %4077 }
 0x49f   : > { %v4076_v57 = vpop.permute.xlu1 %4075 }
 0x4a0   : > { %v4079_v30 = vsel %vm1175_vm5, %v4076_v57, %v4078_v56 }
 0x4a1   : > { %v4084_v39 = vadd.f32 %v4079_v30, %v3926_v36  ;;  %v5216_v30 = vld [vmem:[#allocation6 + $0x10] sm:$0xff]  ;;  %v5681_v36 = vld [vmem:[#allocation6 + $0x28] sm:$0xff] }
 0x4a2   : > { %v4074_v59 = vpop.permute.xlu0 %4073 }
 0x4a3   : > { %v4080_v13 = vsel %vm1175_vm5, %v4074_v59, %v4076_v57  ;;  %v4081_v33 = vsel %vm1175_vm5, %v4078_v56, %v4074_v59  ;;  %v4233_v51 = vadd.f32 %v11459_v52, %v4084_v39  ;;  %v6155_v39 = vld [vmem:[#allocation6 + $0x40] sm:$0xff] }
 0x4a4   : > { %v4083_v34 = vadd.f32 %v4080_v13, %v3925_v21  ;;  %v4082_v2 = vadd.f32 %v4081_v33, %v3924_v37  ;;  %v5374_v33 = vld [vmem:[#allocation6 + $0x18] sm:$0xff]  ;;  %v5839_v37 = vld [vmem:[#allocation6 + $0x30] sm:$0xff] }
 0x4a6   : > { %v4232_v4 = vadd.f32 %v11461_v20, %v4083_v34  ;;  %v4231_v54 = vadd.f32 %v11457_v16, %v4082_v2  ;;  %v4899_v34 = vld [vmem:[#allocation6] sm:$0xff] }
 0x4ad   : > { %v4381_v58 = vpop.permute.xlu1 %4380 }
 0x4ae   : > { %v4385_v61 = vpop.permute.xlu0 %4384 }
 0x4af   : > { %v4388_v44 = vsel %vm1483_vm6, %v4385_v61, %v4381_v58 }
 0x4b0   : > { %v4391_v56 = vadd.f32 %v4388_v44, %v4233_v51 }
 0x4b1   : > { %v4383_v60 = vpop.permute.xlu1 %4382 }
 0x4b2   : > { %v4386_v38 = vsel %vm1483_vm6, %v4383_v60, %v4385_v61  ;;  %v4387_v47 = vsel %vm1483_vm6, %v4381_v58, %v4383_v60 }
 0x4b3   : > { %v4390_v42 = vadd.f32 %v4386_v38, %v4232_v4  ;;  %v4389_v57 = vadd.f32 %v4387_v47, %v4231_v54  ;;  %v5997_v38 = vld [vmem:[#allocation6 + $0x38] sm:$0xff] }
 0x4b5   : > { %v4539_v6 = vpop.permute.xlu0 %4538 }
 0x4b7   : > { %v4543_v10 = vpop.permute.xlu1 %4542 }
 0x4b8   : > { %v4546_v31 = vsel %vm1642_vm7, %v4543_v10, %v4539_v6 }
 0x4b9   : > { %v4541_v29 = vpop.permute.xlu0 %4540  ;;  %v4549_v60 = vadd.f32 %v4546_v31, %v4391_v56 }
 0x4ba   : > { %v4544_v40 = vsel %vm1642_vm7, %v4541_v29, %v4543_v10  ;;  %v4545_v55 = vsel %vm1642_vm7, %v4539_v6, %v4541_v29  ;;  %v5058_v29 = vld [vmem:[#allocation6 + $0x8] sm:$0xff] }
 0x4bb   : > { %v4548_v20 = vadd.f32 %v4544_v40, %v4390_v42  ;;  %v4547_v63 = vadd.f32 %v4545_v55, %v4389_v57 }
 0x4bd   : > { %v4697_v35 = vpop.permute.xlu1 %4696 }
 0x4bf   : > { %v4701_v43 = vpop.permute.xlu0 %4700 }
 0x4c0   : > { %v4704_v58 = vsel %vm1801_vm8, %v4701_v43, %v4697_v35 }
 0x4c1   : > { %v4699_v41 = vpop.permute.xlu1 %4698  ;;  %v4707_v7 = vadd.f32 %v4704_v58, %v4549_v60 }
 0x4c2   : > { %v4702_v50 = vsel %vm1801_vm8, %v4699_v41, %v4701_v43  ;;  %v4703_v52 = vsel %vm1801_vm8, %v4697_v35, %v4699_v41  ;;  %v5532_v35 = vld [vmem:[#allocation6 + $0x20] sm:$0xff] }
 0x4c3   : > { %v4706_v59 = vadd.f32 %v4702_v50, %v4548_v20  ;;  %v4705_v8 = vadd.f32 %v4703_v52, %v4547_v63 }
 0x4c6   : > { %v4859_v61 = vpop.permute.xlu1 %4858  ;;  %v4857_v62 = vpop.permute.xlu0 %4856 }
 0x4c7   : > { %v4860_v16 = vsel %vm1960_vm9, %v4857_v62, %v4859_v61 }
 0x4c8   : > { %v4864_v5 = vadd.f32 %v4860_v16, %v4706_v59 }
 0x4ca   : > { %vm4867_vm11 = vcmp.gt.f32.partialorder %v4864_v5, 0.0  ;;  %v4870_v6 = vmul.f32 0.1, %v4864_v5  ;;  %v4855_v9 = vpop.permute.xlu0 %4854 }
 0x4cb   : > { %v4861_v10 = vsel %vm1960_vm9, %v4855_v9, %v4857_v62  ;;  %v4862_v11 = vsel %vm1960_vm9, %v4859_v61, %v4855_v9 }
 0x4cc   : > { %v4873_v12 = vsel %vm4867_vm11, %v4864_v5, %v4870_v6  ;;  %v4863_v53 = vadd.f32 %v4861_v10, %v4705_v8  ;;  %v4865_v13 = vadd.f32 %v4862_v11, %v4707_v7  ;;  %vm6349_vm11 = vcmask 326656  }
 0x4cd   : > { %v11530_v15 = vmul.f32 %v4873_v12, %v11004_v14 }
 0x4ce   : > { %vm4866_vm12 = vcmp.gt.f32.partialorder %v4863_v53, 0.0  ;;  %vm4868_vm13 = vcmp.gt.f32.partialorder %v4865_v13, 0.0  ;;  %v4869_v17 = vmul.f32 0.1, %v4863_v53  ;;  %v4871_v21 = vmul.f32 0.1, %v4865_v13 }
 0x4cf   : > { %4928 = vmatprep.subr.mxu0 %v11530_v15 }
 0x4d0   : > { %v4872_v22 = vsel %vm4866_vm12, %v4863_v53, %v4869_v17  ;;  %v4874_v24 = vsel %vm4868_vm13, %v4865_v13, %v4871_v21  ;;  %v6342_v53 = vld [vmem:[%s12548_s11] sm:$0xff] }
 0x4d1   : > { %v11534_v25 = vmul.f32 %v4872_v22, %v11006_v18  ;;  %v11537_v28 = vmul.f32 %v4874_v24, %v11008_v19 }
 0x4d3   : > { %4929 = vmatpush1.msra.mxu0 %v11534_v25  ;;  %9909 = vmatpush3.msra.mxu1 %v11537_v28  ;;  %v4897_v21 = vpop.permute.xlu1 %4896 }
 0x4d4   : > { %4930 = vmatprep.subr.mxu0 %v11248_v3  ;;  %9910 = vmatprep.subr.mxu1 %v10550_v0 }
 0x4d5   : > { %4931 = vmatpush1.msra.mxu0 %v11251_v45  ;;  %9911 = vmatpush3.msra.mxu1 %v11255_v46 }
 0x4d6   : > { %4932 = vmatprep.subr.mxu0 %v11011_v23  ;;  %9912 = vmatprep.subr.mxu1 %v10550_v0 }
 0x4d7   : > { %4933 = vmatpush1.msra.mxu0 %v11014_v26  ;;  %9913 = vmatpush3.msra.mxu1 %v11017_v27 }
 0x4d8   : > { %4934 = vmatprep.subr.mxu0 %v11267_v48  ;;  %9914 = vmatprep.subr.mxu1 %v10550_v0 }
 0x4d9   : > { %4935 = vmatpush1.msra.mxu0 %v11272_v32  ;;  %9915 = vmatpush3.msra.mxu1 %v11276_v49 }
 0x4da   : > { %9419 = vmatmul.mubr.msk.f32.vlgmr.msra.gmra.mxu0 %vm4900_vm14, %v4899_v34  ;;  %9917 = vmatmul.mubr.msk.f32.vlgmr.msra.gmra.mxu1 %vm4900_vm14, %v4899_v34 }
 0x4db   : > { %5086 = vmatprep.subr.mxu0 %v11530_v15  ;;  %9919 = vmatprep.subr.mxu1 %v10550_v0 }
 0x4dc   : > { %5087 = vmatpush1.msra.mxu0 %v11534_v25  ;;  %9920 = vmatpush3.msra.mxu1 %v11537_v28 }
 0x4dd   : > { %5088 = vmatprep.subr.mxu0 %v11248_v3  ;;  %9921 = vmatprep.subr.mxu1 %v10550_v0 }
 0x4de   : > { %5089 = vmatpush1.msra.mxu0 %v11251_v45  ;;  %9922 = vmatpush3.msra.mxu1 %v11255_v46 }
 0x4df   : > { %5090 = vmatprep.subr.mxu0 %v11011_v23  ;;  %9923 = vmatprep.subr.mxu1 %v10550_v0 }
 0x4e0   : > { %5091 = vmatpush1.msra.mxu0 %v11014_v26  ;;  %9924 = vmatpush3.msra.mxu1 %v11017_v27 }
 0x4e1   : > { %5092 = vmatprep.subr.mxu0 %v11267_v48  ;;  %9925 = vmatprep.subr.mxu1 %v10550_v0 }
 0x4e2   : > { %5093 = vmatpush1.msra.mxu0 %v11272_v32  ;;  %5126 = vmatprep.mubr.f32.mxu0 %v10550_v0 }
 0x4e3   : > { %9926 = vmatpush3.msra.mxu1 %v11276_v49  ;;  %9927 = vmatprep.mubr.msk.f32.mxu1 %vm10551_vm0, %v10550_v0 }
 0x4e4   : > { %9421 = vmatmul.mubr.msk.f32.vlgmr.msra.gmra.mxu0 %vm4900_vm14, %v5058_v29  ;;  %9928 = vmatmul.mubr.msk.f32.vlgmr.msra.gmra.mxu1 %vm4900_vm14, %v5058_v29 }
 0x4e5   : > { %5244 = vmatprep.subr.mxu0 %v11530_v15  ;;  %9930 = vmatprep.subr.mxu1 %v10550_v0 }
 0x4e6   : > { %5245 = vmatpush1.msra.mxu0 %v11534_v25  ;;  %9931 = vmatpush3.msra.mxu1 %v11537_v28 }
 0x4e7   : > { %5246 = vmatprep.subr.mxu0 %v11248_v3  ;;  %9932 = vmatprep.subr.mxu1 %v10550_v0 }
 0x4e8   : > { %5247 = vmatpush1.msra.mxu0 %v11251_v45  ;;  %9933 = vmatpush3.msra.mxu1 %v11255_v46 }
 0x4e9   : > { %5248 = vmatprep.subr.mxu0 %v11011_v23  ;;  %9934 = vmatprep.subr.mxu1 %v10550_v0 }
 0x4ea   : > { %5249 = vmatpush1.msra.mxu0 %v11014_v26  ;;  %9935 = vmatpush3.msra.mxu1 %v11017_v27 }
 0x4eb   : > { %5250 = vmatprep.subr.mxu0 %v11267_v48  ;;  %9936 = vmatprep.subr.mxu1 %v10550_v0 }
 0x4ec   : > { %5251 = vmatpush1.msra.mxu0 %v11272_v32  ;;  %5284 = vmatprep.mubr.f32.mxu0 %v10550_v0 }
 0x4ed   : > { %9937 = vmatpush3.msra.mxu1 %v11276_v49  ;;  %9938 = vmatprep.mubr.msk.f32.mxu1 %vm10551_vm0, %v10550_v0 }
 0x4ee   : > { %9423 = vmatmul.mubr.msk.f32.vlgmr.msra.gmra.mxu0 %vm4900_vm14, %v5216_v30  ;;  %9939 = vmatmul.mubr.msk.f32.vlgmr.msra.gmra.mxu1 %vm4900_vm14, %v5216_v30 }
 0x4ef   : > { %5402 = vmatprep.subr.mxu0 %v11530_v15  ;;  %9941 = vmatprep.subr.mxu1 %v10550_v0 }
 0x4f0   : > { %5403 = vmatpush1.msra.mxu0 %v11534_v25  ;;  %9942 = vmatpush3.msra.mxu1 %v11537_v28 }
 0x4f1   : > { %5404 = vmatprep.subr.mxu0 %v11248_v3  ;;  %9943 = vmatprep.subr.mxu1 %v10550_v0 }
 0x4f2   : > { %5405 = vmatpush1.msra.mxu0 %v11251_v45  ;;  %9944 = vmatpush3.msra.mxu1 %v11255_v46 }
 0x4f3   : > { %5406 = vmatprep.subr.mxu0 %v11011_v23  ;;  %9945 = vmatprep.subr.mxu1 %v10550_v0 }
 0x4f4   : > { %5407 = vmatpush1.msra.mxu0 %v11014_v26  ;;  %9946 = vmatpush3.msra.mxu1 %v11017_v27 }
 0x4f5   : > { %5408 = vmatprep.subr.mxu0 %v11267_v48  ;;  %9947 = vmatprep.subr.mxu1 %v10550_v0 }
 0x4f6   : > { %5409 = vmatpush1.msra.mxu0 %v11272_v32  ;;  %5442 = vmatprep.mubr.f32.mxu0 %v10550_v0 }
 0x4f7   : > { %9948 = vmatpush3.msra.mxu1 %v11276_v49  ;;  %9949 = vmatprep.mubr.msk.f32.mxu1 %vm10551_vm0, %v10550_v0 }
 0x4f8   : > { %9425 = vmatmul.mubr.msk.f32.vlgmr.msra.gmra.mxu0 %vm4900_vm14, %v5374_v33  ;;  %9950 = vmatmul.mubr.msk.f32.vlgmr.msra.gmra.mxu1 %vm4900_vm14, %v5374_v33 }
 0x4f9   : > { %5560 = vmatprep.subr.mxu0 %v11530_v15  ;;  %9952 = vmatprep.subr.mxu1 %v10550_v0 }
 0x4fa   : > { %5561 = vmatpush1.msra.mxu0 %v11534_v25  ;;  %9953 = vmatpush3.msra.mxu1 %v11537_v28 }
 0x4fb   : > { %5562 = vmatprep.subr.mxu0 %v11248_v3  ;;  %9954 = vmatprep.subr.mxu1 %v10550_v0 }
 0x4fc   : > { %5563 = vmatpush1.msra.mxu0 %v11251_v45  ;;  %9955 = vmatpush3.msra.mxu1 %v11255_v46 }
 0x4fd   : > { %5564 = vmatprep.subr.mxu0 %v11011_v23  ;;  %9956 = vmatprep.subr.mxu1 %v10550_v0 }
 0x4fe   : > { %5565 = vmatpush1.msra.mxu0 %v11014_v26  ;;  %9957 = vmatpush3.msra.mxu1 %v11017_v27 }
 0x4ff   : > { %5566 = vmatprep.subr.mxu0 %v11267_v48  ;;  %9958 = vmatprep.subr.mxu1 %v10550_v0 }
 0x500   : > { %5567 = vmatpush1.msra.mxu0 %v11272_v32  ;;  %5600 = vmatprep.mubr.f32.mxu0 %v10550_v0 }
 0x501   : > { %9959 = vmatpush3.msra.mxu1 %v11276_v49  ;;  %9427 = vmatmul.mubr.msk.f32.vlgmr.msra.gmra.mxu0 %vm4900_vm14, %v5532_v35 }
 0x502   : > { %9960 = vmatprep.mubr.msk.f32.mxu1 %vm10551_vm0, %v10550_v0  ;;  %5709 = vmatprep.subr.mxu0 %v11530_v15 }
 0x503   : > { %9963 = vmatprep.subr.mxu1 %v10550_v0  ;;  %9961 = vmatmul.mubr.msk.f32.vlgmr.msra.gmra.mxu1 %vm4900_vm14, %v5532_v35 }
 0x504   : > { %5710 = vmatpush1.msra.mxu0 %v11534_v25  ;;  %9964 = vmatpush3.msra.mxu1 %v11537_v28 }
 0x505   : > { %5711 = vmatprep.subr.mxu0 %v11248_v3  ;;  %9965 = vmatprep.subr.mxu1 %v10550_v0 }
 0x506   : > { %5712 = vmatpush1.msra.mxu0 %v11251_v45  ;;  %9966 = vmatpush3.msra.mxu1 %v11255_v46 }
 0x507   : > { %5713 = vmatprep.subr.mxu0 %v11011_v23  ;;  %9967 = vmatprep.subr.mxu1 %v10550_v0 }
 0x508   : > { %5714 = vmatpush1.msra.mxu0 %v11014_v26  ;;  %9968 = vmatpush3.msra.mxu1 %v11017_v27 }
 0x509   : > { %5715 = vmatprep.subr.mxu0 %v11267_v48  ;;  %9969 = vmatprep.subr.mxu1 %v10550_v0 }
 0x50a   : > { %5716 = vmatpush1.msra.mxu0 %v11272_v32  ;;  %5749 = vmatprep.mubr.f32.mxu0 %v10550_v0 }
 0x50b   : > { %9970 = vmatpush3.msra.mxu1 %v11276_v49  ;;  %9971 = vmatprep.mubr.msk.f32.mxu1 %vm10551_vm0, %v10550_v0 }
 0x50c   : > { %9429 = vmatmul.mubr.msk.f32.vlgmr.msra.gmra.mxu0 %vm4900_vm14, %v5681_v36  ;;  %9972 = vmatmul.mubr.msk.f32.vlgmr.msra.gmra.mxu1 %vm4900_vm14, %v5681_v36 }
 0x50d   : > { %5867 = vmatprep.subr.mxu0 %v11530_v15  ;;  %9974 = vmatprep.subr.mxu1 %v10550_v0 }
 0x50e   : > { %5868 = vmatpush1.msra.mxu0 %v11534_v25  ;;  %9975 = vmatpush3.msra.mxu1 %v11537_v28 }
 0x50f   : > { %5869 = vmatprep.subr.mxu0 %v11248_v3  ;;  %9976 = vmatprep.subr.mxu1 %v10550_v0 }
 0x510   : > { %5870 = vmatpush1.msra.mxu0 %v11251_v45  ;;  %9977 = vmatpush3.msra.mxu1 %v11255_v46 }
 0x511   : > { %5871 = vmatprep.subr.mxu0 %v11011_v23  ;;  %9978 = vmatprep.subr.mxu1 %v10550_v0 }
 0x512   : > { %5872 = vmatpush1.msra.mxu0 %v11014_v26  ;;  %9979 = vmatpush3.msra.mxu1 %v11017_v27 }
 0x513   : > { %5873 = vmatprep.subr.mxu0 %v11267_v48  ;;  %9980 = vmatprep.subr.mxu1 %v10550_v0 }
 0x514   : > { %5874 = vmatpush1.msra.mxu0 %v11272_v32  ;;  %5907 = vmatprep.mubr.f32.mxu0 %v10550_v0 }
 0x515   : > { %9981 = vmatpush3.msra.mxu1 %v11276_v49  ;;  %9982 = vmatprep.mubr.msk.f32.mxu1 %vm10551_vm0, %v10550_v0 }
 0x516   : > { %9431 = vmatmul.mubr.msk.f32.vlgmr.msra.gmra.mxu0 %vm4900_vm14, %v5839_v37  ;;  %9983 = vmatmul.mubr.msk.f32.vlgmr.msra.gmra.mxu1 %vm4900_vm14, %v5839_v37 }
 0x517   : > { %6025 = vmatprep.subr.mxu0 %v11530_v15  ;;  %9985 = vmatprep.subr.mxu1 %v10550_v0 }
 0x518   : > { %6026 = vmatpush1.msra.mxu0 %v11534_v25  ;;  %9986 = vmatpush3.msra.mxu1 %v11537_v28 }
 0x519   : > { %6027 = vmatprep.subr.mxu0 %v11248_v3  ;;  %9987 = vmatprep.subr.mxu1 %v10550_v0 }
 0x51a   : > { %6028 = vmatpush1.msra.mxu0 %v11251_v45  ;;  %9988 = vmatpush3.msra.mxu1 %v11255_v46 }
 0x51b   : > { %6029 = vmatprep.subr.mxu0 %v11011_v23  ;;  %9989 = vmatprep.subr.mxu1 %v10550_v0 }
 0x51c   : > { %6030 = vmatpush1.msra.mxu0 %v11014_v26  ;;  %9990 = vmatpush3.msra.mxu1 %v11017_v27 }
 0x51d   : > { %6031 = vmatprep.subr.mxu0 %v11267_v48  ;;  %9991 = vmatprep.subr.mxu1 %v10550_v0 }
 0x51e   : > { %6032 = vmatpush1.msra.mxu0 %v11272_v32  ;;  %6065 = vmatprep.mubr.f32.mxu0 %v10550_v0 }
 0x51f   : > { %9992 = vmatpush3.msra.mxu1 %v11276_v49  ;;  %9993 = vmatprep.mubr.msk.f32.mxu1 %vm10551_vm0, %v10550_v0 }
 0x520   : > { %9433 = vmatmul.mubr.msk.f32.vlgmr.msra.gmra.mxu0 %vm4900_vm14, %v5997_v38  ;;  %9994 = vmatmul.mubr.msk.f32.vlgmr.msra.gmra.mxu1 %vm4900_vm14, %v5997_v38 }
 0x521   : > { %6183 = vmatprep.subr.mxu0 %v11530_v15  ;;  %9996 = vmatprep.subr.mxu1 %v10550_v0 }
 0x522   : > { %6184 = vmatpush1.msra.mxu0 %v11534_v25  ;;  %9997 = vmatpush3.msra.mxu1 %v11537_v28 }
 0x523   : > { %6185 = vmatprep.subr.mxu0 %v11248_v3  ;;  %9998 = vmatprep.subr.mxu1 %v10550_v0 }
 0x524   : > { %6186 = vmatpush1.msra.mxu0 %v11251_v45  ;;  %9999 = vmatpush3.msra.mxu1 %v11255_v46 }
 0x525   : > { %6187 = vmatprep.subr.mxu0 %v11011_v23  ;;  %10000 = vmatprep.subr.mxu1 %v10550_v0 }
 0x526   : > { %6188 = vmatpush1.msra.mxu0 %v11014_v26  ;;  %10001 = vmatpush3.msra.mxu1 %v11017_v27 }
 0x527   : > { %6189 = vmatprep.subr.mxu0 %v11267_v48  ;;  %10002 = vmatprep.subr.mxu1 %v10550_v0 }
 0x528   : > { %6190 = vmatpush1.msra.mxu0 %v11272_v32  ;;  %6223 = vmatprep.mubr.f32.mxu0 %v10550_v0 }
 0x529   : > { %10003 = vmatpush3.msra.mxu1 %v11276_v49  ;;  %10004 = vmatprep.mubr.msk.f32.mxu1 %vm10551_vm0, %v10550_v0 }
 0x52a   : > { %9435 = vmatmul.mubr.msk.f32.vlgmr.msra.gmra.mxu0 %vm4900_vm14, %v6155_v39  ;;  %10005 = vmatmul.mubr.msk.f32.vlgmr.msra.gmra.mxu1 %vm4900_vm14, %v6155_v39 }
 0x52b   : > { %10007 = vmatprep.subr.mxu1 %v10550_v0  ;;  %6417 = vmatprep.mubr.f32.mxu0 %v10550_v0 }
 0x52c   : > { %10017 = vmatprep.mubr.msk.f32.mxu1 %vm10551_vm0, %v10550_v0 }
 0x59a   : > { %v4970_v48 = vpop.f32.mrf.mxu0  ;;  %v5041_v32 = vpop.f32.mrf.mxu1 }
 0x59b   : > { %5049 = vrot.lane.b32.xlu0 %v5041_v32, %s10553_s23 }
 0x59c   : > { %v4972_v2 = vpop.f32.mrf.mxu0  ;;  %v9918_v49 = vpop.f32.mrf.mxu1 }
 0x59d   : > { %5047 = vrot.lane.b32.xlu1 %v4972_v2, %s10553_s23 }
 0x59f   : > { %5045 = vrot.lane.b32.xlu0 %v4970_v48, %s10553_s23 }
 0x5a4   : > { %v5128_v4 = vpop.f32.mrf.mxu0  ;;  %v5199_v40 = vpop.f32.mrf.mxu1 }
 0x5a5   : > { %5207 = vrot.lane.b32.xlu1 %v5199_v40, %s10554_s29 }
 0x5a6   : > { %v5130_v41 = vpop.f32.mrf.mxu0  ;;  %v9929_v42 = vpop.f32.mrf.mxu1 }
 0x5a7   : > { %5205 = vrot.lane.b32.xlu0 %v5130_v41, %s10554_s29 }
 0x5a9   : > { %5203 = vrot.lane.b32.xlu1 %v5128_v4, %s10554_s29 }
 0x5ae   : > { %v5286_v43 = vpop.f32.mrf.mxu0  ;;  %v5357_v44 = vpop.f32.mrf.mxu1 }
 0x5af   : > { %5365 = vrot.lane.b32.xlu0 %v5357_v44, %s10555_s28 }
 0x5b0   : > { %v5288_v47 = vpop.f32.mrf.mxu0  ;;  %v9940_v50 = vpop.f32.mrf.mxu1 }
 0x5b1   : > { %5363 = vrot.lane.b32.xlu1 %v5288_v47, %s10555_s28 }
 0x5b3   : > { %5361 = vrot.lane.b32.xlu0 %v5286_v43, %s10555_s28 }
 0x5b8   : > { %v5444_v51 = vpop.f32.mrf.mxu0  ;;  %v5515_v54 = vpop.f32.mrf.mxu1 }
 0x5b9   : > { %5523 = vrot.lane.b32.xlu1 %v5515_v54, %s10556_s20 }
 0x5ba   : > { %v5446_v20 = vpop.f32.mrf.mxu0  ;;  %v9951_v31 = vpop.f32.mrf.mxu1 }
 0x5bb   : > { %5521 = vrot.lane.b32.xlu0 %v5446_v20, %s10556_s20 }
 0x5bd   : > { %5519 = vrot.lane.b32.xlu1 %v5444_v51, %s10556_s20 }
 0x5c1   : > { %v11741_v57 = vpop.f32.mrf.mxu0 }
 0x5c3   : > { %v11739_v55 = vpop.f32.mrf.mxu1  ;;  %v11743_v59 = vpop.f32.mrf.mxu0 }
 0x5c5   : > { %v9962_v56 = vpop.f32.mrf.mxu1 }
 0x5cc   : > { %v5751_v61 = vpop.f32.mrf.mxu0  ;;  %v5822_v62 = vpop.f32.mrf.mxu1 }
 0x5cd   : > { %5830 = vrot.lane.b32.xlu1 %v5822_v62, %s10557_s24  ;;  %5826 = vrot.lane.b32.xlu0 %v5751_v61, %s10557_s24 }
 0x5ce   : > { %v9973_v58 = vpop.f32.mrf.mxu1  ;;  %v5753_v52 = vpop.f32.mrf.mxu0 }
 0x5d1   : > { %5828 = vrot.lane.b32.xlu0 %v5753_v52, %s10557_s24 }
 0x5d6   : > { %v5909_v16 = vpop.f32.mrf.mxu0  ;;  %v5980_v60 = vpop.f32.mrf.mxu1 }
 0x5d7   : > { %5988 = vrot.lane.b32.xlu0 %v5980_v60, %s10558_s27  ;;  %5984 = vrot.lane.b32.xlu1 %v5909_v16, %s10558_s27 }
 0x5d8   : > { %v9984_v63 = vpop.f32.mrf.mxu1  ;;  %v5911_v5 = vpop.f32.mrf.mxu0 }
 0x5db   : > { %5986 = vrot.lane.b32.xlu1 %v5911_v5, %s10558_s27 }
 0x5e0   : > { %v6067_v7 = vpop.f32.mrf.mxu0  ;;  %v6138_v8 = vpop.f32.mrf.mxu1 }
 0x5e1   : > { %6146 = vrot.lane.b32.xlu1 %v6138_v8, %s10559_s8  ;;  %6142 = vrot.lane.b32.xlu0 %v6067_v7, %s10559_s8 }
 0x5e2   : > { %v9995_v6 = vpop.f32.mrf.mxu1  ;;  %v6069_v9 = vpop.f32.mrf.mxu0 }
 0x5e5   : > { %6144 = vrot.lane.b32.xlu0 %v6069_v9, %s10559_s8 }
 0x5ea   : > { %v6225_v10 = vpop.f32.mrf.mxu0  ;;  %v6296_v11 = vpop.f32.mrf.mxu1 }
 0x5eb   : > { %6304 = vrot.lane.b32.xlu0 %v6296_v11, %s10560_s10 }
 0x5ec   : > { %v6227_v12 = vpop.f32.mrf.mxu0  ;;  %v10006_v13 = vpop.f32.mrf.mxu1 }
 0x5ed   : > { %6302 = vrot.lane.b32.xlu1 %v6227_v12, %s10560_s10 }
 0x5ef   : > { %6345 = vperm.xlu0 %10353, %v6342_v53  }
 0x5f1   : > { %6300 = vrot.lane.b32.xlu1 %v6225_v10, %s10560_s10 }
 0x60d   : > { %v5050_v17 = vpop.permute.xlu0 %5049 }
 0x60f   : > { %v5048_v24 = vpop.permute.xlu1 %5047 }
 0x610   : > { %v5051_v43 = vsel %vm698_vm2, %v5048_v24, %v5050_v17 }
 0x611   : > { %v5046_v22 = vpop.permute.xlu0 %5045  ;;  %v5056_v31 = vadd.f32 %v5051_v43, %v4897_v21 }
 0x612   : > { %v5052_v49 = vsel %vm698_vm2, %v5046_v22, %v5048_v24  ;;  %v5053_v44 = vsel %vm698_vm2, %v5050_v17, %v5046_v22 }
 0x613   : > { %v5055_v40 = vadd.f32 %v5052_v49, %v4897_v21  ;;  %v5054_v56 = vadd.f32 %v5053_v44, %v4897_v21 }
 0x617   : > { %v5208_v29 = vpop.permute.xlu1 %5207 }
 0x619   : > { %v5206_v34 = vpop.permute.xlu0 %5205 }
 0x61a   : > { %v5209_v51 = vsel %vm857_vm3, %v5206_v34, %v5208_v29 }
 0x61b   : > { %v5204_v33 = vpop.permute.xlu1 %5203  ;;  %v5214_v16 = vadd.f32 %v5209_v51, %v5056_v31 }
 0x61c   : > { %v5210_v4 = vsel %vm857_vm3, %v5204_v33, %v5206_v34  ;;  %v5211_v54 = vsel %vm857_vm3, %v5208_v29, %v5204_v33 }
 0x61d   : > { %v5213_v50 = vadd.f32 %v5210_v4, %v5055_v40  ;;  %v5212_v60 = vadd.f32 %v5211_v54, %v5054_v56 }
 0x621   : > { %v5366_v30 = vpop.permute.xlu0 %5365 }
 0x623   : > { %v5364_v36 = vpop.permute.xlu1 %5363 }
 0x624   : > { %v5367_v58 = vsel %vm1016_vm4, %v5364_v36, %v5366_v30 }
 0x625   : > { %v5362_v35 = vpop.permute.xlu0 %5361  ;;  %v5372_v6 = vadd.f32 %v5367_v58, %v5214_v16 }
 0x626   : > { %v5368_v47 = vsel %vm1016_vm4, %v5362_v35, %v5364_v36  ;;  %v5369_v52 = vsel %vm1016_vm4, %v5366_v30, %v5362_v35 }
 0x627   : > { %v5371_v61 = vadd.f32 %v5368_v47, %v5213_v50  ;;  %v5370_v9 = vadd.f32 %v5369_v52, %v5212_v60  ;;  %v6348_v60 = vld [vmem:[#allocation8] sm:$0xff] }
 0x62b   : > { %v5524_v38 = vpop.permute.xlu1 %5523 }
 0x62d   : > { %v5522_v37 = vpop.permute.xlu0 %5521 }
 0x62e   : > { %v5525_v7 = vsel %vm1175_vm5, %v5522_v37, %v5524_v38 }
 0x62f   : > { %v5520_v48 = vpop.permute.xlu1 %5519  ;;  %v5530_v11 = vadd.f32 %v5525_v7, %v5372_v6  ;;  %v11845_v7 = vld [vmem:[%s10769_s14 + $0x10] sm:$0xff] }
 0x630   : > { %v5526_v20 = vsel %vm1175_vm5, %v5520_v48, %v5522_v37  ;;  %v5527_v8 = vsel %vm1175_vm5, %v5524_v38, %v5520_v48  ;;  %v6665_v6 = vld [vmem:[#allocation8 + $0x10] sm:$0xff] }
 0x631   : > { %v5529_v63 = vadd.f32 %v5526_v20, %v5371_v61  ;;  %v5528_v12 = vadd.f32 %v5527_v8, %v5370_v9  ;;  %v5679_v30 = vadd.f32 %v11739_v55, %v5530_v11  ;;  %v6507_v8 = vld [vmem:[#allocation8 + $0x8] sm:$0xff]  ;;  %v6823_v9 = vld [vmem:[#allocation8 + $0x18] sm:$0xff] }
 0x632   : > { %v7130_v11 = vld [vmem:[#allocation8 + $0x28] sm:$0xff] }
 0x633   : > { %v5678_v53 = vadd.f32 %v11743_v59, %v5529_v63  ;;  %v5677_v33 = vadd.f32 %v11741_v57, %v5528_v12  ;;  %v11836_v63 = vld [vmem:[%s10769_s14 + $0x8] sm:$0xff] }
 0x634   : > { %v7288_v12 = vld [vmem:[#allocation8 + $0x30] sm:$0xff] }
 0x63f   : > { %v5827_v39 = vpop.permute.xlu0 %5826  ;;  %v5831_v2 = vpop.permute.xlu1 %5830 }
 0x640   : > { %v5834_v24 = vsel %vm1483_vm6, %v5831_v2, %v5827_v39 }
 0x641   : > { %v5837_v38 = vadd.f32 %v5834_v24, %v5679_v30 }
 0x643   : > { %v5829_v32 = vpop.permute.xlu0 %5828 }
 0x644   : > { %v5832_v10 = vsel %vm1483_vm6, %v5829_v32, %v5831_v2  ;;  %v5833_v34 = vsel %vm1483_vm6, %v5827_v39, %v5829_v32 }
 0x645   : > { %v5836_v21 = vadd.f32 %v5832_v10, %v5678_v53  ;;  %v5835_v48 = vadd.f32 %v5833_v34, %v5677_v33  ;;  %v6981_v10 = vld [vmem:[#allocation8 + $0x20] sm:$0xff]  ;;  %v7446_v53 = vld [vmem:[#allocation8 + $0x38] sm:$0xff] }
 0x649   : > { %v5989_v41 = vpop.permute.xlu0 %5988  ;;  %v5985_v42 = vpop.permute.xlu1 %5984 }
 0x64a   : > { %v5992_v36 = vsel %vm1642_vm7, %v5989_v41, %v5985_v42 }
 0x64b   : > { %v5995_v32 = vadd.f32 %v5992_v36, %v5837_v38 }
 0x64d   : > { %v5987_v5 = vpop.permute.xlu1 %5986 }
 0x64e   : > { %v5990_v17 = vsel %vm1642_vm7, %v5987_v5, %v5989_v41  ;;  %v5991_v37 = vsel %vm1642_vm7, %v5985_v42, %v5987_v5  ;;  %v11841_v5 = vld [vmem:[%s10769_s14] sm:$0xff] }
 0x64f   : > { %v5994_v59 = vadd.f32 %v5990_v17, %v5836_v21  ;;  %v5993_v4 = vadd.f32 %v5991_v37, %v5835_v48 }
 0x653   : > { %v6143_v62 = vpop.permute.xlu0 %6142  ;;  %v6147_v22 = vpop.permute.xlu1 %6146 }
 0x654   : > { %v6150_v39 = vsel %vm1801_vm8, %v6147_v22, %v6143_v62 }
 0x655   : > { %v6153_v41 = vadd.f32 %v6150_v39, %v5995_v32 }
 0x657   : > { %v6145_v13 = vpop.permute.xlu0 %6144 }
 0x658   : > { %v6148_v29 = vsel %vm1801_vm8, %v6145_v13, %v6147_v22  ;;  %v6149_v55 = vsel %vm1801_vm8, %v6143_v62, %v6145_v13  ;;  %v7604_v13 = vld [vmem:[#allocation8 + $0x40] sm:$0xff] }
 0x659   : > { %v6152_v2 = vadd.f32 %v6148_v29, %v5994_v59  ;;  %v6151_v43 = vadd.f32 %v6149_v55, %v5993_v4 }
 0x65d   : > { %v6305_v35 = vpop.permute.xlu0 %6304 }
 0x65f   : > { %v6303_v49 = vpop.permute.xlu1 %6302 }
 0x660   : > { %v6306_v57 = vsel %vm1960_vm9, %v6303_v49, %v6305_v35 }
 0x661   : > { %v6310_v40 = vadd.f32 %v6306_v57, %v6152_v2 }
 0x663   : > { %vm6313_vm15 = vcmp.gt.f32.partialorder %v6310_v40, 0.0  ;;  %v6316_v42 = vmul.f32 0.1, %v6310_v40  ;;  %v6301_v44 = vpop.permute.xlu1 %6300 }
 0x664   : > { %v6307_v47 = vsel %vm1960_vm9, %v6301_v44, %v6303_v49  ;;  %v6308_v50 = vsel %vm1960_vm9, %v6305_v35, %v6301_v44 }
 0x665   : > { %v6319_v51 = vsel %vm6313_vm15, %v6310_v40, %v6316_v42  ;;  %v6309_v54 = vadd.f32 %v6307_v47, %v6151_v43  ;;  %v6311_v20 = vadd.f32 %v6308_v50, %v6153_v41  ;;  %vm7801_vm15 = vcmask 392192  }
 0x666   : > { %v11812_v31 = vmul.f32 %v6319_v51, %v11004_v14 }
 0x667   : > { %vm6312_vm1 = vcmp.gt.f32.partialorder %v6309_v54, 0.0  ;;  %vm6314_vm10 = vcmp.gt.f32.partialorder %v6311_v20, 0.0  ;;  %v6315_v56 = vmul.f32 0.1, %v6309_v54  ;;  %v6317_v61 = vmul.f32 0.1, %v6311_v20 }
 0x668   : > { %6375 = vmatprep.subr.mxu0 %v11812_v31 }
 0x669   : > { %v6318_v62 = vsel %vm6312_vm1, %v6309_v54, %v6315_v56  ;;  %v6320_v58 = vsel %vm6314_vm10, %v6311_v20, %v6317_v61 }
 0x66a   : > { %v11816_v52 = vmul.f32 %v6318_v62, %v11006_v18  ;;  %v11819_v16 = vmul.f32 %v6320_v58, %v11008_v19 }
 0x66c   : > { %6376 = vmatpush1.msra.mxu0 %v11816_v52  ;;  %10008 = vmatpush3.msra.mxu1 %v11819_v16 }
 0x66d   : > { %6377 = vmatprep.subr.mxu0 %v11530_v15  ;;  %10009 = vmatprep.subr.mxu1 %v10550_v0 }
 0x66e   : > { %6378 = vmatpush1.msra.mxu0 %v11534_v25  ;;  %10010 = vmatpush3.msra.mxu1 %v11537_v28 }
 0x66f   : > { %6379 = vmatprep.subr.mxu0 %v11248_v3  ;;  %10011 = vmatprep.subr.mxu1 %v10550_v0 }
 0x670   : > { %6380 = vmatpush1.msra.mxu0 %v11251_v45  ;;  %10012 = vmatpush3.msra.mxu1 %v11255_v46 }
 0x671   : > { %6381 = vmatprep.subr.mxu0 %v11011_v23  ;;  %10013 = vmatprep.subr.mxu1 %v10550_v0 }
 0x672   : > { %6382 = vmatpush1.msra.mxu0 %v11014_v26  ;;  %10014 = vmatpush3.msra.mxu1 %v11017_v27 }
 0x673   : > { %6383 = vmatprep.subr.mxu0 %v11836_v63  ;;  %10015 = vmatprep.subr.mxu1 %v10550_v0 }
 0x674   : > { %6384 = vmatpush1.msra.mxu0 %v11841_v5  ;;  %10016 = vmatpush3.msra.mxu1 %v11845_v7 }
 0x675   : > { %9437 = vmatmul.mubr.msk.f32.vlgmr.msra.gmra.mxu0 %vm6349_vm11, %v6348_v60  ;;  %10018 = vmatmul.mubr.msk.f32.vlgmr.msra.gmra.mxu1 %vm6349_vm11, %v6348_v60  ;;  %v7794_v60 = vld [vmem:[%s12550_s13] sm:$0xff] }
 0x676   : > { %6533 = vmatprep.subr.mxu0 %v11812_v31  ;;  %10020 = vmatprep.subr.mxu1 %v10550_v0 }
 0x677   : > { %6534 = vmatpush1.msra.mxu0 %v11816_v52  ;;  %10021 = vmatpush3.msra.mxu1 %v11819_v16 }
 0x678   : > { %6535 = vmatprep.subr.mxu0 %v11530_v15  ;;  %10022 = vmatprep.subr.mxu1 %v10550_v0 }
 0x679   : > { %6536 = vmatpush1.msra.mxu0 %v11534_v25  ;;  %10023 = vmatpush3.msra.mxu1 %v11537_v28 }
 0x67a   : > { %6537 = vmatprep.subr.mxu0 %v11248_v3  ;;  %10024 = vmatprep.subr.mxu1 %v10550_v0 }
 0x67b   : > { %6538 = vmatpush1.msra.mxu0 %v11251_v45  ;;  %10025 = vmatpush3.msra.mxu1 %v11255_v46 }
 0x67c   : > { %6539 = vmatprep.subr.mxu0 %v11011_v23  ;;  %10026 = vmatprep.subr.mxu1 %v10550_v0 }
 0x67d   : > { %6540 = vmatpush1.msra.mxu0 %v11014_v26  ;;  %10027 = vmatpush3.msra.mxu1 %v11017_v27 }
 0x67e   : > { %6541 = vmatprep.subr.mxu0 %v11836_v63  ;;  %10028 = vmatprep.subr.mxu1 %v10550_v0 }
 0x67f   : > { %6542 = vmatpush1.msra.mxu0 %v11841_v5  ;;  %6575 = vmatprep.mubr.f32.mxu0 %v10550_v0 }
 0x680   : > { %10029 = vmatpush3.msra.mxu1 %v11845_v7  ;;  %10030 = vmatprep.mubr.msk.f32.mxu1 %vm10551_vm0, %v10550_v0 }
 0x681   : > { %9439 = vmatmul.mubr.msk.f32.vlgmr.msra.gmra.mxu0 %vm6349_vm11, %v6507_v8  ;;  %10031 = vmatmul.mubr.msk.f32.vlgmr.msra.gmra.mxu1 %vm6349_vm11, %v6507_v8 }
 0x682   : > { %6691 = vmatprep.subr.mxu0 %v11812_v31  ;;  %10033 = vmatprep.subr.mxu1 %v10550_v0 }
 0x683   : > { %6692 = vmatpush1.msra.mxu0 %v11816_v52  ;;  %10034 = vmatpush3.msra.mxu1 %v11819_v16 }
 0x684   : > { %6693 = vmatprep.subr.mxu0 %v11530_v15  ;;  %10035 = vmatprep.subr.mxu1 %v10550_v0 }
 0x685   : > { %6694 = vmatpush1.msra.mxu0 %v11534_v25  ;;  %10036 = vmatpush3.msra.mxu1 %v11537_v28 }
 0x686   : > { %6695 = vmatprep.subr.mxu0 %v11248_v3  ;;  %10037 = vmatprep.subr.mxu1 %v10550_v0 }
 0x687   : > { %6696 = vmatpush1.msra.mxu0 %v11251_v45  ;;  %10038 = vmatpush3.msra.mxu1 %v11255_v46 }
 0x688   : > { %6697 = vmatprep.subr.mxu0 %v11011_v23  ;;  %10039 = vmatprep.subr.mxu1 %v10550_v0 }
 0x689   : > { %6698 = vmatpush1.msra.mxu0 %v11014_v26  ;;  %10040 = vmatpush3.msra.mxu1 %v11017_v27 }
 0x68a   : > { %6699 = vmatprep.subr.mxu0 %v11836_v63  ;;  %10041 = vmatprep.subr.mxu1 %v10550_v0 }
 0x68b   : > { %6700 = vmatpush1.msra.mxu0 %v11841_v5  ;;  %6733 = vmatprep.mubr.f32.mxu0 %v10550_v0 }
 0x68c   : > { %10042 = vmatpush3.msra.mxu1 %v11845_v7  ;;  %10043 = vmatprep.mubr.msk.f32.mxu1 %vm10551_vm0, %v10550_v0 }
 0x68d   : > { %9441 = vmatmul.mubr.msk.f32.vlgmr.msra.gmra.mxu0 %vm6349_vm11, %v6665_v6  ;;  %10044 = vmatmul.mubr.msk.f32.vlgmr.msra.gmra.mxu1 %vm6349_vm11, %v6665_v6 }
 0x68e   : > { %6849 = vmatprep.subr.mxu0 %v11812_v31  ;;  %10046 = vmatprep.subr.mxu1 %v10550_v0 }
 0x68f   : > { %6850 = vmatpush1.msra.mxu0 %v11816_v52  ;;  %10047 = vmatpush3.msra.mxu1 %v11819_v16 }
 0x690   : > { %6851 = vmatprep.subr.mxu0 %v11530_v15  ;;  %10048 = vmatprep.subr.mxu1 %v10550_v0 }
 0x691   : > { %6852 = vmatpush1.msra.mxu0 %v11534_v25  ;;  %10049 = vmatpush3.msra.mxu1 %v11537_v28 }
 0x692   : > { %6853 = vmatprep.subr.mxu0 %v11248_v3  ;;  %10050 = vmatprep.subr.mxu1 %v10550_v0 }
 0x693   : > { %6854 = vmatpush1.msra.mxu0 %v11251_v45  ;;  %10051 = vmatpush3.msra.mxu1 %v11255_v46 }
 0x694   : > { %6855 = vmatprep.subr.mxu0 %v11011_v23  ;;  %10052 = vmatprep.subr.mxu1 %v10550_v0 }
 0x695   : > { %6856 = vmatpush1.msra.mxu0 %v11014_v26  ;;  %10053 = vmatpush3.msra.mxu1 %v11017_v27 }
 0x696   : > { %6857 = vmatprep.subr.mxu0 %v11836_v63  ;;  %10054 = vmatprep.subr.mxu1 %v10550_v0 }
 0x697   : > { %6858 = vmatpush1.msra.mxu0 %v11841_v5  ;;  %6891 = vmatprep.mubr.f32.mxu0 %v10550_v0 }
 0x698   : > { %10055 = vmatpush3.msra.mxu1 %v11845_v7  ;;  %10056 = vmatprep.mubr.msk.f32.mxu1 %vm10551_vm0, %v10550_v0 }
 0x699   : > { %9443 = vmatmul.mubr.msk.f32.vlgmr.msra.gmra.mxu0 %vm6349_vm11, %v6823_v9  ;;  %10057 = vmatmul.mubr.msk.f32.vlgmr.msra.gmra.mxu1 %vm6349_vm11, %v6823_v9  ;;  %v6346_v9 = vpop.permute.xlu0 %6345 }
 0x69a   : > { %7007 = vmatprep.subr.mxu0 %v11812_v31  ;;  %10059 = vmatprep.subr.mxu1 %v10550_v0 }
 0x69b   : > { %7008 = vmatpush1.msra.mxu0 %v11816_v52  ;;  %10060 = vmatpush3.msra.mxu1 %v11819_v16 }
 0x69c   : > { %7009 = vmatprep.subr.mxu0 %v11530_v15  ;;  %10061 = vmatprep.subr.mxu1 %v10550_v0 }
 0x69d   : > { %7010 = vmatpush1.msra.mxu0 %v11534_v25  ;;  %10062 = vmatpush3.msra.mxu1 %v11537_v28 }
 0x69e   : > { %7011 = vmatprep.subr.mxu0 %v11248_v3  ;;  %10063 = vmatprep.subr.mxu1 %v10550_v0 }
 0x69f   : > { %7012 = vmatpush1.msra.mxu0 %v11251_v45  ;;  %10064 = vmatpush3.msra.mxu1 %v11255_v46 }
 0x6a0   : > { %7013 = vmatprep.subr.mxu0 %v11011_v23  ;;  %10065 = vmatprep.subr.mxu1 %v10550_v0 }
 0x6a1   : > { %7014 = vmatpush1.msra.mxu0 %v11014_v26  ;;  %10066 = vmatpush3.msra.mxu1 %v11017_v27 }
 0x6a2   : > { %7015 = vmatprep.subr.mxu0 %v11836_v63  ;;  %10067 = vmatprep.subr.mxu1 %v10550_v0 }
 0x6a3   : > { %7016 = vmatpush1.msra.mxu0 %v11841_v5  ;;  %7049 = vmatprep.mubr.f32.mxu0 %v10550_v0 }
 0x6a4   : > { %10068 = vmatpush3.msra.mxu1 %v11845_v7  ;;  %9445 = vmatmul.mubr.msk.f32.vlgmr.msra.gmra.mxu0 %vm6349_vm11, %v6981_v10 }
 0x6a5   : > { %10069 = vmatprep.mubr.msk.f32.mxu1 %vm10551_vm0, %v10550_v0  ;;  %7156 = vmatprep.subr.mxu0 %v11812_v31 }
 0x6a6   : > { %10072 = vmatprep.subr.mxu1 %v10550_v0  ;;  %10070 = vmatmul.mubr.msk.f32.vlgmr.msra.gmra.mxu1 %vm6349_vm11, %v6981_v10 }
 0x6a7   : > { %7157 = vmatpush1.msra.mxu0 %v11816_v52  ;;  %10073 = vmatpush3.msra.mxu1 %v11819_v16 }
 0x6a8   : > { %7158 = vmatprep.subr.mxu0 %v11530_v15  ;;  %10074 = vmatprep.subr.mxu1 %v10550_v0 }
 0x6a9   : > { %7159 = vmatpush1.msra.mxu0 %v11534_v25  ;;  %10075 = vmatpush3.msra.mxu1 %v11537_v28 }
 0x6aa   : > { %7160 = vmatprep.subr.mxu0 %v11248_v3  ;;  %10076 = vmatprep.subr.mxu1 %v10550_v0 }
 0x6ab   : > { %7161 = vmatpush1.msra.mxu0 %v11251_v45  ;;  %10077 = vmatpush3.msra.mxu1 %v11255_v46 }
 0x6ac   : > { %7162 = vmatprep.subr.mxu0 %v11011_v23  ;;  %10078 = vmatprep.subr.mxu1 %v10550_v0 }
 0x6ad   : > { %7163 = vmatpush1.msra.mxu0 %v11014_v26  ;;  %10079 = vmatpush3.msra.mxu1 %v11017_v27 }
 0x6ae   : > { %7164 = vmatprep.subr.mxu0 %v11836_v63  ;;  %10080 = vmatprep.subr.mxu1 %v10550_v0 }
 0x6af   : > { %7165 = vmatpush1.msra.mxu0 %v11841_v5  ;;  %7198 = vmatprep.mubr.f32.mxu0 %v10550_v0 }
 0x6b0   : > { %10081 = vmatpush3.msra.mxu1 %v11845_v7  ;;  %10082 = vmatprep.mubr.msk.f32.mxu1 %vm10551_vm0, %v10550_v0 }
 0x6b1   : > { %9447 = vmatmul.mubr.msk.f32.vlgmr.msra.gmra.mxu0 %vm6349_vm11, %v7130_v11  ;;  %10083 = vmatmul.mubr.msk.f32.vlgmr.msra.gmra.mxu1 %vm6349_vm11, %v7130_v11 }
 0x6b2   : > { %7314 = vmatprep.subr.mxu0 %v11812_v31  ;;  %10085 = vmatprep.subr.mxu1 %v10550_v0 }
 0x6b3   : > { %7315 = vmatpush1.msra.mxu0 %v11816_v52  ;;  %10086 = vmatpush3.msra.mxu1 %v11819_v16 }
 0x6b4   : > { %7316 = vmatprep.subr.mxu0 %v11530_v15  ;;  %10087 = vmatprep.subr.mxu1 %v10550_v0 }
 0x6b5   : > { %7317 = vmatpush1.msra.mxu0 %v11534_v25  ;;  %10088 = vmatpush3.msra.mxu1 %v11537_v28 }
 0x6b6   : > { %7318 = vmatprep.subr.mxu0 %v11248_v3  ;;  %10089 = vmatprep.subr.mxu1 %v10550_v0 }
 0x6b7   : > { %7319 = vmatpush1.msra.mxu0 %v11251_v45  ;;  %10090 = vmatpush3.msra.mxu1 %v11255_v46 }
 0x6b8   : > { %7320 = vmatprep.subr.mxu0 %v11011_v23  ;;  %10091 = vmatprep.subr.mxu1 %v10550_v0 }
 0x6b9   : > { %7321 = vmatpush1.msra.mxu0 %v11014_v26  ;;  %10092 = vmatpush3.msra.mxu1 %v11017_v27 }
 0x6ba   : > { %7322 = vmatprep.subr.mxu0 %v11836_v63  ;;  %10093 = vmatprep.subr.mxu1 %v10550_v0 }
 0x6bb   : > { %7323 = vmatpush1.msra.mxu0 %v11841_v5  ;;  %7356 = vmatprep.mubr.f32.mxu0 %v10550_v0 }
 0x6bc   : > { %10094 = vmatpush3.msra.mxu1 %v11845_v7  ;;  %10095 = vmatprep.mubr.msk.f32.mxu1 %vm10551_vm0, %v10550_v0 }
 0x6bd   : > { %9449 = vmatmul.mubr.msk.f32.vlgmr.msra.gmra.mxu0 %vm6349_vm11, %v7288_v12  ;;  %10096 = vmatmul.mubr.msk.f32.vlgmr.msra.gmra.mxu1 %vm6349_vm11, %v7288_v12 }
 0x6be   : > { %7472 = vmatprep.subr.mxu0 %v11812_v31  ;;  %10098 = vmatprep.subr.mxu1 %v10550_v0 }
 0x6bf   : > { %7473 = vmatpush1.msra.mxu0 %v11816_v52  ;;  %10099 = vmatpush3.msra.mxu1 %v11819_v16 }
 0x6c0   : > { %7474 = vmatprep.subr.mxu0 %v11530_v15  ;;  %10100 = vmatprep.subr.mxu1 %v10550_v0 }
 0x6c1   : > { %7475 = vmatpush1.msra.mxu0 %v11534_v25  ;;  %10101 = vmatpush3.msra.mxu1 %v11537_v28 }
 0x6c2   : > { %7476 = vmatprep.subr.mxu0 %v11248_v3  ;;  %10102 = vmatprep.subr.mxu1 %v10550_v0 }
 0x6c3   : > { %7477 = vmatpush1.msra.mxu0 %v11251_v45  ;;  %10103 = vmatpush3.msra.mxu1 %v11255_v46 }
 0x6c4   : > { %7478 = vmatprep.subr.mxu0 %v11011_v23  ;;  %10104 = vmatprep.subr.mxu1 %v10550_v0 }
 0x6c5   : > { %7479 = vmatpush1.msra.mxu0 %v11014_v26  ;;  %10105 = vmatpush3.msra.mxu1 %v11017_v27 }
 0x6c6   : > { %7480 = vmatprep.subr.mxu0 %v11836_v63  ;;  %10106 = vmatprep.subr.mxu1 %v10550_v0 }
 0x6c7   : > { %7481 = vmatpush1.msra.mxu0 %v11841_v5  ;;  %7514 = vmatprep.mubr.f32.mxu0 %v10550_v0 }
 0x6c8   : > { %10107 = vmatpush3.msra.mxu1 %v11845_v7  ;;  %10108 = vmatprep.mubr.msk.f32.mxu1 %vm10551_vm0, %v10550_v0 }
 0x6c9   : > { %9451 = vmatmul.mubr.msk.f32.vlgmr.msra.gmra.mxu0 %vm6349_vm11, %v7446_v53  ;;  %10109 = vmatmul.mubr.msk.f32.vlgmr.msra.gmra.mxu1 %vm6349_vm11, %v7446_v53 }
 0x6ca   : > { %7630 = vmatprep.subr.mxu0 %v11812_v31  ;;  %10111 = vmatprep.subr.mxu1 %v10550_v0 }
 0x6cb   : > { %7631 = vmatpush1.msra.mxu0 %v11816_v52  ;;  %10112 = vmatpush3.msra.mxu1 %v11819_v16 }
 0x6cc   : > { %7632 = vmatprep.subr.mxu0 %v11530_v15  ;;  %10113 = vmatprep.subr.mxu1 %v10550_v0 }
 0x6cd   : > { %7633 = vmatpush1.msra.mxu0 %v11534_v25  ;;  %10114 = vmatpush3.msra.mxu1 %v11537_v28 }
 0x6ce   : > { %7634 = vmatprep.subr.mxu0 %v11248_v3  ;;  %10115 = vmatprep.subr.mxu1 %v10550_v0 }
 0x6cf   : > { %7635 = vmatpush1.msra.mxu0 %v11251_v45  ;;  %10116 = vmatpush3.msra.mxu1 %v11255_v46 }
 0x6d0   : > { %7636 = vmatprep.subr.mxu0 %v11011_v23  ;;  %10117 = vmatprep.subr.mxu1 %v10550_v0 }
 0x6d1   : > { %7637 = vmatpush1.msra.mxu0 %v11014_v26  ;;  %10118 = vmatpush3.msra.mxu1 %v11017_v27 }
 0x6d2   : > { %7638 = vmatprep.subr.mxu0 %v11836_v63  ;;  %10119 = vmatprep.subr.mxu1 %v10550_v0 }
 0x6d3   : > { %7639 = vmatpush1.msra.mxu0 %v11841_v5  ;;  %7672 = vmatprep.mubr.f32.mxu0 %v10550_v0 }
 0x6d4   : > { %10120 = vmatpush3.msra.mxu1 %v11845_v7  ;;  %10121 = vmatprep.mubr.msk.f32.mxu1 %vm10551_vm0, %v10550_v0 }
 0x6d5   : > { %9453 = vmatmul.mubr.msk.f32.vlgmr.msra.gmra.mxu0 %vm6349_vm11, %v7604_v13  ;;  %10122 = vmatmul.mubr.msk.f32.vlgmr.msra.gmra.mxu1 %vm6349_vm11, %v7604_v13 }
 0x6d6   : > { %10124 = vmatprep.subr.mxu1 %v10550_v0  ;;  %7869 = vmatprep.mubr.f32.mxu0 %v10550_v0 }
 0x6d7   : > { %10136 = vmatprep.mubr.msk.f32.mxu1 %vm10551_vm0, %v10550_v0 }
 0x735   : > { %v6419_v17 = vpop.f32.mrf.mxu0  ;;  %v6490_v21 = vpop.f32.mrf.mxu1 }
 0x736   : > { %6498 = vrot.lane.b32.xlu1 %v6490_v21, %s10553_s23 }
 0x737   : > { %v6421_v22 = vpop.f32.mrf.mxu0  ;;  %v10019_v24 = vpop.f32.mrf.mxu1 }
 0x738   : > { %6496 = vrot.lane.b32.xlu0 %v6421_v22, %s10553_s23 }
 0x73a   : > { %6494 = vrot.lane.b32.xlu1 %v6419_v17, %s10553_s23 }
 0x741   : > { %v6577_v34 = vpop.f32.mrf.mxu0  ;;  %v6648_v29 = vpop.f32.mrf.mxu1 }
 0x742   : > { %6656 = vrot.lane.b32.xlu0 %v6648_v29, %s10554_s29 }
 0x743   : > { %v6579_v30 = vpop.f32.mrf.mxu0  ;;  %v10032_v33 = vpop.f32.mrf.mxu1 }
 0x744   : > { %6654 = vrot.lane.b32.xlu1 %v6579_v30, %s10554_s29 }
 0x746   : > { %6652 = vrot.lane.b32.xlu0 %v6577_v34, %s10554_s29 }
 0x74d   : > { %v6735_v59 = vpop.f32.mrf.mxu0  ;;  %v6806_v35 = vpop.f32.mrf.mxu1 }
 0x74e   : > { %6814 = vrot.lane.b32.xlu1 %v6806_v35, %s10555_s28 }
 0x74f   : > { %v6737_v36 = vpop.f32.mrf.mxu0  ;;  %v10045_v37 = vpop.f32.mrf.mxu1 }
 0x750   : > { %6812 = vrot.lane.b32.xlu0 %v6737_v36, %s10555_s28 }
 0x752   : > { %6810 = vrot.lane.b32.xlu1 %v6735_v59, %s10555_s28 }
 0x759   : > { %v6893_v38 = vpop.f32.mrf.mxu0  ;;  %v6964_v48 = vpop.f32.mrf.mxu1 }
 0x75a   : > { %6972 = vrot.lane.b32.xlu0 %v6964_v48, %s10556_s20 }
 0x75b   : > { %v6895_v2 = vpop.f32.mrf.mxu0  ;;  %v10058_v49 = vpop.f32.mrf.mxu1 }
 0x75c   : > { %6970 = vrot.lane.b32.xlu1 %v6895_v2, %s10556_s20 }
 0x75e   : > { %6968 = vrot.lane.b32.xlu0 %v6893_v38, %s10556_s20 }
 0x764   : > { %v12068_v57 = vpop.f32.mrf.mxu0 }
 0x766   : > { %v12066_v39 = vpop.f32.mrf.mxu1  ;;  %v12070_v32 = vpop.f32.mrf.mxu0 }
 0x768   : > { %v10071_v55 = vpop.f32.mrf.mxu1 }
 0x771   : > { %v7200_v4 = vpop.f32.mrf.mxu0  ;;  %v7271_v40 = vpop.f32.mrf.mxu1 }
 0x772   : > { %7279 = vrot.lane.b32.xlu0 %v7271_v40, %s10557_s24  ;;  %7275 = vrot.lane.b32.xlu1 %v7200_v4, %s10557_s24 }
 0x773   : > { %v10084_v41 = vpop.f32.mrf.mxu1  ;;  %v7202_v43 = vpop.f32.mrf.mxu0 }
 0x776   : > { %7277 = vrot.lane.b32.xlu1 %v7202_v43, %s10557_s24 }
 0x77d   : > { %v7358_v42 = vpop.f32.mrf.mxu0  ;;  %v7429_v44 = vpop.f32.mrf.mxu1 }
 0x77e   : > { %7437 = vrot.lane.b32.xlu1 %v7429_v44, %s10558_s27  ;;  %7433 = vrot.lane.b32.xlu0 %v7358_v42, %s10558_s27 }
 0x77f   : > { %v10097_v47 = vpop.f32.mrf.mxu1  ;;  %v7360_v50 = vpop.f32.mrf.mxu0 }
 0x782   : > { %7435 = vrot.lane.b32.xlu0 %v7360_v50, %s10558_s27 }
 0x789   : > { %v7516_v51 = vpop.f32.mrf.mxu0  ;;  %v7587_v54 = vpop.f32.mrf.mxu1 }
 0x78a   : > { %7595 = vrot.lane.b32.xlu0 %v7587_v54, %s10559_s8  ;;  %7591 = vrot.lane.b32.xlu1 %v7516_v51, %s10559_s8 }
 0x78b   : > { %v10110_v20 = vpop.f32.mrf.mxu1  ;;  %v7518_v56 = vpop.f32.mrf.mxu0 }
 0x78e   : > { %7593 = vrot.lane.b32.xlu1 %v7518_v56, %s10559_s8 }
 0x795   : > { %v7674_v61 = vpop.f32.mrf.mxu0  ;;  %v7745_v62 = vpop.f32.mrf.mxu1 }
 0x796   : > { %7753 = vrot.lane.b32.xlu1 %v7745_v62, %s10560_s10 }
 0x797   : > { %v7676_v58 = vpop.f32.mrf.mxu0  ;;  %v10123_v8 = vpop.f32.mrf.mxu1 }
 0x798   : > { %7751 = vrot.lane.b32.xlu0 %v7676_v58, %s10560_s10 }
 0x79a   : > { %7797 = vperm.xlu1 %10354, %v7794_v60  }
 0x79c   : > { %7749 = vrot.lane.b32.xlu0 %v7674_v61, %s10560_s10 }
 0x7a8   : > { %v6499_v6 = vpop.permute.xlu1 %6498 }
 0x7aa   : > { %v6497_v11 = vpop.permute.xlu0 %6496 }
 0x7ab   : > { %v6500_v48 = vsel %vm698_vm2, %v6497_v11, %v6499_v6 }
 0x7ac   : > { %v6495_v10 = vpop.permute.xlu1 %6494  ;;  %v6505_v42 = vadd.f32 %v6500_v48, %v6346_v9 }
 0x7ad   : > { %v6501_v59 = vsel %vm698_vm2, %v6495_v10, %v6497_v11  ;;  %v6502_v2 = vsel %vm698_vm2, %v6499_v6, %v6495_v10 }
 0x7ae   : > { %v6504_v37 = vadd.f32 %v6501_v59, %v6346_v9  ;;  %v6503_v44 = vadd.f32 %v6502_v2, %v6346_v9 }
 0x7b4   : > { %v6657_v53 = vpop.permute.xlu0 %6656 }
 0x7b6   : > { %v6655_v12 = vpop.permute.xlu1 %6654 }
 0x7b7   : > { %v6658_v40 = vsel %vm857_vm3, %v6655_v12, %v6657_v53 }
 0x7b8   : > { %v6653_v17 = vpop.permute.xlu0 %6652  ;;  %v6663_v20 = vadd.f32 %v6658_v40, %v6505_v42 }
 0x7b9   : > { %v6659_v36 = vsel %vm857_vm3, %v6653_v17, %v6655_v12  ;;  %v6660_v41 = vsel %vm857_vm3, %v6657_v53, %v6653_v17 }
 0x7ba   : > { %v6662_v55 = vadd.f32 %v6659_v36, %v6504_v37  ;;  %v6661_v56 = vadd.f32 %v6660_v41, %v6503_v44 }
 0x7c0   : > { %v6815_v13 = vpop.permute.xlu1 %6814 }
 0x7c2   : > { %v6813_v22 = vpop.permute.xlu0 %6812 }
 0x7c3   : > { %v6816_v51 = vsel %vm1016_vm4, %v6813_v22, %v6815_v13 }
 0x7c4   : > { %v6811_v21 = vpop.permute.xlu1 %6810  ;;  %v6821_v60 = vadd.f32 %v6816_v51, %v6663_v20 }
 0x7c5   : > { %v6817_v49 = vsel %vm1016_vm4, %v6811_v21, %v6813_v22  ;;  %v6818_v54 = vsel %vm1016_vm4, %v6815_v13, %v6811_v21 }
 0x7c6   : > { %v6820_v47 = vadd.f32 %v6817_v49, %v6662_v55  ;;  %v6819_v8 = vadd.f32 %v6818_v54, %v6661_v56 }
 0x7cc   : > { %v6973_v34 = vpop.permute.xlu0 %6972 }
 0x7ce   : > { %v6971_v24 = vpop.permute.xlu1 %6970 }
 0x7cf   : > { %v6974_v62 = vsel %vm1175_vm5, %v6971_v24, %v6973_v34 }
 0x7d0   : > { %v6969_v30 = vpop.permute.xlu0 %6968  ;;  %v6979_v10 = vadd.f32 %v6974_v62, %v6821_v60 }
 0x7d1   : > { %v6975_v43 = vsel %vm1175_vm5, %v6969_v30, %v6971_v24  ;;  %v6976_v58 = vsel %vm1175_vm5, %v6973_v34, %v6969_v30 }
 0x7d2   : > { %v6978_v61 = vadd.f32 %v6975_v43, %v6820_v47  ;;  %v6977_v11 = vadd.f32 %v6976_v58, %v6819_v8  ;;  %v7128_v30 = vadd.f32 %v12066_v39, %v6979_v10  ;;  %v12319_v10 = vld [vmem:[%s10769_s14 + $0x10] sm:$0xff] }
 0x7d4   : > { %v7127_v12 = vadd.f32 %v12070_v32, %v6978_v61  ;;  %v7126_v59 = vadd.f32 %v12068_v57, %v6977_v11  ;;  %v8740_v11 = vld [vmem:[#allocation9 + $0x30] sm:$0xff] }
 0x7e4   : > { %v7276_v29 = vpop.permute.xlu1 %7275  ;;  %v7280_v35 = vpop.permute.xlu0 %7279 }
 0x7e5   : > { %v7283_v22 = vsel %vm1483_vm6, %v7280_v35, %v7276_v29 }
 0x7e6   : > { %v7286_v2 = vadd.f32 %v7283_v22, %v7128_v30 }
 0x7e8   : > { %v7278_v33 = vpop.permute.xlu1 %7277 }
 0x7e9   : > { %v7281_v9 = vsel %vm1483_vm6, %v7278_v33, %v7280_v35  ;;  %v7282_v24 = vsel %vm1483_vm6, %v7276_v29, %v7278_v33 }
 0x7ea   : > { %v7285_v17 = vadd.f32 %v7281_v9, %v7127_v12  ;;  %v7284_v35 = vadd.f32 %v7282_v24, %v7126_v59  ;;  %v8433_v9 = vld [vmem:[#allocation9 + $0x20] sm:$0xff]  ;;  %v8898_v12 = vld [vmem:[#allocation9 + $0x38] sm:$0xff] }
 0x7f0   : > { %v7438_v38 = vpop.permute.xlu1 %7437  ;;  %v7434_v4 = vpop.permute.xlu0 %7433 }
 0x7f1   : > { %v7441_v37 = vsel %vm1642_vm7, %v7438_v38, %v7434_v4 }
 0x7f2   : > { %v7444_v33 = vadd.f32 %v7441_v37, %v7286_v2 }
 0x7f4   : > { %v7436_v6 = vpop.permute.xlu0 %7435 }
 0x7f5   : > { %v7439_v13 = vsel %vm1642_vm7, %v7436_v6, %v7438_v38  ;;  %v7440_v48 = vsel %vm1642_vm7, %v7434_v4, %v7436_v6  ;;  %v8275_v6 = vld [vmem:[#allocation9 + $0x18] sm:$0xff] }
 0x7f6   : > { %v7443_v32 = vadd.f32 %v7439_v13, %v7285_v17  ;;  %v7442_v40 = vadd.f32 %v7440_v48, %v7284_v35 }
 0x7fc   : > { %v7592_v50 = vpop.permute.xlu1 %7591  ;;  %v7596_v21 = vpop.permute.xlu0 %7595 }
 0x7fd   : > { %v7599_v29 = vsel %vm1801_vm8, %v7596_v21, %v7592_v50 }
 0x7fe   : > { %v7602_v38 = vadd.f32 %v7599_v29, %v7444_v33 }
 0x800   : > { %v7594_v53 = vpop.permute.xlu1 %7593 }
 0x801   : > { %v7597_v34 = vsel %vm1801_vm8, %v7594_v53, %v7596_v21  ;;  %v7598_v39 = vsel %vm1801_vm8, %v7592_v50, %v7594_v53 }
 0x802   : > { %v7601_v49 = vadd.f32 %v7597_v34, %v7443_v32  ;;  %v7600_v43 = vadd.f32 %v7598_v39, %v7442_v40 }
 0x808   : > { %v7754_v36 = vpop.permute.xlu1 %7753 }
 0x80a   : > { %v7752_v55 = vpop.permute.xlu0 %7751 }
 0x80b   : > { %v7755_v57 = vsel %vm1960_vm9, %v7752_v55, %v7754_v36 }
 0x80c   : > { %v7759_v41 = vadd.f32 %v7755_v57, %v7601_v49 }
 0x80e   : > { %vm7762_vm12 = vcmp.gt.f32.partialorder %v7759_v41, 0.0  ;;  %v7765_v4 = vmul.f32 0.1, %v7759_v41  ;;  %v7750_v42 = vpop.permute.xlu0 %7749 }
 0x80f   : > { %v7756_v44 = vsel %vm1960_vm9, %v7750_v42, %v7752_v55  ;;  %v7757_v47 = vsel %vm1960_vm9, %v7754_v36, %v7750_v42 }
 0x810   : > { %v7768_v51 = vsel %vm7762_vm12, %v7759_v41, %v7765_v4  ;;  %v7758_v54 = vadd.f32 %v7756_v44, %v7600_v43  ;;  %v7760_v50 = vadd.f32 %v7757_v47, %v7602_v38 }
 0x811   : > { %v12139_v20 = vmul.f32 %v7768_v51, %v11004_v14  ;;  %v7800_v14 = vld [vmem:[#allocation9] sm:$0xff] }
 0x812   : > { %vm7761_vm13 = vcmp.gt.f32.partialorder %v7758_v54, 0.0  ;;  %vm7763_vm14 = vcmp.gt.f32.partialorder %v7760_v50, 0.0  ;;  %v7764_v56 = vmul.f32 0.1, %v7758_v54  ;;  %v7766_v61 = vmul.f32 0.1, %v7760_v50 }
 0x813   : > { %7825 = vmatprep.subr.mxu0 %v12139_v20 }
 0x814   : > { %v7767_v62 = vsel %vm7761_vm13, %v7758_v54, %v7764_v56  ;;  %v7769_v58 = vsel %vm7763_vm14, %v7760_v50, %v7766_v61 }
 0x815   : > { %v12143_v60 = vmul.f32 %v7767_v62, %v11006_v18  ;;  %v12146_v8 = vmul.f32 %v7769_v58, %v11008_v19  ;;  %v7959_v18 = vld [vmem:[#allocation9 + $0x8] sm:$0xff]  ;;  %v8117_v19 = vld [vmem:[#allocation9 + $0x10] sm:$0xff]  ;;  %v7798_v4 = vpop.permute.xlu1 %7797 }
 0x817   : > { %7826 = vmatpush1.msra.mxu0 %v12143_v60  ;;  %10125 = vmatpush3.msra.mxu1 %v12146_v8 }
 0x818   : > { %7827 = vmatprep.subr.mxu0 %v11812_v31  ;;  %10126 = vmatprep.subr.mxu1 %v10550_v0 }
 0x819   : > { %7828 = vmatpush1.msra.mxu0 %v11816_v52  ;;  %10127 = vmatpush3.msra.mxu1 %v11819_v16 }
 0x81a   : > { %7829 = vmatprep.subr.mxu0 %v11530_v15  ;;  %10128 = vmatprep.subr.mxu1 %v10550_v0 }
 0x81b   : > { %7830 = vmatpush1.msra.mxu0 %v11534_v25  ;;  %10129 = vmatpush3.msra.mxu1 %v11537_v28 }
 0x81c   : > { %7831 = vmatprep.subr.mxu0 %v11248_v3  ;;  %10130 = vmatprep.subr.mxu1 %v10550_v0 }
 0x81d   : > { %7832 = vmatpush1.msra.mxu0 %v11251_v45  ;;  %10131 = vmatpush3.msra.mxu1 %v11255_v46 }
 0x81e   : > { %7833 = vmatprep.subr.mxu0 %v11011_v23  ;;  %10132 = vmatprep.subr.mxu1 %v10550_v0 }
 0x81f   : > { %7834 = vmatpush1.msra.mxu0 %v11014_v26  ;;  %10133 = vmatpush3.msra.mxu1 %v11017_v27 }
 0x820   : > { %7835 = vmatprep.subr.mxu0 %v11836_v63  ;;  %10134 = vmatprep.subr.mxu1 %v10550_v0 }
 0x821   : > { %7836 = vmatpush1.msra.mxu0 %v11841_v5  ;;  %10135 = vmatpush3.msra.mxu1 %v11845_v7 }
 0x822   : > { %9455 = vmatmul.mubr.msk.f32.vlgmr.msra.gmra.mxu0 %vm7801_vm15, %v7800_v14  ;;  %10137 = vmatmul.mubr.msk.f32.vlgmr.msra.gmra.mxu1 %vm7801_vm15, %v7800_v14 }
 0x823   : > { %7983 = vmatprep.subr.mxu0 %v12139_v20  ;;  %10139 = vmatprep.subr.mxu1 %v10550_v0 }
 0x824   : > { %7984 = vmatpush1.msra.mxu0 %v12143_v60  ;;  %10140 = vmatpush3.msra.mxu1 %v12146_v8 }
 0x825   : > { %7985 = vmatprep.subr.mxu0 %v11812_v31  ;;  %10141 = vmatprep.subr.mxu1 %v10550_v0 }
 0x826   : > { %7986 = vmatpush1.msra.mxu0 %v11816_v52  ;;  %10142 = vmatpush3.msra.mxu1 %v11819_v16 }
 0x827   : > { %7987 = vmatprep.subr.mxu0 %v11530_v15  ;;  %10143 = vmatprep.subr.mxu1 %v10550_v0 }
 0x828   : > { %7988 = vmatpush1.msra.mxu0 %v11534_v25  ;;  %10144 = vmatpush3.msra.mxu1 %v11537_v28 }
 0x829   : > { %7989 = vmatprep.subr.mxu0 %v11248_v3  ;;  %10145 = vmatprep.subr.mxu1 %v10550_v0 }
 0x82a   : > { %7990 = vmatpush1.msra.mxu0 %v11251_v45  ;;  %10146 = vmatpush3.msra.mxu1 %v11255_v46 }
 0x82b   : > { %7991 = vmatprep.subr.mxu0 %v11011_v23  ;;  %10147 = vmatprep.subr.mxu1 %v10550_v0 }
 0x82c   : > { %7992 = vmatpush1.msra.mxu0 %v11014_v26  ;;  %10148 = vmatpush3.msra.mxu1 %v11017_v27 }
 0x82d   : > { %7993 = vmatprep.subr.mxu0 %v11836_v63  ;;  %10149 = vmatprep.subr.mxu1 %v10550_v0 }
 0x82e   : > { %7994 = vmatpush1.msra.mxu0 %v11841_v5  ;;  %8027 = vmatprep.mubr.f32.mxu0 %v10550_v0 }
 0x82f   : > { %10150 = vmatpush3.msra.mxu1 %v11845_v7  ;;  %10151 = vmatprep.mubr.msk.f32.mxu1 %vm10551_vm0, %v10550_v0 }
 0x830   : > { %9457 = vmatmul.mubr.msk.f32.vlgmr.msra.gmra.mxu0 %vm7801_vm15, %v7959_v18  ;;  %10152 = vmatmul.mubr.msk.f32.vlgmr.msra.gmra.mxu1 %vm7801_vm15, %v7959_v18 }
 0x831   : > { %8141 = vmatprep.subr.mxu0 %v12139_v20  ;;  %10154 = vmatprep.subr.mxu1 %v10550_v0 }
 0x832   : > { %8142 = vmatpush1.msra.mxu0 %v12143_v60  ;;  %10155 = vmatpush3.msra.mxu1 %v12146_v8 }
 0x833   : > { %8143 = vmatprep.subr.mxu0 %v11812_v31  ;;  %10156 = vmatprep.subr.mxu1 %v10550_v0 }
 0x834   : > { %8144 = vmatpush1.msra.mxu0 %v11816_v52  ;;  %10157 = vmatpush3.msra.mxu1 %v11819_v16 }
 0x835   : > { %8145 = vmatprep.subr.mxu0 %v11530_v15  ;;  %10158 = vmatprep.subr.mxu1 %v10550_v0 }
 0x836   : > { %8146 = vmatpush1.msra.mxu0 %v11534_v25  ;;  %10159 = vmatpush3.msra.mxu1 %v11537_v28 }
 0x837   : > { %8147 = vmatprep.subr.mxu0 %v11248_v3  ;;  %10160 = vmatprep.subr.mxu1 %v10550_v0 }
 0x838   : > { %8148 = vmatpush1.msra.mxu0 %v11251_v45  ;;  %10161 = vmatpush3.msra.mxu1 %v11255_v46 }
 0x839   : > { %8149 = vmatprep.subr.mxu0 %v11011_v23  ;;  %10162 = vmatprep.subr.mxu1 %v10550_v0 }
 0x83a   : > { %8150 = vmatpush1.msra.mxu0 %v11014_v26  ;;  %10163 = vmatpush3.msra.mxu1 %v11017_v27 }
 0x83b   : > { %8151 = vmatprep.subr.mxu0 %v11836_v63  ;;  %10164 = vmatprep.subr.mxu1 %v10550_v0 }
 0x83c   : > { %8152 = vmatpush1.msra.mxu0 %v11841_v5  ;;  %8185 = vmatprep.mubr.f32.mxu0 %v10550_v0 }
 0x83d   : > { %10165 = vmatpush3.msra.mxu1 %v11845_v7  ;;  %10166 = vmatprep.mubr.msk.f32.mxu1 %vm10551_vm0, %v10550_v0 }
 0x83e   : > { %9459 = vmatmul.mubr.msk.f32.vlgmr.msra.gmra.mxu0 %vm7801_vm15, %v8117_v19  ;;  %10167 = vmatmul.mubr.msk.f32.vlgmr.msra.gmra.mxu1 %vm7801_vm15, %v8117_v19 }
 0x83f   : > { %8299 = vmatprep.subr.mxu0 %v12139_v20  ;;  %10169 = vmatprep.subr.mxu1 %v10550_v0 }
 0x840   : > { %8300 = vmatpush1.msra.mxu0 %v12143_v60  ;;  %10170 = vmatpush3.msra.mxu1 %v12146_v8 }
 0x841   : > { %8301 = vmatprep.subr.mxu0 %v11812_v31  ;;  %10171 = vmatprep.subr.mxu1 %v10550_v0 }
 0x842   : > { %8302 = vmatpush1.msra.mxu0 %v11816_v52  ;;  %10172 = vmatpush3.msra.mxu1 %v11819_v16 }
 0x843   : > { %8303 = vmatprep.subr.mxu0 %v11530_v15  ;;  %10173 = vmatprep.subr.mxu1 %v10550_v0 }
 0x844   : > { %8304 = vmatpush1.msra.mxu0 %v11534_v25  ;;  %10174 = vmatpush3.msra.mxu1 %v11537_v28 }
 0x845   : > { %8305 = vmatprep.subr.mxu0 %v11248_v3  ;;  %10175 = vmatprep.subr.mxu1 %v10550_v0 }
 0x846   : > { %8306 = vmatpush1.msra.mxu0 %v11251_v45  ;;  %10176 = vmatpush3.msra.mxu1 %v11255_v46 }
 0x847   : > { %8307 = vmatprep.subr.mxu0 %v11011_v23  ;;  %10177 = vmatprep.subr.mxu1 %v10550_v0 }
 0x848   : > { %8308 = vmatpush1.msra.mxu0 %v11014_v26  ;;  %10178 = vmatpush3.msra.mxu1 %v11017_v27 }
 0x849   : > { %8309 = vmatprep.subr.mxu0 %v11836_v63  ;;  %10179 = vmatprep.subr.mxu1 %v10550_v0 }
 0x84a   : > { %8310 = vmatpush1.msra.mxu0 %v11841_v5  ;;  %8343 = vmatprep.mubr.f32.mxu0 %v10550_v0 }
 0x84b   : > { %10180 = vmatpush3.msra.mxu1 %v11845_v7  ;;  %10181 = vmatprep.mubr.msk.f32.mxu1 %vm10551_vm0, %v10550_v0 }
 0x84c   : > { %9461 = vmatmul.mubr.msk.f32.vlgmr.msra.gmra.mxu0 %vm7801_vm15, %v8275_v6  ;;  %10182 = vmatmul.mubr.msk.f32.vlgmr.msra.gmra.mxu1 %vm7801_vm15, %v8275_v6 }
 0x84d   : > { %8457 = vmatprep.subr.mxu0 %v12139_v20  ;;  %10184 = vmatprep.subr.mxu1 %v10550_v0 }
 0x84e   : > { %8458 = vmatpush1.msra.mxu0 %v12143_v60  ;;  %10185 = vmatpush3.msra.mxu1 %v12146_v8 }
 0x84f   : > { %8459 = vmatprep.subr.mxu0 %v11812_v31  ;;  %10186 = vmatprep.subr.mxu1 %v10550_v0 }
 0x850   : > { %8460 = vmatpush1.msra.mxu0 %v11816_v52  ;;  %10187 = vmatpush3.msra.mxu1 %v11819_v16 }
 0x851   : > { %8461 = vmatprep.subr.mxu0 %v11530_v15  ;;  %10188 = vmatprep.subr.mxu1 %v10550_v0 }
 0x852   : > { %8462 = vmatpush1.msra.mxu0 %v11534_v25  ;;  %10189 = vmatpush3.msra.mxu1 %v11537_v28 }
 0x853   : > { %8463 = vmatprep.subr.mxu0 %v11248_v3  ;;  %10190 = vmatprep.subr.mxu1 %v10550_v0 }
 0x854   : > { %8464 = vmatpush1.msra.mxu0 %v11251_v45  ;;  %10191 = vmatpush3.msra.mxu1 %v11255_v46 }
 0x855   : > { %8465 = vmatprep.subr.mxu0 %v11011_v23  ;;  %10192 = vmatprep.subr.mxu1 %v10550_v0 }
 0x856   : > { %8466 = vmatpush1.msra.mxu0 %v11014_v26  ;;  %10193 = vmatpush3.msra.mxu1 %v11017_v27 }
 0x857   : > { %8467 = vmatprep.subr.mxu0 %v11836_v63  ;;  %10194 = vmatprep.subr.mxu1 %v10550_v0  ;;  %v12309_v63 = vld [vmem:[%s10769_s14 + $0x8] sm:$0xff] }
 0x858   : > { %8468 = vmatpush1.msra.mxu0 %v11841_v5  ;;  %8501 = vmatprep.mubr.f32.mxu0 %v10550_v0  ;;  %v8582_v5 = vld [vmem:[#allocation9 + $0x28] sm:$0xff] }
 0x859   : > { %10195 = vmatpush3.msra.mxu1 %v11845_v7  ;;  %9463 = vmatmul.mubr.msk.f32.vlgmr.msra.gmra.mxu0 %vm7801_vm15, %v8433_v9  ;;  %v12314_v7 = vld [vmem:[%s10769_s14] sm:$0xff]  ;;  %s10262_s14 = smul.u32 384, %s10658_s17 }
 0x85a   : > { %10196 = vmatprep.mubr.msk.f32.mxu1 %vm10551_vm0, %v10550_v0  ;;  %8606 = vmatprep.subr.mxu0 %v12139_v20 }
 0x85b   : > { %10199 = vmatprep.subr.mxu1 %v10550_v0  ;;  %10197 = vmatmul.mubr.msk.f32.vlgmr.msra.gmra.mxu1 %vm7801_vm15, %v8433_v9 }
 0x85c   : > { %8607 = vmatpush1.msra.mxu0 %v12143_v60  ;;  %10200 = vmatpush3.msra.mxu1 %v12146_v8 }
 0x85d   : > { %8608 = vmatprep.subr.mxu0 %v11812_v31  ;;  %10201 = vmatprep.subr.mxu1 %v10550_v0 }
 0x85e   : > { %8609 = vmatpush1.msra.mxu0 %v11816_v52  ;;  %10202 = vmatpush3.msra.mxu1 %v11819_v16 }
 0x85f   : > { %8610 = vmatprep.subr.mxu0 %v11530_v15  ;;  %10203 = vmatprep.subr.mxu1 %v10550_v0 }
 0x860   : > { %8611 = vmatpush1.msra.mxu0 %v11534_v25  ;;  %10204 = vmatpush3.msra.mxu1 %v11537_v28 }
 0x861   : > { %8612 = vmatprep.subr.mxu0 %v11248_v3  ;;  %10205 = vmatprep.subr.mxu1 %v10550_v0 }
 0x862   : > { %8613 = vmatpush1.msra.mxu0 %v11251_v45  ;;  %10206 = vmatpush3.msra.mxu1 %v11255_v46 }
 0x863   : > { %8614 = vmatprep.subr.mxu0 %v11011_v23  ;;  %10207 = vmatprep.subr.mxu1 %v10550_v0 }
 0x864   : > { %8615 = vmatpush1.msra.mxu0 %v11014_v26  ;;  %10208 = vmatpush3.msra.mxu1 %v11017_v27 }
 0x865   : > { %8616 = vmatprep.subr.mxu0 %v12309_v63  ;;  %10209 = vmatprep.subr.mxu1 %v10550_v0 }
 0x866   : > { %8617 = vmatpush1.msra.mxu0 %v12314_v7  ;;  %8650 = vmatprep.mubr.f32.mxu0 %v10550_v0 }
 0x867   : > { %10210 = vmatpush3.msra.mxu1 %v12319_v10  ;;  %10211 = vmatprep.mubr.msk.f32.mxu1 %vm10551_vm0, %v10550_v0 }
 0x868   : > { %9465 = vmatmul.mubr.msk.f32.vlgmr.msra.gmra.mxu0 %vm7801_vm15, %v8582_v5  ;;  %10212 = vmatmul.mubr.msk.f32.vlgmr.msra.gmra.mxu1 %vm7801_vm15, %v8582_v5 }
 0x869   : > { %8764 = vmatprep.subr.mxu0 %v12139_v20  ;;  %10214 = vmatprep.subr.mxu1 %v10550_v0 }
 0x86a   : > { %8765 = vmatpush1.msra.mxu0 %v12143_v60  ;;  %10215 = vmatpush3.msra.mxu1 %v12146_v8 }
 0x86b   : > { %8766 = vmatprep.subr.mxu0 %v11812_v31  ;;  %10216 = vmatprep.subr.mxu1 %v10550_v0 }
 0x86c   : > { %8767 = vmatpush1.msra.mxu0 %v11816_v52  ;;  %10217 = vmatpush3.msra.mxu1 %v11819_v16 }
 0x86d   : > { %8768 = vmatprep.subr.mxu0 %v11530_v15  ;;  %10218 = vmatprep.subr.mxu1 %v10550_v0 }
 0x86e   : > { %8769 = vmatpush1.msra.mxu0 %v11534_v25  ;;  %10219 = vmatpush3.msra.mxu1 %v11537_v28 }
 0x86f   : > { %8770 = vmatprep.subr.mxu0 %v11248_v3  ;;  %10220 = vmatprep.subr.mxu1 %v10550_v0 }
 0x870   : > { %8771 = vmatpush1.msra.mxu0 %v11251_v45  ;;  %10221 = vmatpush3.msra.mxu1 %v11255_v46 }
 0x871   : > { %8772 = vmatprep.subr.mxu0 %v11011_v23  ;;  %10222 = vmatprep.subr.mxu1 %v10550_v0 }
 0x872   : > { %8773 = vmatpush1.msra.mxu0 %v11014_v26  ;;  %10223 = vmatpush3.msra.mxu1 %v11017_v27 }
 0x873   : > { %8774 = vmatprep.subr.mxu0 %v12309_v63  ;;  %10224 = vmatprep.subr.mxu1 %v10550_v0 }
 0x874   : > { %8775 = vmatpush1.msra.mxu0 %v12314_v7  ;;  %8808 = vmatprep.mubr.f32.mxu0 %v10550_v0 }
 0x875   : > { %10225 = vmatpush3.msra.mxu1 %v12319_v10  ;;  %10226 = vmatprep.mubr.msk.f32.mxu1 %vm10551_vm0, %v10550_v0 }
 0x876   : > { %9467 = vmatmul.mubr.msk.f32.vlgmr.msra.gmra.mxu0 %vm7801_vm15, %v8740_v11  ;;  %10227 = vmatmul.mubr.msk.f32.vlgmr.msra.gmra.mxu1 %vm7801_vm15, %v8740_v11 }
 0x877   : > { %8922 = vmatprep.subr.mxu0 %v12139_v20  ;;  %10229 = vmatprep.subr.mxu1 %v10550_v0 }
 0x878   : > { %8923 = vmatpush1.msra.mxu0 %v12143_v60  ;;  %10230 = vmatpush3.msra.mxu1 %v12146_v8 }
 0x879   : > { %8924 = vmatprep.subr.mxu0 %v11812_v31  ;;  %10231 = vmatprep.subr.mxu1 %v10550_v0 }
 0x87a   : > { %8925 = vmatpush1.msra.mxu0 %v11816_v52  ;;  %10232 = vmatpush3.msra.mxu1 %v11819_v16 }
 0x87b   : > { %8926 = vmatprep.subr.mxu0 %v11530_v15  ;;  %10233 = vmatprep.subr.mxu1 %v10550_v0 }
 0x87c   : > { %8927 = vmatpush1.msra.mxu0 %v11534_v25  ;;  %10234 = vmatpush3.msra.mxu1 %v11537_v28 }
 0x87d   : > { %8928 = vmatprep.subr.mxu0 %v11248_v3  ;;  %10235 = vmatprep.subr.mxu1 %v10550_v0 }
 0x87e   : > { %8929 = vmatpush1.msra.mxu0 %v11251_v45  ;;  %10236 = vmatpush3.msra.mxu1 %v11255_v46 }
 0x87f   : > { %8930 = vmatprep.subr.mxu0 %v11011_v23  ;;  %10237 = vmatprep.subr.mxu1 %v10550_v0 }
 0x880   : > { %8931 = vmatpush1.msra.mxu0 %v11014_v26  ;;  %10238 = vmatpush3.msra.mxu1 %v11017_v27 }
 0x881   : > { %8932 = vmatprep.subr.mxu0 %v12309_v63  ;;  %10239 = vmatprep.subr.mxu1 %v10550_v0 }
 0x882   : > { %8933 = vmatpush1.msra.mxu0 %v12314_v7  ;;  %8966 = vmatprep.mubr.f32.mxu0 %v10550_v0 }
 0x883   : > { %10240 = vmatpush3.msra.mxu1 %v12319_v10  ;;  %10241 = vmatprep.mubr.msk.f32.mxu1 %vm10551_vm0, %v10550_v0 }
 0x884   : > { %9469 = vmatmul.mubr.msk.f32.vlgmr.msra.gmra.mxu0 %vm7801_vm15, %v8898_v12  ;;  %10242 = vmatmul.mubr.msk.f32.vlgmr.msra.gmra.mxu1 %vm7801_vm15, %v8898_v12 }
 0x885   : > { %9080 = vmatprep.subr.mxu0 %v12139_v20  ;;  %10244 = vmatprep.subr.mxu1 %v10550_v0 }
 0x886   : > { %9081 = vmatpush1.msra.mxu0 %v12143_v60  ;;  %10245 = vmatpush3.msra.mxu1 %v12146_v8 }
 0x887   : > { %9082 = vmatprep.subr.mxu0 %v11812_v31  ;;  %10246 = vmatprep.subr.mxu1 %v10550_v0 }
 0x888   : > { %9083 = vmatpush1.msra.mxu0 %v11816_v52  ;;  %10247 = vmatpush3.msra.mxu1 %v11819_v16 }
 0x889   : > { %9084 = vmatprep.subr.mxu0 %v11530_v15  ;;  %10248 = vmatprep.subr.mxu1 %v10550_v0  ;;  %v9056_v15 = vld [vmem:[#allocation9 + $0x40] sm:$0xff] }
 0x88a   : > { %9085 = vmatpush1.msra.mxu0 %v11534_v25  ;;  %10249 = vmatpush3.msra.mxu1 %v11537_v28 }
 0x88b   : > { %9086 = vmatprep.subr.mxu0 %v11248_v3  ;;  %10250 = vmatprep.subr.mxu1 %v10550_v0 }
 0x88c   : > { %9087 = vmatpush1.msra.mxu0 %v11251_v45  ;;  %10251 = vmatpush3.msra.mxu1 %v11255_v46 }
 0x88d   : > { %9088 = vmatprep.subr.mxu0 %v11011_v23  ;;  %10252 = vmatprep.subr.mxu1 %v10550_v0 }
 0x88e   : > { %9089 = vmatpush1.msra.mxu0 %v11014_v26  ;;  %10253 = vmatpush3.msra.mxu1 %v11017_v27 }
 0x88f   : > { %9090 = vmatprep.subr.mxu0 %v12309_v63  ;;  %9124 = vmatprep.mubr.f32.mxu0 %v10550_v0 }
 0x890   : > { %9091 = vmatpush1.msra.mxu0 %v12314_v7  ;;  %10254 = vmatprep.subr.mxu1 %v10550_v0 }
 0x891   : > { %9471 = vmatmul.mubr.msk.f32.vlgmr.msra.gmra.mxu0 %vm7801_vm15, %v9056_v15  ;;  %10255 = vmatpush3.msra.mxu1 %v12319_v10 }
 0x892   : > { %10256 = vmatprep.mubr.msk.f32.mxu1 %vm10551_vm0, %v10550_v0 }
 0x893   : > { %10257 = vmatmul.mubr.msk.f32.vlgmr.msra.gmra.mxu1 %vm7801_vm15, %v9056_v15 }
 0x8e2   : > { %v7871_v23 = vpop.f32.mrf.mxu0  ;;  %v7942_v26 = vpop.f32.mrf.mxu1 }
 0x8e3   : > { %7950 = vrot.lane.b32.xlu0 %v7942_v26, %s10553_s23 }
 0x8e4   : > { %v7873_v27 = vpop.f32.mrf.mxu0  ;;  %v10138_v3 = vpop.f32.mrf.mxu1 }
 0x8e5   : > { %7948 = vrot.lane.b32.xlu1 %v7873_v27, %s10553_s23 }
 0x8e7   : > { %7946 = vrot.lane.b32.xlu0 %v7871_v23, %s10553_s23  ;;  %s527_s23 = scalar_lea.vmem [#allocation11], %s10261_s15  ;;  %s9217_s15 = scalar_lea.sflag [#allocation5], %s10763_s12 }
 0x8f0   : > { %v8029_v45 = vpop.f32.mrf.mxu0  ;;  %v8100_v46 = vpop.f32.mrf.mxu1 }
 0x8f1   : > { %8108 = vrot.lane.b32.xlu1 %v8100_v46, %s10554_s29 }
 0x8f2   : > { %v8031_v25 = vpop.f32.mrf.mxu0  ;;  %v10153_v28 = vpop.f32.mrf.mxu1 }
 0x8f3   : > { %8106 = vrot.lane.b32.xlu0 %v8031_v25, %s10554_s29 }
 0x8f5   : > { %8104 = vrot.lane.b32.xlu1 %v8029_v45, %s10554_s29  ;;  %s9231_s29 = sshll.u32 %s527_s23, 4  ;;  %s9232_s29 = int_to_ptr.vmem [resolvable:$true] %s9231_s29 }
 0x8fe   : > { %v8187_v0 = vpop.f32.mrf.mxu0  ;;  %v8258_v31 = vpop.f32.mrf.mxu1 }
 0x8ff   : > { %8266 = vrot.lane.b32.xlu0 %v8258_v31, %s10555_s28 }
 0x900   : > { %v8189_v52 = vpop.f32.mrf.mxu0  ;;  %v10168_v16 = vpop.f32.mrf.mxu1 }
 0x901   : > { %8264 = vrot.lane.b32.xlu1 %v8189_v52, %s10555_s28 }
 0x903   : > { %8262 = vrot.lane.b32.xlu0 %v8187_v0, %s10555_s28 }
 0x90c   : > { %v8345_v53 = vpop.f32.mrf.mxu0  ;;  %v8416_v13 = vpop.f32.mrf.mxu1 }
 0x90d   : > { %8424 = vrot.lane.b32.xlu1 %v8416_v13, %s10556_s20 }
 0x90e   : > { %v8347_v17 = vpop.f32.mrf.mxu0  ;;  %v10183_v21 = vpop.f32.mrf.mxu1 }
 0x90f   : > { %8422 = vrot.lane.b32.xlu0 %v8347_v17, %s10556_s20 }
 0x911   : > { %8420 = vrot.lane.b32.xlu1 %v8345_v53, %s10556_s20  ;;  %s12587_s20 = sld [smem:[#allocation24_spill]] }
 0x919   : > { %v12427_v34 = vpop.f32.mrf.mxu0 }
 0x91b   : > { %v12425_v22 = vpop.f32.mrf.mxu1  ;;  %v12429_v30 = vpop.f32.mrf.mxu0 }
 0x91d   : > { %v10198_v24 = vpop.f32.mrf.mxu1 }
 0x928   : > { %v8652_v59 = vpop.f32.mrf.mxu0  ;;  %v8723_v32 = vpop.f32.mrf.mxu1 }
 0x929   : > { %8731 = vrot.lane.b32.xlu0 %v8723_v32, %s10557_s24 }
 0x92a   : > { %v8654_v36 = vpop.f32.mrf.mxu0  ;;  %v10213_v37 = vpop.f32.mrf.mxu1 }
 0x92b   : > { %8729 = vrot.lane.b32.xlu1 %v8654_v36, %s10557_s24 }
 0x92d   : > { %8727 = vrot.lane.b32.xlu0 %v8652_v59, %s10557_s24  ;;  %s12500_s24 = scalar_lea.hbm %s12587_s20, %s10262_s14 }
 0x936   : > { %v8810_v48 = vpop.f32.mrf.mxu0  ;;  %v8881_v2 = vpop.f32.mrf.mxu1 }
 0x937   : > { %8889 = vrot.lane.b32.xlu1 %v8881_v2, %s10558_s27 }
 0x938   : > { %v8812_v35 = vpop.f32.mrf.mxu0  ;;  %v10228_v49 = vpop.f32.mrf.mxu1 }
 0x939   : > { %8887 = vrot.lane.b32.xlu0 %v8812_v35, %s10558_s27 }
 0x93b   : > { %8885 = vrot.lane.b32.xlu1 %v8810_v48, %s10558_s27  ;;  %s10470_s27 = scalar_lea.vmem %s9232_s29, 384 }
 0x93c   : > { %p10471_p4 = scmp.ne.s32.totalorder %s9232_s29, %s10470_s27 }
 0x93e   : > { %p10472_p12 = pnand %p10471_p4, %p12588_p6 }
 0x940   : > { %p10473_p0 = pneg %p10472_p12 }
 0x944   : > { %v8968_v55 = vpop.f32.mrf.mxu0  ;;  %v9039_v29 = vpop.f32.mrf.mxu1 }
 0x945   : > { %9047 = vrot.lane.b32.xlu0 %v9039_v29, %s10559_s8 }
 0x946   : > { %v8970_v39 = vpop.f32.mrf.mxu0  ;;  %v10243_v57 = vpop.f32.mrf.mxu1 }
 0x947   : > { %9045 = vrot.lane.b32.xlu1 %v8970_v39, %s10559_s8 }
 0x949   : > { %9043 = vrot.lane.b32.xlu0 %v8968_v55, %s10559_s8  ;;  %s10561_s8 = smov [#allocation11]  }
 0x951   : > { %v9126_v33 = vpop.f32.mrf.mxu0 }
 0x952   : > { %9201 = vrot.lane.b32.xlu1 %v9126_v33, %s10560_s10 }
 0x953   : > { %v9128_v40 = vpop.f32.mrf.mxu0  ;;  %v9197_v41 = vpop.f32.mrf.mxu1 }
 0x954   : > { %9203 = vrot.lane.b32.xlu0 %v9128_v40, %s10560_s10 }
 0x955   : > { %v10258_v38 = vpop.f32.mrf.mxu1  ;;  %v7951_v43 = vpop.permute.xlu0 %7950 }
 0x956   : > { %9205 = vrot.lane.b32.xlu1 %v9197_v41, %s10560_s10  ;;  %s10474_s10 = sshll.u32 %s10561_s8, 4  ;;  %s10475_s10 = int_to_ptr.vmem [resolvable:$false] %s10474_s10 }
 0x957   : > { %v7949_v42 = vpop.permute.xlu1 %7948  ;;  %s10476_s26 = scalar_lea.vmem %s10475_s10, 768  ;;  %p10477_p5 = scmp.lt.s32.totalorder %s9232_s29, %s10475_s10 }
 0x958   : > { %v7952_v19 = vsel %vm698_vm2, %v7949_v42, %v7951_v43  ;;  %p10478_p3 = scmp.lt.s32.totalorder %s10476_s26, %s10470_s27 }
 0x959   : > { %v7947_v44 = vpop.permute.xlu0 %7946  ;;  %v7957_v15 = vadd.f32 %v7952_v19, %v7798_v4 }
 0x95a   : > { %v7954_v18 = vsel %vm698_vm2, %v7951_v43, %v7947_v44  ;;  %v7953_v6 = vsel %vm698_vm2, %v7947_v44, %v7949_v42  ;;  %p10479_p7 = por %p10478_p3, %p10477_p5 }
 0x95b   : > { %v7955_v63 = vadd.f32 %v7954_v18, %v7798_v4  ;;  %v7956_v23 = vadd.f32 %v7953_v6, %v7798_v4 }
 0x95c   : > { %p10480_p9 = pnand %p10479_p7, %p10473_p0 }
 0x963   : > { %v8109_v47 = vpop.permute.xlu1 %8108 }
 0x965   : > { %v8107_v51 = vpop.permute.xlu0 %8106 }
 0x966   : > { %v8110_v10 = vsel %vm857_vm3, %v8107_v51, %v8109_v47 }
 0x967   : > { %v8105_v50 = vpop.permute.xlu1 %8104  ;;  %v8115_v46 = vadd.f32 %v8110_v10, %v7957_v15 }
 0x968   : > { %v8112_v9 = vsel %vm857_vm3, %v8109_v47, %v8105_v50  ;;  %v8111_v11 = vsel %vm857_vm3, %v8105_v50, %v8107_v51 }
 0x969   : > { %v8113_v26 = vadd.f32 %v8112_v9, %v7955_v63  ;;  %v8114_v25 = vadd.f32 %v8111_v11, %v7956_v23 }
 0x971   : > { %v8267_v54 = vpop.permute.xlu0 %8266 }
 0x973   : > { %v8265_v20 = vpop.permute.xlu1 %8264 }
 0x974   : > { %v8268_v27 = vsel %vm1016_vm4, %v8265_v20, %v8267_v54 }
 0x975   : > { %v8263_v56 = vpop.permute.xlu0 %8262  ;;  %v8273_v16 = vadd.f32 %v8268_v27, %v8115_v46 }
 0x976   : > { %v8270_v12 = vsel %vm1016_vm4, %v8267_v54, %v8263_v56  ;;  %v8269_v3 = vsel %vm1016_vm4, %v8263_v56, %v8265_v20 }
 0x977   : > { %v8271_v28 = vadd.f32 %v8270_v12, %v8113_v26  ;;  %v8272_v53 = vadd.f32 %v8269_v3, %v8114_v25 }
 0x97f   : > { %v8425_v61 = vpop.permute.xlu1 %8424 }
 0x981   : > { %v8423_v62 = vpop.permute.xlu0 %8422 }
 0x982   : > { %v8426_v31 = vsel %vm1175_vm5, %v8423_v62, %v8425_v61 }
 0x983   : > { %v8421_v60 = vpop.permute.xlu1 %8420  ;;  %v8431_v21 = vadd.f32 %v8426_v31, %v8273_v16 }
 0x984   : > { %v8428_v45 = vsel %vm1175_vm5, %v8425_v61, %v8421_v60  ;;  %v8427_v52 = vsel %vm1175_vm5, %v8421_v60, %v8423_v62 }
 0x985   : > { %v8429_v13 = vadd.f32 %v8428_v45, %v8271_v28  ;;  %v8430_v24 = vadd.f32 %v8427_v52, %v8272_v53  ;;  %v8580_v55 = vadd.f32 %v12425_v22, %v8431_v21 }
 0x987   : > { %v8578_v32 = vadd.f32 %v12427_v34, %v8429_v13  ;;  %v8579_v49 = vadd.f32 %v12429_v30, %v8430_v24 }
 0x99b   : > { %v8732_v58 = vpop.permute.xlu0 %8731 }
 0x99d   : > { %v8730_v8 = vpop.permute.xlu1 %8729 }
 0x99e   : > { %v8733_v48 = vsel %vm1483_vm6, %v8730_v8, %v8732_v58 }
 0x99f   : > { %v8728_v14 = vpop.permute.xlu0 %8727  ;;  %v8737_v33 = vadd.f32 %v8733_v48, %v8579_v49 }
 0x9a0   : > { %v8734_v59 = vsel %vm1483_vm6, %v8728_v14, %v8730_v8  ;;  %v8735_v2 = vsel %vm1483_vm6, %v8732_v58, %v8728_v14 }
 0x9a1   : > { %v8736_v29 = vadd.f32 %v8734_v59, %v8578_v32  ;;  %v8738_v40 = vadd.f32 %v8735_v2, %v8580_v55 }
 0x9a9   : > { %v8890_v5 = vpop.permute.xlu1 %8889 }
 0x9ab   : > { %v8888_v7 = vpop.permute.xlu0 %8887 }
 0x9ac   : > { %v8891_v34 = vsel %vm1642_vm7, %v8888_v7, %v8890_v5 }
 0x9ad   : > { %v8886_v17 = vpop.permute.xlu1 %8885  ;;  %v8895_v43 = vadd.f32 %v8891_v34, %v8737_v33 }
 0x9ae   : > { %v8892_v35 = vsel %vm1642_vm7, %v8886_v17, %v8888_v7  ;;  %v8893_v39 = vsel %vm1642_vm7, %v8890_v5, %v8886_v17 }
 0x9af   : > { %v8894_v41 = vadd.f32 %v8892_v35, %v8736_v29  ;;  %v8896_v4 = vadd.f32 %v8893_v39, %v8738_v40 }
 0x9b7   : > { %v9048_v0 = vpop.permute.xlu0 %9047 }
 0x9b9   : > { %v9046_v36 = vpop.permute.xlu1 %9045 }
 0x9ba   : > { %v9049_v30 = vsel %vm1801_vm8, %v9046_v36, %v9048_v0 }
 0x9bb   : > { %v9044_v37 = vpop.permute.xlu0 %9043  ;;  %v9053_v51 = vadd.f32 %v9049_v30, %v8895_v43 }
 0x9bc   : > { %v9050_v57 = vsel %vm1801_vm8, %v9044_v37, %v9046_v36  ;;  %v9051_v22 = vsel %vm1801_vm8, %v9048_v0, %v9044_v37 }
 0x9bd   : > { %v9052_v42 = vadd.f32 %v9050_v57, %v8894_v41  ;;  %v9054_v54 = vadd.f32 %v9051_v22, %v8896_v4 }
 0x9c4   : > { %v9202_v38 = vpop.permute.xlu1 %9201 }
 0x9c6   : > { %v9204_v44 = vpop.permute.xlu0 %9203 }
 0x9c7   : > { %v9208_v47 = vsel %vm1960_vm9, %v9202_v38, %v9204_v44 }
 0x9c8   : > { %v9210_v50 = vadd.f32 %v9208_v47, %v9052_v42  ;;  %v9206_v20 = vpop.permute.xlu1 %9205 }
 0x9c9   : > { %v9207_v56 = vsel %vm1960_vm9, %v9204_v44, %v9206_v20  ;;  %v9209_v61 = vsel %vm1960_vm9, %v9206_v20, %v9202_v38 }
 0x9ca   : > { %9213 = vst [vmem:[%s527_s23] sm:$0xff] %v9210_v50  ;;  %v9211_v62 = vadd.f32 %v9207_v56, %v9053_v51  ;;  %v9212_v58 = vadd.f32 %v9209_v61, %v9054_v54 }
 0x9cc   : > { %9214 = vst [vmem:[%s527_s23 + $0x8] sm:$0xff] %v9211_v62  ;;  %9215 = vst [vmem:[%s527_s23 + $0x10] sm:$0xff] %v9212_v58 }
 0x9cd   : > { %10483 = shalt.err (!%p10480_p9)
}
 0x9ce   : > { %s10484_s25 = scalar_lea.hbm %s12500_s24, 384  ;;  %s10488_s21 = scalar_lea.hbm %s12587_s20, 768 }
 0x9cf   : > { %p10485_p13 = scmp.ne.s32.totalorder %s12500_s24, %s10484_s25  ;;  %p10489_p11 = scmp.lt.s32.totalorder %s12500_s24, %s12587_s20 }
 0x9d0   : > { %p10490_p1 = scmp.lt.s32.totalorder %s10488_s21, %s10484_s25 }
 0x9d1   : > { %p10486_p8 = pnand %p10485_p13, %p12588_p6 }
 0x9d2   : > { %p10491_p2 = por %p10490_p1, %p10489_p11 }
 0x9d3   : > { %p10487_p10 = pneg %p10486_p8 }
 0x9d5   : > { %p10492_p4 = pnand %p10491_p2, %p10487_p10 }
 0x9d7   : > { %10495 = shalt.err (!%p10492_p4)
}
 0x9d8   : > { %10277 = dma.vmem_to_hbm [thread:$0]  (%p12588_p6), %s9232_s29, 384, %s12500_s24, %s9217_s15  }
 0x9d9 PF: > { %s12589_s23 = sld [smem:[#allocation16_spill]]  ;;  %p12592_p0 = scmp.ge.s32.totalorder %s10542_s16, 2 }
 0x9da   : > { %s12590_s17 = sld [smem:[#allocation18_spill]] }
 0x9df   : > { %s9243_s28 = sand.u32 1, %s12589_s23  }
 0x9e0   : > { %p12591_p12 = scmp.ne.s32.totalorder %s12590_s17, 0  ;;  %s9244_s27 = scalar_lea.sflag [#allocation5], %s9243_s28 }
 0x9e2   : > { %p10294_p5 = pnand %p12592_p0, %p12591_p12 }
 0x9e4   : > { %p10295_p3 = pneg %p10294_p5 }
 0x9e6   : > { %10525 = dma.done.wait (%p10295_p3), %s9244_s27, 384  }
 0x9e7   : > { %10527 = vsyncadd (%p10295_p3), %s9244_s27, 4294966912  ;;  %s12593_s16 = sld [smem:[#allocation19_spill]]  ;;  %s12596_s29 = smov %s10534_s30 }
 0x9e8   : > { %s12594_s8 = sld [smem:[#allocation17_spill]] }
 0x9e9   : > { %s12595_s15 = sld [smem:[#allocation20_spill]] }
 0x9ed   : > { %p29_p7 = scmp.ge.s32.totalorder %s12593_s16, 4  }
 0x9ee   : > { %s12597_s30 = smov %s12594_s8 }
 0x9ef   :  { %31 = sbr.rel (!%p29_p7) target bundleno = 12 (0xc), region = 181 }
 0x9f4   :  { %9249 = vsyncpa [#allocation4], 1 }
 0x9f5   :  { %9251 = vsyncpa [#allocation4 + $0x1], 1 }
 0x9f6   :  { %9252 = vsyncpa [#allocation7], 1 }
 0x9f7   :  { %9253 = vsyncpa [#allocation10], 1 }
 0x9f8   :  { %9254 = vsyncpa [#allocation5], 1 }
 0x9f9   :  { %9256 = vsyncpa [#allocation5 + $0x1], 1 }

</bundles_post_ra>
